<compile_context>
chip_gen: v6e
topology: v6e:2x2x1
jax: 0.10.0
libtpu: 0.0.40
codegen_flags: <defaults>
</compile_context>

<pallas_src>
import math
from functools import partial

import jax
import jax.numpy as jnp
from jax import lax
from jax.experimental import pallas as pl
from jax.experimental.pallas import tpu as pltpu


_VMEM_LIMIT = 32 * 1024 * 1024  # safe scoped-VMEM budget on v5e / v6e / v7x


# ----------------------------------------------------------------------------------
# tanh-approximate GELU (exp/tanh run on the EUP slot, off the VALU).
# TODO(synk): PyTorch nn.GELU() is the exact erf form; the tanh approximation differs by
#             ~3e-4 max abs, accepted per performance review for f32 inference.
# ----------------------------------------------------------------------------------
def _gelu_tanh(x):
    c = math.sqrt(2.0 / math.pi)
    return 0.5 * x * (1.0 + jnp.tanh(c * (x + 0.044715 * x * x * x)))


# ----------------------------------------------------------------------------------
# Kernel 1: pos_embed (depthwise 3x3, pad 1, bias) fused with the residual add.
# Each image is an [H, W*C] lane-dense tile; the +/-1 row/column taps are pltpu.roll
# rotations with the wrapped border zeroed by iota masks (implicit zero padding).
# ----------------------------------------------------------------------------------
def _posembed_kernel(x_ref, w_ref, b_ref, o_ref, *, H, W, C):
    WC = W * C
    x2 = x_ref[...]                                           # [H, W*C]
    row = lax.broadcasted_iota(jnp.int32, (H, WC), 0)
    lane = lax.broadcasted_iota(jnp.int32, (H, WC), 1)

    acc = x2 + b_ref[...]                                     # residual + conv bias
    for di in range(3):
        ki = di - 1
        if ki == 0:
            xr = x2
        elif ki == -1:                                        # needs x[h-1]; row 0 is halo
            xr = jnp.where(row == 0, 0.0, pltpu.roll(x2, 1, axis=0))
        else:                                                 # ki == +1; row H-1 is halo
            xr = jnp.where(row == H - 1, 0.0, pltpu.roll(x2, H - 1, axis=0))
        for dj in range(3):
            kj = dj - 1
            if kj == 0:
                xs = xr
            elif kj == -1:                                    # needs x[w-1]; col 0 is halo
                xs = jnp.where(lane < C, 0.0, pltpu.roll(xr, C, axis=1))
            else:                                             # kj == +1; col W-1 is halo
                xs = jnp.where(lane >= WC - C, 0.0, pltpu.roll(xr, WC - C, axis=1))
            k = di * 3 + dj
            acc = acc + xs * w_ref[k:k + 1, :]                # [1, W*C] broadcast weight
    o_ref[...] = acc


def pos_embed_residual(x_nhwc, w, b):
    B, H, W, C = x_nhwc.shape
    WC = W * C
    x2 = x_nhwc.reshape(B, H, WC)                             # free, contiguous reshape
    # pre-tile depthwise weight / bias across the W positions so the kernel uses
    # plain full-width [1, W*C] broadcasts (tiny one-time cost: 9*W*C floats).
    w_t = jnp.tile(w.reshape(9, C), (1, W))                   # [9, W*C], tap k = 3*di+dj
    b_t = jnp.tile(b, W).reshape(1, WC)                       # [1, W*C]
    out = pl.pallas_call(
        partial(_posembed_kernel, H=H, W=W, C=C),
        out_shape=jax.ShapeDtypeStruct((B, H, WC), jnp.float32),
        grid=(B,),
        in_specs=[
            pl.BlockSpec((None, H, WC), lambda i: (i, 0, 0)),
            pl.BlockSpec((9, WC), lambda i: (0, 0)),
            pl.BlockSpec((1, WC), lambda i: (0, 0)),
        ],
        out_specs=pl.BlockSpec((None, H, WC), lambda i: (i, 0, 0)),
        compiler_params=pltpu.CompilerParams(
            dimension_semantics=("parallel",), vmem_limit_bytes=_VMEM_LIMIT),
    )(x2, w_t, b_t)
    return out.reshape(B, H * W, C)                           # tokens [B, N, C]


# ----------------------------------------------------------------------------------
# Kernel 2: per-batch fusion of
#   LayerNorm1 -> K|V projection -> learnable-query attention -> output projection
#   -> LayerNorm2 -> MLP (fc1 -> GELU -> fc2) -> residual
# Everything (kv [N,2C], attention output [10,C]) stays on-chip.
# ----------------------------------------------------------------------------------
def _fused_attn_mlp_kernel(x_ref, q_ref, ln1w_ref, ln1b_ref, wkv_ref,
                           wp_ref, bp_ref, ln2w_ref, ln2b_ref,
                           w1_ref, b1_ref, w2_ref, b2_ref, o_ref,
                           *, num_heads, head_dim, scale, eps):
    C = num_heads * head_dim

    # ---- LayerNorm1 + fused (bias-free) K|V projection ----
    xx = x_ref[...]                                           # [N, C]
    mu = jnp.mean(xx, axis=-1, keepdims=True)
    d = xx - mu
    var = jnp.mean(d * d, axis=-1, keepdims=True)
    t = d * lax.rsqrt(var + eps) * ln1w_ref[...] + ln1b_ref[...]
    kv = jnp.dot(t, wkv_ref[...], preferred_element_type=jnp.float32)   # [N, 2C] = K|V

    # ---- learnable-query attention (heads unrolled, projection hoisted) ----
    q = q_ref[...]                                            # [Q, C]
    heads = []
    for h in range(num_heads):
        lo = h * head_dim
        qh = q[:, lo:lo + head_dim]                           # [Q, hd]
        kh = kv[:, lo:lo + head_dim]                          # [N, hd]
        vh = kv[:, C + lo:C + lo + head_dim]                  # [N, hd]
        s = lax.dot_general(qh, kh, (((1,), (1,)), ((), ())),
                            preferred_element_type=jnp.float32) * scale  # [Q, N]
        s = s - jnp.max(s, axis=-1, keepdims=True)
        p = jnp.exp(s)
        p = p * pl.reciprocal(jnp.sum(p, axis=-1, keepdims=True), approx=True)
        heads.append(jnp.dot(p, vh, preferred_element_type=jnp.float32))  # [Q, hd]
    o_att = jnp.concatenate(heads, axis=-1)                   # [Q, C]
    a = jnp.dot(o_att, wp_ref[...], preferred_element_type=jnp.float32) + bp_ref[...]

    # ---- LayerNorm2 + MLP + residual (on the 10 query tokens) ----
    mu2 = jnp.mean(a, axis=-1, keepdims=True)
    d2 = a - mu2
    var2 = jnp.mean(d2 * d2, axis=-1, keepdims=True)
    t2 = d2 * lax.rsqrt(var2 + eps) * ln2w_ref[...] + ln2b_ref[...]
    hdn = jnp.dot(t2, w1_ref[...], preferred_element_type=jnp.float32) + b1_ref[...]
    hdn = _gelu_tanh(hdn)
    y = jnp.dot(hdn, w2_ref[...], preferred_element_type=jnp.float32) + b2_ref[...]
    o_ref[...] = a + y


def fused_attn_mlp(tokens, p, num_heads, eps=1e-5):
    B, N, C = tokens.shape
    Q = p["q"].shape[0]
    Hm = p["w_fc1"].shape[1]
    head_dim = C // num_heads
    scale = head_dim ** (-0.5)
    kern = partial(_fused_attn_mlp_kernel, num_heads=num_heads,
                   head_dim=head_dim, scale=scale, eps=eps)
    return pl.pallas_call(
        kern,
        out_shape=jax.ShapeDtypeStruct((B, Q, C), jnp.float32),
        grid=(B,),
        in_specs=[
            pl.BlockSpec((None, N, C), lambda b: (b, 0, 0)),   # tokens (per batch)
            pl.BlockSpec((Q, C), lambda b: (0, 0)),            # learnable queries
            pl.BlockSpec((1, C), lambda b: (0, 0)),            # ln1 weight
            pl.BlockSpec((1, C), lambda b: (0, 0)),            # ln1 bias
            pl.BlockSpec((C, 2 * C), lambda b: (0, 0)),        # fused K|V weight
            pl.BlockSpec((C, C), lambda b: (0, 0)),            # proj weight
            pl.BlockSpec((1, C), lambda b: (0, 0)),            # proj bias
            pl.BlockSpec((1, C), lambda b: (0, 0)),            # ln2 weight
            pl.BlockSpec((1, C), lambda b: (0, 0)),            # ln2 bias
            pl.BlockSpec((C, Hm), lambda b: (0, 0)),           # fc1 weight
            pl.BlockSpec((1, Hm), lambda b: (0, 0)),           # fc1 bias
            pl.BlockSpec((Hm, C), lambda b: (0, 0)),           # fc2 weight
            pl.BlockSpec((1, C), lambda b: (0, 0)),            # fc2 bias
        ],
        out_specs=pl.BlockSpec((None, Q, C), lambda b: (b, 0, 0)),
        compiler_params=pltpu.CompilerParams(
            dimension_semantics=("parallel",), vmem_limit_bytes=_VMEM_LIMIT),
    )(tokens, p["q"], p["ln1_w"].reshape(1, C), p["ln1_b"].reshape(1, C),
      p["w_kv"], p["w_proj"], p["b_proj"].reshape(1, C),
      p["ln2_w"].reshape(1, C), p["ln2_b"].reshape(1, C),
      p["w_fc1"], p["b_fc1"].reshape(1, Hm), p["w_fc2"], p["b_fc2"].reshape(1, C))


# ----------------------------------------------------------------------------------
# query_SABlock forward
# ----------------------------------------------------------------------------------
def query_sablock_forward(x_nchw, p, num_heads):
    B, C, H, W = x_nchw.shape
    x = jnp.transpose(x_nchw, (0, 2, 3, 1)).astype(jnp.float32)   # NCHW -> NHWC

    # x = x + pos_embed(x); flatten(2).transpose(1,2) is a free reshape in NHWC layout
    tokens = pos_embed_residual(x, p["pos_w"], p["pos_b"])        # [B, N, C]

    # x = attn(norm1(x)); x = x + mlp(norm2(x))  -- fully fused per batch element.
    # TODO(synk): Dropout / attn_drop / proj_drop / DropPath are train-mode randomness;
    #             implemented as identities (inference semantics).
    return fused_attn_mlp(tokens, p, num_heads)                   # [B, 10, C]


# ----------------------------------------------------------------------------------
# Deterministic synthetic parameters (weights in "input @ weight" orientation)
# ----------------------------------------------------------------------------------
def init_params(key, dim, mlp_ratio=4.0):
    hidden = int(dim * mlp_ratio)
    keys = jax.random.split(key, 16)
    kit = iter(keys)

    def rnd(shape, scale=0.1):
        return jax.random.normal(next(kit), shape, jnp.float32) * scale

    wk = rnd((dim, dim))
    wv = rnd((dim, dim))
    return {
        "pos_w": rnd((3, 3, dim)),                       # depthwise conv weight
        "pos_b": rnd((dim,)),
        "ln1_w": jnp.ones((dim,), jnp.float32),
        "ln1_b": jnp.zeros((dim,), jnp.float32),
        "q": rnd((10, dim), 1.0),                        # learnable query tokens
        "w_kv": jnp.concatenate([wk, wv], axis=1),       # fused K|V weight (qkv_bias=False)
        "w_proj": rnd((dim, dim)),
        "b_proj": rnd((dim,)),
        "ln2_w": jnp.ones((dim,), jnp.float32),
        "ln2_b": jnp.zeros((dim,), jnp.float32),
        "w_fc1": rnd((dim, hidden)),
        "b_fc1": rnd((hidden,)),
        "w_fc2": rnd((hidden, dim)),
        "b_fc2": rnd((dim,)),
    }


# ----------------------------------------------------------------------------------
if __name__ == "__main__":
    B, dim, H, W = 2, 32, 16, 16
    num_heads = 2

    key = jax.random.PRNGKey(0)
    kx, kp = jax.random.split(key)
    x = jax.random.normal(kx, (B, dim, H, W), jnp.float32)   # NCHW, like PyTorch
    params = init_params(kp, dim, mlp_ratio=4.0)

    fwd = jax.jit(partial(query_sablock_forward, num_heads=num_heads))
    out = fwd(x, params)
    out = jax.block_until_ready(out)

    assert out.shape == (B, 10, dim), out.shape
    assert bool(jnp.all(jnp.isfinite(out)))
    print("KERNEL_OK")
</pallas_src>

<mosaic_0001>
module attributes {stable_mosaic.version = 11 : i64} {
  func.func @_posembed_kernel(%arg0: i32, %arg1: memref<1x16x512xf32, #tpu.memory_space<vmem>>, %arg2: memref<9x512xf32, #tpu.memory_space<vmem>>, %arg3: memref<1x512xf32, #tpu.memory_space<vmem>>, %arg4: memref<1x16x512xf32, #tpu.memory_space<vmem>>) attributes {dimension_semantics = [#tpu.dimension_semantics<parallel>], iteration_bounds = array<i64: 2>, scalar_prefetch = 0 : i64, scratch_operands = 0 : i64, tpu.core_type = #tpu.core_type<tc>, window_params = [{transform_indices = @transform_0, window_bounds = array<i64: 1, 16, 512>}, {pipeline_mode = #tpu.pipeline_mode<synchronous>, transform_indices = @transform_1, window_bounds = array<i64: 9, 512>}, {pipeline_mode = #tpu.pipeline_mode<synchronous>, transform_indices = @transform_2, window_bounds = array<i64: 1, 512>}, {transform_indices = @transform_3, window_bounds = array<i64: 1, 16, 512>}]} {
    %c0 = arith.constant 0 : index
    %c0_0 = arith.constant 0 : index
    %c0_1 = arith.constant 0 : index
    %0 = vector.load %arg1[%c0, %c0_0, %c0_1] : memref<1x16x512xf32, #tpu.memory_space<vmem>>, vector<1x16x512xf32>
    %1 = vector.shape_cast %0 : vector<1x16x512xf32> to vector<16x512xf32>
    %2 = tpu.iota {dimensions = array<i32: 0>} : vector<16x512xi32>
    %3 = tpu.iota {dimensions = array<i32: 1>} : vector<16x512xi32>
    %c0_2 = arith.constant 0 : index
    %c0_3 = arith.constant 0 : index
    %4 = vector.load %arg3[%c0_2, %c0_3] : memref<1x512xf32, #tpu.memory_space<vmem>>, vector<1x512xf32>
    %5 = vector.broadcast %4 : vector<1x512xf32> to vector<16x512xf32>
    %6 = arith.addf %1, %5 : vector<16x512xf32>
    %c0_i32 = arith.constant 0 : i32
    %7 = vector.broadcast %c0_i32 : i32 to vector<16x512xi32>
    %8 = arith.cmpi eq, %2, %7 : vector<16x512xi32>
    %c1_i32 = arith.constant 1 : i32
    %9 = tpu.dynamic_rotate %1 by %c1_i32 dim 0 : vector<16x512xf32>, i32 -> vector<16x512xf32>
    %cst = arith.constant 0.000000e+00 : f32
    %10 = vector.broadcast %cst : f32 to vector<16x512xf32>
    %11 = arith.select %8, %10, %9 : vector<16x512xi1>, vector<16x512xf32>
    %c32_i32 = arith.constant 32 : i32
    %12 = vector.broadcast %c32_i32 : i32 to vector<16x512xi32>
    %13 = arith.cmpi slt, %3, %12 : vector<16x512xi32>
    %c32_i32_4 = arith.constant 32 : i32
    %14 = tpu.dynamic_rotate %11 by %c32_i32_4 dim 1 : vector<16x512xf32>, i32 -> vector<16x512xf32>
    %cst_5 = arith.constant 0.000000e+00 : f32
    %15 = vector.broadcast %cst_5 : f32 to vector<16x512xf32>
    %16 = arith.select %13, %15, %14 : vector<16x512xi1>, vector<16x512xf32>
    %c0_6 = arith.constant 0 : index
    %c0_7 = arith.constant 0 : index
    %17 = vector.load %arg2[%c0_6, %c0_7] : memref<9x512xf32, #tpu.memory_space<vmem>>, vector<1x512xf32>
    %18 = vector.broadcast %17 : vector<1x512xf32> to vector<16x512xf32>
    %19 = arith.mulf %16, %18 : vector<16x512xf32>
    %20 = arith.addf %6, %19 : vector<16x512xf32>
    %c1 = arith.constant 1 : index
    %c0_8 = arith.constant 0 : index
    %21 = vector.load %arg2[%c1, %c0_8] : memref<9x512xf32, #tpu.memory_space<vmem>>, vector<1x512xf32>
    %22 = vector.broadcast %21 : vector<1x512xf32> to vector<16x512xf32>
    %23 = arith.mulf %11, %22 : vector<16x512xf32>
    %24 = arith.addf %20, %23 : vector<16x512xf32>
    %c480_i32 = arith.constant 480 : i32
    %25 = vector.broadcast %c480_i32 : i32 to vector<16x512xi32>
    %26 = arith.cmpi sge, %3, %25 : vector<16x512xi32>
    %c480_i32_9 = arith.constant 480 : i32
    %27 = tpu.dynamic_rotate %11 by %c480_i32_9 dim 1 : vector<16x512xf32>, i32 -> vector<16x512xf32>
    %cst_10 = arith.constant 0.000000e+00 : f32
    %28 = vector.broadcast %cst_10 : f32 to vector<16x512xf32>
    %29 = arith.select %26, %28, %27 : vector<16x512xi1>, vector<16x512xf32>
    %c2 = arith.constant 2 : index
    %c0_11 = arith.constant 0 : index
    %30 = vector.load %arg2[%c2, %c0_11] : memref<9x512xf32, #tpu.memory_space<vmem>>, vector<1x512xf32>
    %31 = vector.broadcast %30 : vector<1x512xf32> to vector<16x512xf32>
    %32 = arith.mulf %29, %31 : vector<16x512xf32>
    %33 = arith.addf %24, %32 : vector<16x512xf32>
    %c32_i32_12 = arith.constant 32 : i32
    %34 = vector.broadcast %c32_i32_12 : i32 to vector<16x512xi32>
    %35 = arith.cmpi slt, %3, %34 : vector<16x512xi32>
    %c32_i32_13 = arith.constant 32 : i32
    %36 = tpu.dynamic_rotate %1 by %c32_i32_13 dim 1 : vector<16x512xf32>, i32 -> vector<16x512xf32>
    %cst_14 = arith.constant 0.000000e+00 : f32
    %37 = vector.broadcast %cst_14 : f32 to vector<16x512xf32>
    %38 = arith.select %35, %37, %36 : vector<16x512xi1>, vector<16x512xf32>
    %c3 = arith.constant 3 : index
    %c0_15 = arith.constant 0 : index
    %39 = vector.load %arg2[%c3, %c0_15] : memref<9x512xf32, #tpu.memory_space<vmem>>, vector<1x512xf32>
    %40 = vector.broadcast %39 : vector<1x512xf32> to vector<16x512xf32>
    %41 = arith.mulf %38, %40 : vector<16x512xf32>
    %42 = arith.addf %33, %41 : vector<16x512xf32>
    %c4 = arith.constant 4 : index
    %c0_16 = arith.constant 0 : index
    %43 = vector.load %arg2[%c4, %c0_16] : memref<9x512xf32, #tpu.memory_space<vmem>>, vector<1x512xf32>
    %44 = vector.broadcast %43 : vector<1x512xf32> to vector<16x512xf32>
    %45 = arith.mulf %1, %44 : vector<16x512xf32>
    %46 = arith.addf %42, %45 : vector<16x512xf32>
    %c480_i32_17 = arith.constant 480 : i32
    %47 = vector.broadcast %c480_i32_17 : i32 to vector<16x512xi32>
    %48 = arith.cmpi sge, %3, %47 : vector<16x512xi32>
    %c480_i32_18 = arith.constant 480 : i32
    %49 = tpu.dynamic_rotate %1 by %c480_i32_18 dim 1 : vector<16x512xf32>, i32 -> vector<16x512xf32>
    %cst_19 = arith.constant 0.000000e+00 : f32
    %50 = vector.broadcast %cst_19 : f32 to vector<16x512xf32>
    %51 = arith.select %48, %50, %49 : vector<16x512xi1>, vector<16x512xf32>
    %c5 = arith.constant 5 : index
    %c0_20 = arith.constant 0 : index
    %52 = vector.load %arg2[%c5, %c0_20] : memref<9x512xf32, #tpu.memory_space<vmem>>, vector<1x512xf32>
    %53 = vector.broadcast %52 : vector<1x512xf32> to vector<16x512xf32>
    %54 = arith.mulf %51, %53 : vector<16x512xf32>
    %55 = arith.addf %46, %54 : vector<16x512xf32>
    %c15_i32 = arith.constant 15 : i32
    %56 = vector.broadcast %c15_i32 : i32 to vector<16x512xi32>
    %57 = arith.cmpi eq, %2, %56 : vector<16x512xi32>
    %c15_i32_21 = arith.constant 15 : i32
    %58 = tpu.dynamic_rotate %1 by %c15_i32_21 dim 0 : vector<16x512xf32>, i32 -> vector<16x512xf32>
    %cst_22 = arith.constant 0.000000e+00 : f32
    %59 = vector.broadcast %cst_22 : f32 to vector<16x512xf32>
    %60 = arith.select %57, %59, %58 : vector<16x512xi1>, vector<16x512xf32>
    %c32_i32_23 = arith.constant 32 : i32
    %61 = vector.broadcast %c32_i32_23 : i32 to vector<16x512xi32>
    %62 = arith.cmpi slt, %3, %61 : vector<16x512xi32>
    %c32_i32_24 = arith.constant 32 : i32
    %63 = tpu.dynamic_rotate %60 by %c32_i32_24 dim 1 : vector<16x512xf32>, i32 -> vector<16x512xf32>
    %cst_25 = arith.constant 0.000000e+00 : f32
    %64 = vector.broadcast %cst_25 : f32 to vector<16x512xf32>
    %65 = arith.select %62, %64, %63 : vector<16x512xi1>, vector<16x512xf32>
    %c6 = arith.constant 6 : index
    %c0_26 = arith.constant 0 : index
    %66 = vector.load %arg2[%c6, %c0_26] : memref<9x512xf32, #tpu.memory_space<vmem>>, vector<1x512xf32>
    %67 = vector.broadcast %66 : vector<1x512xf32> to vector<16x512xf32>
    %68 = arith.mulf %65, %67 : vector<16x512xf32>
    %69 = arith.addf %55, %68 : vector<16x512xf32>
    %c7 = arith.constant 7 : index
    %c0_27 = arith.constant 0 : index
    %70 = vector.load %arg2[%c7, %c0_27] : memref<9x512xf32, #tpu.memory_space<vmem>>, vector<1x512xf32>
    %71 = vector.broadcast %70 : vector<1x512xf32> to vector<16x512xf32>
    %72 = arith.mulf %60, %71 : vector<16x512xf32>
    %73 = arith.addf %69, %72 : vector<16x512xf32>
    %c480_i32_28 = arith.constant 480 : i32
    %74 = vector.broadcast %c480_i32_28 : i32 to vector<16x512xi32>
    %75 = arith.cmpi sge, %3, %74 : vector<16x512xi32>
    %c480_i32_29 = arith.constant 480 : i32
    %76 = tpu.dynamic_rotate %60 by %c480_i32_29 dim 1 : vector<16x512xf32>, i32 -> vector<16x512xf32>
    %cst_30 = arith.constant 0.000000e+00 : f32
    %77 = vector.broadcast %cst_30 : f32 to vector<16x512xf32>
    %78 = arith.select %75, %77, %76 : vector<16x512xi1>, vector<16x512xf32>
    %c8 = arith.constant 8 : index
    %c0_31 = arith.constant 0 : index
    %79 = vector.load %arg2[%c8, %c0_31] : memref<9x512xf32, #tpu.memory_space<vmem>>, vector<1x512xf32>
    %80 = vector.broadcast %79 : vector<1x512xf32> to vector<16x512xf32>
    %81 = arith.mulf %78, %80 : vector<16x512xf32>
    %82 = arith.addf %73, %81 : vector<16x512xf32>
    %c0_32 = arith.constant 0 : index
    %c0_33 = arith.constant 0 : index
    %c0_34 = arith.constant 0 : index
    %83 = vector.load %arg4[%c0_32, %c0_33, %c0_34] : memref<1x16x512xf32, #tpu.memory_space<vmem>>, vector<1x16x512xf32>
    %84 = vector.shape_cast %83 : vector<1x16x512xf32> to vector<16x512xf32>
    %85 = vector.shape_cast %82 : vector<16x512xf32> to vector<1x16x512xf32>
    tpu.vector_store %arg4[%c0_32, %c0_33, %c0_34], %85 {strides = array<i32>} : memref<1x16x512xf32, #tpu.memory_space<vmem>>, vector<1x16x512xf32>,
    return
  }
  func.func @transform_0(%arg0: i32) -> (i32, i32, i32) {
    %c0_i32 = arith.constant 0 : i32
    %c0_i32_0 = arith.constant 0 : i32
    %c0_i32_1 = arith.constant 0 : i32
    return %arg0, %c0_i32, %c0_i32_0 : i32, i32, i32
  }
  func.func @transform_1(%arg0: i32) -> (i32, i32) {
    %c0_i32 = arith.constant 0 : i32
    %c0_i32_0 = arith.constant 0 : i32
    %c0_i32_1 = arith.constant 0 : i32
    return %c0_i32, %c0_i32_0 : i32, i32
  }
  func.func @transform_2(%arg0: i32) -> (i32, i32) {
    %c0_i32 = arith.constant 0 : i32
    %c0_i32_0 = arith.constant 0 : i32
    %c0_i32_1 = arith.constant 0 : i32
    return %c0_i32, %c0_i32_0 : i32, i32
  }
  func.func @transform_3(%arg0: i32) -> (i32, i32, i32) {
    %c0_i32 = arith.constant 0 : i32
    %c0_i32_0 = arith.constant 0 : i32
    %c0_i32_1 = arith.constant 0 : i32
    return %arg0, %c0_i32, %c0_i32_0 : i32, i32, i32
  }
}

module attributes {stable_mosaic.version = 11 : i64} {
  func.func @_fused_attn_mlp_kernel(%arg0: i32, %arg1: memref<1x256x32xf32, #tpu.memory_space<vmem>>, %arg2: memref<10x32xf32, #tpu.memory_space<vmem>>, %arg3: memref<1x32xf32, #tpu.memory_space<vmem>>, %arg4: memref<1x32xf32, #tpu.memory_space<vmem>>, %arg5: memref<32x64xf32, #tpu.memory_space<vmem>>, %arg6: memref<32x32xf32, #tpu.memory_space<vmem>>, %arg7: memref<1x32xf32, #tpu.memory_space<vmem>>, %arg8: memref<1x32xf32, #tpu.memory_space<vmem>>, %arg9: memref<1x32xf32, #tpu.memory_space<vmem>>, %arg10: memref<32x128xf32, #tpu.memory_space<vmem>>, %arg11: memref<1x128xf32, #tpu.memory_space<vmem>>, %arg12: memref<128x32xf32, #tpu.memory_space<vmem>>, %arg13: memref<1x32xf32, #tpu.memory_space<vmem>>, %arg14: memref<1x10x32xf32, #tpu.memory_space<vmem>>) attributes {dimension_semantics = [#tpu.dimension_semantics<parallel>], iteration_bounds = array<i64: 2>, scalar_prefetch = 0 : i64, scratch_operands = 0 : i64, tpu.core_type = #tpu.core_type<tc>, window_params = [{transform_indices = @transform_0, window_bounds = array<i64: 1, 256, 32>}, {pipeline_mode = #tpu.pipeline_mode<synchronous>, transform_indices = @transform_1, window_bounds = array<i64: 10, 32>}, {pipeline_mode = #tpu.pipeline_mode<synchronous>, transform_indices = @transform_2, window_bounds = array<i64: 1, 32>}, {pipeline_mode = #tpu.pipeline_mode<synchronous>, transform_indices = @transform_3, window_bounds = array<i64: 1, 32>}, {pipeline_mode = #tpu.pipeline_mode<synchronous>, transform_indices = @transform_4, window_bounds = array<i64: 32, 64>}, {pipeline_mode = #tpu.pipeline_mode<synchronous>, transform_indices = @transform_5, window_bounds = array<i64: 32, 32>}, {pipeline_mode = #tpu.pipeline_mode<synchronous>, transform_indices = @transform_6, window_bounds = array<i64: 1, 32>}, {pipeline_mode = #tpu.pipeline_mode<synchronous>, transform_indices = @transform_7, window_bounds = array<i64: 1, 32>}, {pipeline_mode = #tpu.pipeline_mode<synchronous>, transform_indices = @transform_8, window_bounds = array<i64: 1, 32>}, {pipeline_mode = #tpu.pipeline_mode<synchronous>, transform_indices = @transform_9, window_bounds = array<i64: 32, 128>}, {pipeline_mode = #tpu.pipeline_mode<synchronous>, transform_indices = @transform_10, window_bounds = array<i64: 1, 128>}, {pipeline_mode = #tpu.pipeline_mode<synchronous>, transform_indices = @transform_11, window_bounds = array<i64: 128, 32>}, {pipeline_mode = #tpu.pipeline_mode<synchronous>, transform_indices = @transform_12, window_bounds = array<i64: 1, 32>}, {transform_indices = @transform_13, window_bounds = array<i64: 1, 10, 32>}]} {
    %c0 = arith.constant 0 : index
    %c0_0 = arith.constant 0 : index
    %c0_1 = arith.constant 0 : index
    %0 = vector.load %arg1[%c0, %c0_0, %c0_1] : memref<1x256x32xf32, #tpu.memory_space<vmem>>, vector<1x256x32xf32>
    %1 = vector.shape_cast %0 : vector<1x256x32xf32> to vector<256x32xf32>
    %cst = arith.constant dense<0.000000e+00> : vector<256xf32>
    %2 = vector.multi_reduction <add>, %1, %cst [1] : vector<256x32xf32> to vector<256xf32>
    %3 = vector.shape_cast %2 : vector<256xf32> to vector<256x1xf32>
    %cst_2 = arith.constant 3.200000e+01 : f32
    %4 = vector.broadcast %cst_2 : f32 to vector<256x1xf32>
    %5 = arith.divf %3, %4 : vector<256x1xf32>
    %6 = vector.broadcast %5 : vector<256x1xf32> to vector<256x32xf32>
    %7 = arith.subf %1, %6 : vector<256x32xf32>
    %8 = arith.mulf %7, %7 : vector<256x32xf32>
    %cst_3 = arith.constant dense<0.000000e+00> : vector<256xf32>
    %9 = vector.multi_reduction <add>, %8, %cst_3 [1] : vector<256x32xf32> to vector<256xf32>
    %10 = vector.shape_cast %9 : vector<256xf32> to vector<256x1xf32>
    %cst_4 = arith.constant 3.200000e+01 : f32
    %11 = vector.broadcast %cst_4 : f32 to vector<256x1xf32>
    %12 = arith.divf %10, %11 : vector<256x1xf32>
    %cst_5 = arith.constant 9.99999974E-6 : f32
    %13 = vector.broadcast %cst_5 : f32 to vector<256x1xf32>
    %14 = arith.addf %12, %13 : vector<256x1xf32>
    %15 = math.rsqrt %14 : vector<256x1xf32>
    %16 = vector.broadcast %15 : vector<256x1xf32> to vector<256x32xf32>
    %17 = arith.mulf %7, %16 : vector<256x32xf32>
    %c0_6 = arith.constant 0 : index
    %c0_7 = arith.constant 0 : index
    %18 = vector.load %arg3[%c0_6, %c0_7] : memref<1x32xf32, #tpu.memory_space<vmem>>, vector<1x32xf32>
    %19 = vector.broadcast %18 : vector<1x32xf32> to vector<256x32xf32>
    %20 = arith.mulf %17, %19 : vector<256x32xf32>
    %c0_8 = arith.constant 0 : index
    %c0_9 = arith.constant 0 : index
    %21 = vector.load %arg4[%c0_8, %c0_9] : memref<1x32xf32, #tpu.memory_space<vmem>>, vector<1x32xf32>
    %22 = vector.broadcast %21 : vector<1x32xf32> to vector<256x32xf32>
    %23 = arith.addf %20, %22 : vector<256x32xf32>
    %c0_10 = arith.constant 0 : index
    %c0_11 = arith.constant 0 : index
    %24 = vector.load %arg5[%c0_10, %c0_11] : memref<32x64xf32, #tpu.memory_space<vmem>>, vector<32x64xf32>
    %cst_12 = arith.constant dense<0.000000e+00> : vector<256x64xf32>
    %25 = tpu.matmul %23, %24, %cst_12 {dimension_numbers = #tpu.dot_dimension_numbers<[1], [0], [0], [1], [0, 0, 1, 1], [], []>} : vector<256x32xf32>, vector<32x64xf32>, vector<256x64xf32> -> vector<256x64xf32>
    %c0_13 = arith.constant 0 : index
    %c0_14 = arith.constant 0 : index
    %26 = vector.load %arg2[%c0_13, %c0_14] : memref<10x32xf32, #tpu.memory_space<vmem>>, vector<10x32xf32>
    %27 = vector.extract_strided_slice %26 {offsets = [0, 0], sizes = [10, 16], strides = [1, 1]} : vector<10x32xf32> to vector<10x16xf32>
    %28 = vector.extract_strided_slice %25 {offsets = [0, 0], sizes = [256, 16], strides = [1, 1]} : vector<256x64xf32> to vector<256x16xf32>
    %29 = vector.extract_strided_slice %25 {offsets = [0, 32], sizes = [256, 16], strides = [1, 1]} : vector<256x64xf32> to vector<256x16xf32>
    %cst_15 = arith.constant dense<0.000000e+00> : vector<10x256xf32>
    %30 = tpu.matmul %27, %28, %cst_15 {dimension_numbers = #tpu.dot_dimension_numbers<[1], [1], [0], [0], [0, 0, 1, 0], [], []>} : vector<10x16xf32>, vector<256x16xf32>, vector<10x256xf32> -> vector<10x256xf32>
    %cst_16 = arith.constant 2.500000e-01 : f32
    %31 = vector.broadcast %cst_16 : f32 to vector<10x256xf32>
    %32 = arith.mulf %30, %31 : vector<10x256xf32>
    %cst_17 = arith.constant dense<0xFF800000> : vector<10xf32>
    %33 = vector.multi_reduction <maximumf>, %32, %cst_17 [1] : vector<10x256xf32> to vector<10xf32>
    %34 = vector.shape_cast %33 : vector<10xf32> to vector<10x1xf32>
    %35 = vector.broadcast %34 : vector<10x1xf32> to vector<10x256xf32>
    %36 = arith.subf %32, %35 : vector<10x256xf32>
    %37 = math.exp %36 : vector<10x256xf32>
    %cst_18 = arith.constant dense<0.000000e+00> : vector<10xf32>
    %38 = vector.multi_reduction <add>, %37, %cst_18 [1] : vector<10x256xf32> to vector<10xf32>
    %39 = vector.shape_cast %38 : vector<10xf32> to vector<10x1xf32>
    %40 = tpu.reciprocal %39 {approx = true} : vector<10x1xf32> -> vector<10x1xf32>
    %41 = vector.broadcast %40 : vector<10x1xf32> to vector<10x256xf32>
    %42 = arith.mulf %37, %41 : vector<10x256xf32>
    %cst_19 = arith.constant dense<0.000000e+00> : vector<10x16xf32>
    %43 = tpu.matmul %42, %29, %cst_19 {dimension_numbers = #tpu.dot_dimension_numbers<[1], [0], [0], [1], [0, 0, 1, 1], [], []>} : vector<10x256xf32>, vector<256x16xf32>, vector<10x16xf32> -> vector<10x16xf32>
    %44 = vector.extract_strided_slice %26 {offsets = [0, 16], sizes = [10, 16], strides = [1, 1]} : vector<10x32xf32> to vector<10x16xf32>
    %45 = vector.extract_strided_slice %25 {offsets = [0, 16], sizes = [256, 16], strides = [1, 1]} : vector<256x64xf32> to vector<256x16xf32>
    %46 = vector.extract_strided_slice %25 {offsets = [0, 48], sizes = [256, 16], strides = [1, 1]} : vector<256x64xf32> to vector<256x16xf32>
    %cst_20 = arith.constant dense<0.000000e+00> : vector<10x256xf32>
    %47 = tpu.matmul %44, %45, %cst_20 {dimension_numbers = #tpu.dot_dimension_numbers<[1], [1], [0], [0], [0, 0, 1, 0], [], []>} : vector<10x16xf32>, vector<256x16xf32>, vector<10x256xf32> -> vector<10x256xf32>
    %cst_21 = arith.constant 2.500000e-01 : f32
    %48 = vector.broadcast %cst_21 : f32 to vector<10x256xf32>
    %49 = arith.mulf %47, %48 : vector<10x256xf32>
    %cst_22 = arith.constant dense<0xFF800000> : vector<10xf32>
    %50 = vector.multi_reduction <maximumf>, %49, %cst_22 [1] : vector<10x256xf32> to vector<10xf32>
    %51 = vector.shape_cast %50 : vector<10xf32> to vector<10x1xf32>
    %52 = vector.broadcast %51 : vector<10x1xf32> to vector<10x256xf32>
    %53 = arith.subf %49, %52 : vector<10x256xf32>
    %54 = math.exp %53 : vector<10x256xf32>
    %cst_23 = arith.constant dense<0.000000e+00> : vector<10xf32>
    %55 = vector.multi_reduction <add>, %54, %cst_23 [1] : vector<10x256xf32> to vector<10xf32>
    %56 = vector.shape_cast %55 : vector<10xf32> to vector<10x1xf32>
    %57 = tpu.reciprocal %56 {approx = true} : vector<10x1xf32> -> vector<10x1xf32>
    %58 = vector.broadcast %57 : vector<10x1xf32> to vector<10x256xf32>
    %59 = arith.mulf %54, %58 : vector<10x256xf32>
    %cst_24 = arith.constant dense<0.000000e+00> : vector<10x16xf32>
    %60 = tpu.matmul %59, %46, %cst_24 {dimension_numbers = #tpu.dot_dimension_numbers<[1], [0], [0], [1], [0, 0, 1, 1], [], []>} : vector<10x256xf32>, vector<256x16xf32>, vector<10x16xf32> -> vector<10x16xf32>
    %61 = tpu.concatenate %43, %60 in 1 : vector<10x16xf32>, vector<10x16xf32> -> vector<10x32xf32>
    %c0_25 = arith.constant 0 : index
    %c0_26 = arith.constant 0 : index
    %62 = vector.load %arg6[%c0_25, %c0_26] : memref<32x32xf32, #tpu.memory_space<vmem>>, vector<32x32xf32>
    %cst_27 = arith.constant dense<0.000000e+00> : vector<10x32xf32>
    %63 = tpu.matmul %61, %62, %cst_27 {dimension_numbers = #tpu.dot_dimension_numbers<[1], [0], [0], [1], [0, 0, 1, 1], [], []>} : vector<10x32xf32>, vector<32x32xf32>, vector<10x32xf32> -> vector<10x32xf32>
    %c0_28 = arith.constant 0 : index
    %c0_29 = arith.constant 0 : index
    %64 = vector.load %arg7[%c0_28, %c0_29] : memref<1x32xf32, #tpu.memory_space<vmem>>, vector<1x32xf32>
    %65 = vector.broadcast %64 : vector<1x32xf32> to vector<10x32xf32>
    %66 = arith.addf %63, %65 : vector<10x32xf32>
    %cst_30 = arith.constant dense<0.000000e+00> : vector<10xf32>
    %67 = vector.multi_reduction <add>, %66, %cst_30 [1] : vector<10x32xf32> to vector<10xf32>
    %68 = vector.shape_cast %67 : vector<10xf32> to vector<10x1xf32>
    %cst_31 = arith.constant 3.200000e+01 : f32
    %69 = vector.broadcast %cst_31 : f32 to vector<10x1xf32>
    %70 = arith.divf %68, %69 : vector<10x1xf32>
    %71 = vector.broadcast %70 : vector<10x1xf32> to vector<10x32xf32>
    %72 = arith.subf %66, %71 : vector<10x32xf32>
    %73 = arith.mulf %72, %72 : vector<10x32xf32>
    %cst_32 = arith.constant dense<0.000000e+00> : vector<10xf32>
    %74 = vector.multi_reduction <add>, %73, %cst_32 [1] : vector<10x32xf32> to vector<10xf32>
    %75 = vector.shape_cast %74 : vector<10xf32> to vector<10x1xf32>
    %cst_33 = arith.constant 3.200000e+01 : f32
    %76 = vector.broadcast %cst_33 : f32 to vector<10x1xf32>
    %77 = arith.divf %75, %76 : vector<10x1xf32>
    %cst_34 = arith.constant 9.99999974E-6 : f32
    %78 = vector.broadcast %cst_34 : f32 to vector<10x1xf32>
    %79 = arith.addf %77, %78 : vector<10x1xf32>
    %80 = math.rsqrt %79 : vector<10x1xf32>
    %81 = vector.broadcast %80 : vector<10x1xf32> to vector<10x32xf32>
    %82 = arith.mulf %72, %81 : vector<10x32xf32>
    %c0_35 = arith.constant 0 : index
    %c0_36 = arith.constant 0 : index
    %83 = vector.load %arg8[%c0_35, %c0_36] : memref<1x32xf32, #tpu.memory_space<vmem>>, vector<1x32xf32>
    %84 = vector.broadcast %83 : vector<1x32xf32> to vector<10x32xf32>
    %85 = arith.mulf %82, %84 : vector<10x32xf32>
    %c0_37 = arith.constant 0 : index
    %c0_38 = arith.constant 0 : index
    %86 = vector.load %arg9[%c0_37, %c0_38] : memref<1x32xf32, #tpu.memory_space<vmem>>, vector<1x32xf32>
    %87 = vector.broadcast %86 : vector<1x32xf32> to vector<10x32xf32>
    %88 = arith.addf %85, %87 : vector<10x32xf32>
    %c0_39 = arith.constant 0 : index
    %c0_40 = arith.constant 0 : index
    %89 = vector.load %arg10[%c0_39, %c0_40] : memref<32x128xf32, #tpu.memory_space<vmem>>, vector<32x128xf32>
    %cst_41 = arith.constant dense<0.000000e+00> : vector<10x128xf32>
    %90 = tpu.matmul %88, %89, %cst_41 {dimension_numbers = #tpu.dot_dimension_numbers<[1], [0], [0], [1], [0, 0, 1, 1], [], []>} : vector<10x32xf32>, vector<32x128xf32>, vector<10x128xf32> -> vector<10x128xf32>
    %c0_42 = arith.constant 0 : index
    %c0_43 = arith.constant 0 : index
    %91 = vector.load %arg11[%c0_42, %c0_43] : memref<1x128xf32, #tpu.memory_space<vmem>>, vector<1x128xf32>
    %92 = vector.broadcast %91 : vector<1x128xf32> to vector<10x128xf32>
    %93 = arith.addf %90, %92 : vector<10x128xf32>
    %cst_44 = arith.constant 5.000000e-01 : f32
    %94 = vector.broadcast %cst_44 : f32 to vector<10x128xf32>
    %95 = arith.mulf %94, %93 : vector<10x128xf32>
    %cst_45 = arith.constant 4.471500e-02 : f32
    %96 = vector.broadcast %cst_45 : f32 to vector<10x128xf32>
    %97 = arith.mulf %96, %93 : vector<10x128xf32>
    %98 = arith.mulf %97, %93 : vector<10x128xf32>
    %99 = arith.mulf %98, %93 : vector<10x128xf32>
    %100 = arith.addf %93, %99 : vector<10x128xf32>
    %cst_46 = arith.constant 0.797884583 : f32
    %101 = vector.broadcast %cst_46 : f32 to vector<10x128xf32>
    %102 = arith.mulf %101, %100 : vector<10x128xf32>
    %103 = math.tanh %102 : vector<10x128xf32>
    %cst_47 = arith.constant 1.000000e+00 : f32
    %104 = vector.broadcast %cst_47 : f32 to vector<10x128xf32>
    %105 = arith.addf %104, %103 : vector<10x128xf32>
    %106 = arith.mulf %95, %105 : vector<10x128xf32>
    %c0_48 = arith.constant 0 : index
    %c0_49 = arith.constant 0 : index
    %107 = vector.load %arg12[%c0_48, %c0_49] : memref<128x32xf32, #tpu.memory_space<vmem>>, vector<128x32xf32>
    %cst_50 = arith.constant dense<0.000000e+00> : vector<10x32xf32>
    %108 = tpu.matmul %106, %107, %cst_50 {dimension_numbers = #tpu.dot_dimension_numbers<[1], [0], [0], [1], [0, 0, 1, 1], [], []>} : vector<10x128xf32>, vector<128x32xf32>, vector<10x32xf32> -> vector<10x32xf32>
    %c0_51 = arith.constant 0 : index
    %c0_52 = arith.constant 0 : index
    %109 = vector.load %arg13[%c0_51, %c0_52] : memref<1x32xf32, #tpu.memory_space<vmem>>, vector<1x32xf32>
    %110 = vector.broadcast %109 : vector<1x32xf32> to vector<10x32xf32>
    %111 = arith.addf %108, %110 : vector<10x32xf32>
    %112 = arith.addf %66, %111 : vector<10x32xf32>
    %c0_53 = arith.constant 0 : index
    %c0_54 = arith.constant 0 : index
    %c0_55 = arith.constant 0 : index
    %113 = vector.load %arg14[%c0_53, %c0_54, %c0_55] : memref<1x10x32xf32, #tpu.memory_space<vmem>>, vector<1x10x32xf32>
    %114 = vector.shape_cast %113 : vector<1x10x32xf32> to vector<10x32xf32>
    %115 = vector.shape_cast %112 : vector<10x32xf32> to vector<1x10x32xf32>
    tpu.vector_store %arg14[%c0_53, %c0_54, %c0_55], %115 {strides = array<i32>} : memref<1x10x32xf32, #tpu.memory_space<vmem>>, vector<1x10x32xf32>,
    return
  }
  func.func @transform_0(%arg0: i32) -> (i32, i32, i32) {
    %c0_i32 = arith.constant 0 : i32
    %c0_i32_0 = arith.constant 0 : i32
    %c0_i32_1 = arith.constant 0 : i32
    return %arg0, %c0_i32, %c0_i32_0 : i32, i32, i32
  }
  func.func @transform_1(%arg0: i32) -> (i32, i32) {
    %c0_i32 = arith.constant 0 : i32
    %c0_i32_0 = arith.constant 0 : i32
    %c0_i32_1 = arith.constant 0 : i32
    return %c0_i32, %c0_i32_0 : i32, i32
  }
  func.func @transform_2(%arg0: i32) -> (i32, i32) {
    %c0_i32 = arith.constant 0 : i32
    %c0_i32_0 = arith.constant 0 : i32
    %c0_i32_1 = arith.constant 0 : i32
    return %c0_i32, %c0_i32_0 : i32, i32
  }
  func.func @transform_3(%arg0: i32) -> (i32, i32) {
    %c0_i32 = arith.constant 0 : i32
    %c0_i32_0 = arith.constant 0 : i32
    %c0_i32_1 = arith.constant 0 : i32
    return %c0_i32, %c0_i32_0 : i32, i32
  }
  func.func @transform_4(%arg0: i32) -> (i32, i32) {
    %c0_i32 = arith.constant 0 : i32
    %c0_i32_0 = arith.constant 0 : i32
    %c0_i32_1 = arith.constant 0 : i32
    return %c0_i32, %c0_i32_0 : i32, i32
  }
  func.func @transform_5(%arg0: i32) -> (i32, i32) {
    %c0_i32 = arith.constant 0 : i32
    %c0_i32_0 = arith.constant 0 : i32
    %c0_i32_1 = arith.constant 0 : i32
    return %c0_i32, %c0_i32_0 : i32, i32
  }
  func.func @transform_6(%arg0: i32) -> (i32, i32) {
    %c0_i32 = arith.constant 0 : i32
    %c0_i32_0 = arith.constant 0 : i32
    %c0_i32_1 = arith.constant 0 : i32
    return %c0_i32, %c0_i32_0 : i32, i32
  }
  func.func @transform_7(%arg0: i32) -> (i32, i32) {
    %c0_i32 = arith.constant 0 : i32
    %c0_i32_0 = arith.constant 0 : i32
    %c0_i32_1 = arith.constant 0 : i32
    return %c0_i32, %c0_i32_0 : i32, i32
  }
  func.func @transform_8(%arg0: i32) -> (i32, i32) {
    %c0_i32 = arith.constant 0 : i32
    %c0_i32_0 = arith.constant 0 : i32
    %c0_i32_1 = arith.constant 0 : i32
    return %c0_i32, %c0_i32_0 : i32, i32
  }
  func.func @transform_9(%arg0: i32) -> (i32, i32) {
    %c0_i32 = arith.constant 0 : i32
    %c0_i32_0 = arith.constant 0 : i32
    %c0_i32_1 = arith.constant 0 : i32
    return %c0_i32, %c0_i32_0 : i32, i32
  }
  func.func @transform_10(%arg0: i32) -> (i32, i32) {
    %c0_i32 = arith.constant 0 : i32
    %c0_i32_0 = arith.constant 0 : i32
    %c0_i32_1 = arith.constant 0 : i32
    return %c0_i32, %c0_i32_0 : i32, i32
  }
  func.func @transform_11(%arg0: i32) -> (i32, i32) {
    %c0_i32 = arith.constant 0 : i32
    %c0_i32_0 = arith.constant 0 : i32
    %c0_i32_1 = arith.constant 0 : i32
    return %c0_i32, %c0_i32_0 : i32, i32
  }
  func.func @transform_12(%arg0: i32) -> (i32, i32) {
    %c0_i32 = arith.constant 0 : i32
    %c0_i32_0 = arith.constant 0 : i32
    %c0_i32_1 = arith.constant 0 : i32
    return %c0_i32, %c0_i32_0 : i32, i32
  }
  func.func @transform_13(%arg0: i32) -> (i32, i32, i32) {
    %c0_i32 = arith.constant 0 : i32
    %c0_i32_0 = arith.constant 0 : i32
    %c0_i32_1 = arith.constant 0 : i32
    return %arg0, %c0_i32, %c0_i32_0 : i32, i32, i32
  }
}

</mosaic_0001>

<bundles_post_ra>
// kernel: tile.12
= control target key start
LH: loop header
LB: loop body
LE: loop exit
PB: predicated region body
PF: predicated region fallthrough
CT: control target
= control target key end

     0   :  { %s34_s6 = smov 3  ;;  %s37_s7 = smov 12  ;;  %vm39_vm0 = vcmask 1043458   ;;  %vm44_vm1 = vcmask 1045508   ;;  %vm49_vm2 = vcmask 1047558   ;;  %vm110_vm3 = vcmask 1042433   ;;  %s847_s0 = inlined_call_operand.vmem [shape: f32[9,16,32], index: 0, kind: input, shape index: {}]   ;;  %s848_s1 = inlined_call_operand.vmem [shape: f32[9,512], index: 1, kind: output, shape index: {}]  }
   0x1   :  { %v390_v0 = vld [vmem:[%s847_s0 + $0x3] ss:$16 sm:%s34_s6]   ;;  %s42_s12 = smov 48  ;;  %s47_s13 = smov 192  ;;  %v406_v10 = vld [vmem:[%s847_s0 + $0x8b] sm:$0x1]  }
   0x2   :  { %v391_v1 = vld [vmem:[%s847_s0 + $0x3] ss:$16 sm:%s37_s7]   ;;  %s81_s18 = smov 3  ;;  %s84_s21 = smov 12  ;;  %vm115_vm4 = vcmask 1044483   ;;  %vm120_vm5 = vcmask 1046533  }
   0x3   :  { %v40_v2 = vsel %vm39_vm0, %v391_v1, %v390_v0  ;;  %v392_v3 = vld [vmem:[%s847_s0 + $0x3] ss:$16 sm:%s42_s12]   ;;  %v400_v6 = vld [vmem:[%s847_s0 + $0x87] ss:$-16 sm:%s81_s18]   ;;  %s89_s22 = smov 48  ;;  %s94_s27 = smov 192 }
   0x4   :  { %v393_v4 = vld [vmem:[%s847_s0 + $0x3] ss:$16 sm:%s47_s13]   ;;  %v45_v5 = vsel %vm44_vm1, %v392_v3, %v40_v2  ;;  %v401_v8 = vld [vmem:[%s847_s0 - $0x15] ss:$16 sm:%s84_s21]   ;;  %s56_s28 = smov 3  ;;  %s474_s2 = smov 96  }
   0x5   :  { %v50_v7 = vsel %vm49_vm2, %v393_v4, %v45_v5  ;;  %v402_v9 = vld [vmem:[%s847_s0 - $0x15] ss:$16 sm:%s89_s22]   ;;  %v87_v11 = vsel %vm39_vm0, %v401_v8, %v400_v6  ;;  %s59_s5 = smov 12  ;;  %s64_s6 = smov 48  ;;  %v410_v22 = vld [vmem:[%s847_s0 + $0x48] sm:$0x80]  }
   0x6   :  { %51 = vrot.lane.b32.xlu0 %v50_v7, %s474_s2  ;;  %v403_v12 = vld [vmem:[%s847_s0 - $0x15] ss:$16 sm:%s94_s27]   ;;  %v92_v13 = vsel %vm44_vm1, %v402_v9, %v87_v11  ;;  %s69_s11 = smov 192  ;;  %s108_s12 = smov 6  ;;  %vm124_vm6 = vcmask 1047559   ;;  %vm3_vm7 = vcmask 261120  }
   0x7   :  { %v394_v14 = vld [vmem:[%s847_s0 + $0x83] ss:$-124 sm:%s56_s28]   ;;  %v97_v16 = vsel %vm49_vm2, %v403_v12, %v92_v13  ;;  %s113_s17 = smov 24  ;;  %s118_s18 = smov 96  ;;  %v433_v48 = vld [vmem:[%s847_s0 + $0x8a] sm:$0x1]  }
   0x8   :  { %v395_v15 = vld [vmem:[%s847_s0 - $0x9] ss:$16 sm:%s59_s5]   ;;  %98 = vrot.lane.b32.xlu1 %v97_v16, %s474_s2  ;;  %s134_s23 = smov 3  ;;  %s137_s28 = smov 12  ;;  %v437_v53 = vld [vmem:[%s847_s0 + $0x47] sm:$0x80]  }
   0x9   :  { %v62_v17 = vsel %vm39_vm0, %v395_v15, %v394_v14  ;;  %v396_v18 = vld [vmem:[%s847_s0 - $0x9] ss:$16 sm:%s64_s6]   ;;  %v407_v21 = vld [vmem:[%s847_s0 + $0x5b] ss:$16 sm:%s108_s12]   ;;  %s149_s29 = smov 3  ;;  %s152_s4 = smov 12 }
   0xa   :  { %v397_v19 = vld [vmem:[%s847_s0 - $0x9] ss:$16 sm:%s69_s11]   ;;  %v67_v20 = vsel %vm44_vm1, %v396_v18, %v62_v17  ;;  %v111_v24 = vsel %vm110_vm3, %v407_v21, %v406_v10  ;;  %v408_v25 = vld [vmem:[%s847_s0 - $0x21] ss:$16 sm:%s113_s17]   ;;  %s157_s5 = smov 48  ;;  %s162_s10 = smov 192 }
   0xb   :  { %v72_v23 = vsel %vm49_vm2, %v397_v19, %v67_v20  ;;  %v409_v26 = vld [vmem:[%s847_s0 - $0x21] ss:$16 sm:%s118_s18]   ;;  %v116_v27 = vsel %vm115_vm4, %v408_v25, %v111_v24  ;;  %v417_v31 = vld [vmem:[%s847_s0 + $0x2] ss:$16 sm:%s149_s29]   ;;  %s171_s15 = smov 3  ;;  %s174_s16 = smov 12 }
   0xc   :  { %73 = vrot.lane.b32.xlu0 %v72_v23, %s474_s2  ;;  %v413_v28 = vld [vmem:[%s847_s0 + $0x8f] ss:$-48 sm:%s134_s23]   ;;  %v121_v29 = vsel %vm120_vm5, %v409_v26, %v116_v27  ;;  %s179_s19 = smov 48  ;;  %s184_s20 = smov 192  ;;  %v385_v62 = vld [vmem:[%s847_s0 + $0x60] ss:$4 sm:$0xff]  }
   0xd   :  { %v414_v30 = vld [vmem:[%s847_s0 + $0x4f] ss:$16 sm:%s137_s28]   ;;  %v125_v32 = vsel %vm124_vm6, %v410_v22, %v121_v29  ;;  %v418_v34 = vld [vmem:[%s847_s0 + $0x2] ss:$16 sm:%s152_s4]   ;;  %s196_s22 = smov 3  ;;  %s199_s23 = smov 12 }
   0xe   :  { %v140_v33 = vsel %vm39_vm0, %v414_v30, %v413_v28  ;;  %v419_v35 = vld [vmem:[%s847_s0 + $0x2] ss:$16 sm:%s157_s5]   ;;  %126 = vrot.lane.b32.xlu1 %v125_v32, %s474_s2  ;;  %v155_v36 = vsel %vm39_vm0, %v418_v34, %v417_v31  ;;  %s204_s28 = smov 48  ;;  %s209_s29 = smov 192  ;;  %v2_v8 = vld [vmem:[%s847_s0] ss:$4 sm:$0xff]  }
   0xf   :  { %v420_v37 = vld [vmem:[%s847_s0 + $0x2] ss:$16 sm:%s162_s10]   ;;  %v160_v38 = vsel %vm44_vm1, %v419_v35, %v155_v36  ;;  %v422_v41 = vld [vmem:[%s847_s0 - $0xa] ss:$16 sm:%s174_s16]   ;;  %s223_s6 = smov 6  ;;  %s475_s7 = smov 64  }
  0x10   :  { %141 = vrot.lane.b32.xlu0 %v140_v33, %s474_s2  ;;  %v421_v39 = vld [vmem:[%s847_s0 + $0x82] ss:$-124 sm:%s171_s15]   ;;  %v165_v40 = vsel %vm49_vm2, %v420_v37, %v160_v38  ;;  %s228_s12 = smov 24  ;;  %s233_s13 = smov 96  ;;  %v382_v11 = vld [vmem:[%s847_s0 + $0x40] ss:$4 sm:$0xff]  }
  0x11   :  { %v423_v42 = vld [vmem:[%s847_s0 - $0xa] ss:$16 sm:%s179_s19]   ;;  %v177_v43 = vsel %vm39_vm0, %v422_v41, %v421_v39  ;;  %v428_v47 = vld [vmem:[%s847_s0 - $0x16] ss:$16 sm:%s199_s23]   ;;  %s264_s23 = smov 3  ;;  %s277_s4 = smov 192 }
  0x12   :  { %v424_v44 = vld [vmem:[%s847_s0 - $0xa] ss:$16 sm:%s184_s20]   ;;  %166 = vrot.lane.b32.xlu1 %v165_v40, %s475_s7  ;;  %v182_v46 = vsel %vm44_vm1, %v423_v42, %v177_v43  ;;  %s249_s20 = smov 3  ;;  %387 = vst.msk [vmem:[%s848_s1 - $0x19] ss:$8 sm:$0xf0] %vm3_vm7, %v385_v62  }
  0x13   :  { %v427_v45 = vld [vmem:[%s847_s0 + $0x86] ss:$-16 sm:%s196_s22]   ;;  %v187_v49 = vsel %vm49_vm2, %v424_v44, %v182_v46  ;;  %v429_v51 = vld [vmem:[%s847_s0 - $0x16] ss:$16 sm:%s204_s28]   ;;  %s252_s22 = smov 12  ;;  %s267_s28 = smov 12 }
  0x14   :  { %v202_v50 = vsel %vm39_vm0, %v428_v47, %v427_v45  ;;  %v430_v52 = vld [vmem:[%s847_s0 - $0x16] ss:$16 sm:%s209_s29]   ;;  %188 = vrot.lane.b32.xlu0 %v187_v49, %s475_s7  ;;  %s272_s29 = smov 48  ;;  %386 = vst.msk [vmem:[%s848_s1 + $0x6] ss:$8 sm:$0xf] %vm3_vm7, %v385_v62  }
  0x15   :  { %v207_v54 = vsel %vm44_vm1, %v429_v51, %v202_v50  ;;  %v434_v55 = vld [vmem:[%s847_s0 + $0x5a] ss:$16 sm:%s223_s6]   ;;  %v435_v58 = vld [vmem:[%s847_s0 - $0x22] ss:$16 sm:%s228_s12]   ;;  %s286_s12 = smov 3  ;;  %s289_s2 = smov 12 }
  0x16   :  { %v212_v56 = vsel %vm49_vm2, %v430_v52, %v207_v54  ;;  %v226_v57 = vsel %vm110_vm3, %v434_v55, %v433_v48  ;;  %v436_v59 = vld [vmem:[%s847_s0 - $0x22] ss:$16 sm:%s233_s13]   ;;  %v444_v1 = vld [vmem:[%s847_s0 + $0x1] ss:$16 sm:%s264_s23]   ;;  %s294_s21 = smov 48  ;;  %s299_s24 = smov 192 }
  0x17   :  { %213 = vrot.lane.b32.xlu1 %v212_v56, %s475_s7  ;;  %v231_v60 = vsel %vm115_vm4, %v435_v58, %v226_v57  ;;  %v440_v61 = vld [vmem:[%s847_s0 + $0x8e] ss:$-48 sm:%s249_s20]   ;;  %s311_s25 = smov 3  ;;  %4 = vst.msk [vmem:[%s848_s1] ss:$8 sm:$0xf] %vm3_vm7, %v2_v8  }
  0x18   :  { %v236_v63 = vsel %vm120_vm5, %v436_v59, %v231_v60  ;;  %v441_v0 = vld [vmem:[%s847_s0 + $0x4e] ss:$16 sm:%s252_s22]   ;;  %v445_v4 = vld [vmem:[%s847_s0 + $0x1] ss:$16 sm:%s267_s28]   ;;  %s319_s13 = smov 48  ;;  %s324_s14 = smov 192 }
  0x19   :  { %v240_v2 = vsel %vm124_vm6, %v437_v53, %v236_v63  ;;  %v255_v3 = vsel %vm39_vm0, %v441_v0, %v440_v61  ;;  %v446_v5 = vld [vmem:[%s847_s0 + $0x1] ss:$16 sm:%s272_s29]   ;;  %v270_v6 = vsel %vm39_vm0, %v445_v4, %v444_v1  ;;  %s314_s29 = smov 12  ;;  %378 = vst.msk [vmem:[%s848_s1 - $0x1f] ss:$8 sm:$0xf0] %vm3_vm7, %v2_v8  }
  0x1a   :  { %241 = vrot.lane.b32.xlu0 %v240_v2, %s475_s7  ;;  %v447_v7 = vld [vmem:[%s847_s0 + $0x1] ss:$16 sm:%s277_s4]   ;;  %v275_v9 = vsel %vm44_vm1, %v446_v5, %v270_v6  ;;  %v460_v15 = vld [vmem:[%s847_s0 + $0x89] sm:$0x1]   ;;  %s476_s26 = smov 32   ;;  %s348_s28 = smov 96 }
  0x1b   :  { %256 = vrot.lane.b32.xlu1 %v255_v3, %s475_s7  ;;  %v448_v10 = vld [vmem:[%s847_s0 + $0x81] ss:$-124 sm:%s286_s12]   ;;  %v280_v12 = vsel %vm49_vm2, %v447_v7, %v275_v9  ;;  %383 = vst.msk [vmem:[%s848_s1 + $0x4] ss:$8 sm:$0xf] %vm3_vm7, %v382_v11   ;;  %s364_s10 = smov 3 }
  0x1c   :  { %v449_v13 = vld [vmem:[%s847_s0 - $0xb] ss:$16 sm:%s289_s2]   ;;  %384 = vst.msk [vmem:[%s848_s1 - $0x1b] ss:$8 sm:$0xf0] %vm3_vm7, %v382_v11   ;;  %s367_s15 = smov 12 }
  0x1d   :  { %v450_v14 = vld [vmem:[%s847_s0 - $0xb] ss:$16 sm:%s294_s21]   ;;  %v292_v16 = vsel %vm39_vm0, %v449_v13, %v448_v10  ;;  %v455_v20 = vld [vmem:[%s847_s0 - $0x17] ss:$16 sm:%s314_s29]   ;;  %vm53_vm8 = vcmask 1048320   ;;  %vm168_vm9 = vcmask 785920  }
  0x1e   :  { %v451_v17 = vld [vmem:[%s847_s0 - $0xb] ss:$16 sm:%s299_s24]   ;;  %s338_s24 = smov 6  ;;  %281 = vrot.lane.b32.xlu0 %v280_v12, %s476_s26  ;;  %v297_v19 = vsel %vm44_vm1, %v450_v14, %v292_v16  ;;  %v388_v21 = vld [vmem:[%s847_s0 + $0x80] ss:$4 sm:$0xf]  }
  0x1f   :  { %v454_v18 = vld [vmem:[%s847_s0 + $0x85] ss:$-16 sm:%s311_s25]   ;;  %s343_s25 = smov 24  ;;  %v302_v22 = vsel %vm49_vm2, %v451_v17, %v297_v19  ;;  %v456_v24 = vld [vmem:[%s847_s0 - $0x17] ss:$16 sm:%s319_s13]   ;;  %vm283_vm10 = vcmask 523520  }
  0x20   :  { %v317_v23 = vsel %vm39_vm0, %v455_v20, %v454_v18  ;;  %v457_v25 = vld [vmem:[%s847_s0 - $0x17] ss:$16 sm:%s324_s14]   ;;  %v464_v26 = vld [vmem:[%s847_s0 + $0x46] sm:$0x80]   ;;  %303 = vrot.lane.b32.xlu1 %v302_v22, %s476_s26 }
  0x21   :  { %389 = vst.msk [vmem:[%s848_s1 + $0x20] ss:$8 sm:$0xf] %vm3_vm7, %v388_v21   ;;  %v322_v27 = vsel %vm44_vm1, %v456_v24, %v317_v23  ;;  %v461_v28 = vld [vmem:[%s847_s0 + $0x59] ss:$16 sm:%s338_s24]  }
  0x22   :  { %v379_v29 = vld [vmem:[%s847_s0 + $0x20] ss:$4 sm:$0xff]   ;;  %v327_v30 = vsel %vm49_vm2, %v457_v25, %v322_v27  ;;  %v341_v31 = vsel %vm110_vm3, %v461_v28, %v460_v15  ;;  %v462_v32 = vld [vmem:[%s847_s0 - $0x23] ss:$16 sm:%s343_s25]  }
  0x23   :  { %v463_v33 = vld [vmem:[%s847_s0 - $0x23] ss:$16 sm:%s348_s28]   ;;  %380 = vst.msk [vmem:[%s848_s1 + $0x2] ss:$8 sm:$0xf] %vm3_vm7, %v379_v29   ;;  %328 = vrot.lane.b32.xlu0 %v327_v30, %s476_s26  ;;  %v346_v34 = vsel %vm115_vm4, %v462_v32, %v341_v31 }
  0x24   :  { %381 = vst.msk [vmem:[%s848_s1 - $0x1d] ss:$8 sm:$0xf0] %vm3_vm7, %v379_v29   ;;  %v467_v35 = vld [vmem:[%s847_s0 + $0x8d] ss:$-48 sm:%s364_s10]   ;;  %v351_v36 = vsel %vm120_vm5, %v463_v33, %v346_v34 }
  0x25   :  { %v468_v37 = vld [vmem:[%s847_s0 + $0x4d] ss:$16 sm:%s367_s15]   ;;  %v355_v38 = vsel %vm124_vm6, %v464_v26, %v351_v36 }
  0x26   :  { %v370_v39 = vsel %vm39_vm0, %v468_v37, %v467_v35  ;;  %356 = vrot.lane.b32.xlu1 %v355_v38, %s476_s26 }
  0x27   :  { %371 = vrot.lane.b32.xlu0 %v370_v39, %s476_s26 }
  0x78   :  { %v52_v40 = vpop.permute.xlu0 %51  }
  0x79   :  { %54 = vst.msk [vmem:[%s848_s1] sm:$0xff] %vm53_vm8, %v52_v40  }
  0x7a   :  { %v99_v41 = vpop.permute.xlu1 %98  }
  0x7b   :  { %404 = vst.msk [vmem:[%s848_s1 + $0x28] ss:$-25 sm:$0x3] %vm53_vm8, %v99_v41   ;;  %405 = vst.msk [vmem:[%s848_s1 + $0xe] sm:$0xfc] %vm53_vm8, %v99_v41  }
  0x7e   :  { %v74_v42 = vpop.permute.xlu0 %73  }
  0x7f   :  { %398 = vst.msk [vmem:[%s848_s1 + $0x20] ss:$-24 sm:$0x3] %vm53_vm8, %v74_v42   ;;  %399 = vst.msk [vmem:[%s848_s1 + $0x7] sm:$0xfc] %vm53_vm8, %v74_v42  }
  0x80   :  { %v127_v43 = vpop.permute.xlu1 %126  }
  0x81   :  { %411 = vst.msk [vmem:[%s848_s1 + $0x30] ss:$-26 sm:$0x3] %vm53_vm8, %v127_v43   ;;  %412 = vst.msk [vmem:[%s848_s1 + $0x15] sm:$0xfc] %vm53_vm8, %v127_v43  }
  0x82   :  { %v142_v44 = vpop.permute.xlu0 %141  }
  0x83   :  { %415 = vst.msk [vmem:[%s848_s1 + $0x38] ss:$-27 sm:$0x3] %vm53_vm8, %v142_v44   ;;  %416 = vst.msk [vmem:[%s848_s1 + $0x1c] sm:$0xc] %vm53_vm8, %v142_v44  }
  0x84   :  { %v167_v45 = vpop.permute.xlu1 %166  }
  0x85   :  { %169 = vst.msk [vmem:[%s848_s1] sm:$0xff] %vm168_vm9, %v167_v45  }
  0x86   :  { %v189_v46 = vpop.permute.xlu0 %188  }
  0x87   :  { %425 = vst.msk [vmem:[%s848_s1 + $0x20] ss:$-24 sm:$0x3] %vm168_vm9, %v189_v46   ;;  %426 = vst.msk [vmem:[%s848_s1 + $0x7] sm:$0xfc] %vm168_vm9, %v189_v46  }
  0x89   :  { %v214_v47 = vpop.permute.xlu1 %213  }
  0x8a   :  { %431 = vst.msk [vmem:[%s848_s1 + $0x28] ss:$-25 sm:$0x3] %vm168_vm9, %v214_v47   ;;  %432 = vst.msk [vmem:[%s848_s1 + $0xe] sm:$0xfc] %vm168_vm9, %v214_v47  }
  0x8c   :  { %v242_v48 = vpop.permute.xlu0 %241  }
  0x8d   :  { %438 = vst.msk [vmem:[%s848_s1 + $0x30] ss:$-26 sm:$0x3] %vm168_vm9, %v242_v48   ;;  %439 = vst.msk [vmem:[%s848_s1 + $0x15] sm:$0xfc] %vm168_vm9, %v242_v48   ;;  %v257_v49 = vpop.permute.xlu1 %256  }
  0x8e   :  { %442 = vst.msk [vmem:[%s848_s1 + $0x38] ss:$-27 sm:$0x3] %vm168_vm9, %v257_v49   ;;  %443 = vst.msk [vmem:[%s848_s1 + $0x1c] sm:$0xc] %vm168_vm9, %v257_v49  }
  0x90   :  { %v282_v50 = vpop.permute.xlu0 %281  }
  0x91   :  { %284 = vst.msk [vmem:[%s848_s1] sm:$0xff] %vm283_vm10, %v282_v50  }
  0x92   :  { %v304_v51 = vpop.permute.xlu1 %303  }
  0x93   :  { %452 = vst.msk [vmem:[%s848_s1 + $0x20] ss:$-24 sm:$0x3] %vm283_vm10, %v304_v51   ;;  %453 = vst.msk [vmem:[%s848_s1 + $0x7] sm:$0xfc] %vm283_vm10, %v304_v51  }
  0x95   :  { %v329_v52 = vpop.permute.xlu0 %328  }
  0x96   :  { %458 = vst.msk [vmem:[%s848_s1 + $0x28] ss:$-25 sm:$0x3] %vm283_vm10, %v329_v52   ;;  %459 = vst.msk [vmem:[%s848_s1 + $0xe] sm:$0xfc] %vm283_vm10, %v329_v52  }
  0x98   :  { %v357_v53 = vpop.permute.xlu1 %356  }
  0x99   :  { %465 = vst.msk [vmem:[%s848_s1 + $0x30] ss:$-26 sm:$0x3] %vm283_vm10, %v357_v53   ;;  %466 = vst.msk [vmem:[%s848_s1 + $0x15] sm:$0xfc] %vm283_vm10, %v357_v53   ;;  %v372_v54 = vpop.permute.xlu0 %371  }
  0x9a   :  { %469 = vst.msk [vmem:[%s848_s1 + $0x38] ss:$-27 sm:$0x3] %vm283_vm10, %v372_v54   ;;  %470 = vst.msk [vmem:[%s848_s1 + $0x1c] sm:$0xc] %vm283_vm10, %v372_v54  }

// kernel: tile.16
= control target key start
LH: loop header
LB: loop body
LE: loop exit
PB: predicated region body
PF: predicated region fallthrough
CT: control target
= control target key end

     0   :  { %s28_s0 = inlined_call_operand.vmem [shape: f32[32], index: 0, kind: input, shape index: {}]   ;;  %s29_s1 = inlined_call_operand.vmem [shape: f32[16,32], index: 1, kind: output, shape index: {}]  }
   0x1   :  { %v4_v0 = vld [vmem:[%s28_s0] ss:$0 sm:$0xff] }
   0x2   :  { %5 = vst [vmem:[%s29_s1] sm:$0xff] %v4_v0  ;;  %8 = vst [vmem:[%s29_s1 + $0x8] sm:$0xff] %v4_v0 }

// kernel: tile.17
= control target key start
LH: loop header
LB: loop body
LE: loop exit
PB: predicated region body
PF: predicated region fallthrough
CT: control target
= control target key end

     0   :  { %s62_s8 = smov 96   ;;  %vm3_vm0 = vcmask 261120   ;;  %s64_s15 = smov 64   ;;  %vm9_vm1 = vcmask 1048320   ;;  %vm15_vm2 = vcmask 785920   ;;  %vm21_vm3 = vcmask 523520   ;;  %s99_s0 = inlined_call_operand.vmem [shape: f32[16,32], index: 0, kind: input, shape index: {}]   ;;  %s100_s1 = inlined_call_operand.vmem [shape: f32[1,512], index: 1, kind: output, shape index: {}]  }
   0x1   :  { %v53_v0 = vld [vmem:[%s99_s0 + $0x3] ss:$4 sm:$0xf]   ;;  %v54_v1 = vld [vmem:[%s99_s0 + $0x2] ss:$4 sm:$0xf]  }
   0x2   :  { %7 = vrot.lane.b32.xlu0 %v53_v0, %s62_s8  ;;  %v55_v2 = vld [vmem:[%s99_s0 + $0x1] ss:$4 sm:$0xf]   ;;  %v2_v3 = vld [vmem:[%s99_s0] ss:$4 sm:$0xf]  }
   0x3   :  { %s63_s0 = smov 32   ;;  %4 = vst.msk [vmem:[#allocation0] ss:$8 sm:$0xf] %vm3_vm0, %v2_v3  }
   0x4   :  { %19 = vrot.lane.b32.xlu1 %v55_v2, %s63_s0 }
   0x6   :  { %13 = vrot.lane.b32.xlu0 %v54_v1, %s64_s15 }
  0x74   :  { %v8_v4 = vpop.permute.xlu0 %7  }
  0x75   :  { %10 = vst.msk [vmem:[#allocation0] ss:$8 sm:$0xf] %vm9_vm1, %v8_v4  }
  0x76   :  { %v20_v5 = vpop.permute.xlu1 %19  }
  0x78   :  { %v14_v6 = vpop.permute.xlu0 %13  }
  0x79   :  { %16 = vst.msk [vmem:[#allocation0] ss:$8 sm:$0xf] %vm15_vm2, %v14_v6  }
  0x7a   :  { %22 = vst.msk [vmem:[#allocation0] ss:$8 sm:$0xf] %vm21_vm3, %v20_v5  }
  0x81   :  { %v27_v7 = vld [vmem:[#allocation0] sm:$0x1]  ;;  %v32_v8 = vld [vmem:[#allocation0 + $0x8] sm:$0x1]  ;;  %v38_v9 = vld [vmem:[#allocation0 + $0x10] sm:$0x1] }
  0x82   :  { %30 = vst [vmem:[%s100_s1] sm:$0x1] %v27_v7  ;;  %56 = vst [vmem:[%s100_s1 + $0x1] sm:$0x1] %v32_v8  ;;  %v45_v10 = vld [vmem:[#allocation0 + $0x18] sm:$0x1] }
  0x83   :  { %57 = vst [vmem:[%s100_s1 + $0x2] sm:$0x1] %v38_v9  ;;  %58 = vst [vmem:[%s100_s1 + $0x3] sm:$0x1] %v45_v10 }

// kernel: query_sablock_forward.2
= control target key start
LH: loop header
LB: loop body
LE: loop exit
PB: predicated region body
PF: predicated region fallthrough
CT: control target
= control target key end

     0   :  { %s946_s12 = smov 0   ;;  %s1490_s0 = inlined_call_operand.vmem [shape: f32[2,16,512], index: 0, kind: input, shape index: {}]   ;;  %s1491_s1 = inlined_call_operand.vmem [shape: f32[9,512], index: 1, kind: input, shape index: {}]   ;;  %s1492_s2 = inlined_call_operand.vmem [shape: f32[1,512], index: 2, kind: input, shape index: {}]   ;;  %s1493_s3 = inlined_call_operand.vmem [shape: f32[2,16,512], index: 3, kind: output, shape index: {}]  }
   0x1 LB: > { %s885_s13 = sadd.s32 4294967295, %s922_s12   ;;  %p889_p0 = scmp.ge.s32.totalorder %s922_s12, 1  ;;  %s922_s12 = sphi %s946_s12, %s13_s12  }
   0x2   : > { %p137_p1 = scmp.lt.s32.totalorder %s922_s12, 3 }
   0x4   : > { %p138_p2 = pnand %p889_p0, %p137_p1 }
   0x5   : > { %p161_p3 = scmp.lt.s32.totalorder (!%p138_p2), %s885_s13, 1  ;;  %s924_s20 = smov (!%p138_p2), 32  }
   0x6   : > { %141 = sbr.rel (%p138_p2) target bundleno = 234 (0xea), region = 32  ;;  %s925_s23 = smov (!%p138_p2), 96  }
   0xb   : > { %v179_v0 = vlaneseq  ;;  %s1495_s13 = smov (!%p161_p3, %s885_s13), 1  ;;  %v894_v2 = vld [vmem:[%s1491_s1 + $0x1] ss:$8 sm:$0xf] }
   0xc   : > { %s904_s16 = sshll.u32 %s1495_s13, 6  ;;  %v187_v50 = vld [vmem:[%s1492_s2] sm:$0xf] }
   0xd   : > { %v957_v1 = vshrl.u32 %v179_v0, 7  ;;  %s165_s19 = scalar_lea.vmem %s1490_s0, %s904_s16  ;;  %s1463_s18 = scalar_lea.vmem %s1493_s3, %s904_s16 }
   0xe   : > { %v975_v5 = vld [vmem:[%s165_s19 + $0x8] sm:$0xff]  ;;  %v980_v8 = vld [vmem:[%s165_s19] sm:$0xff]  ;;  %v995_v16 = vld [vmem:[%s165_s19 + $0x10] sm:$0xff] }
   0xf   : > { %v964_v3 = vsub.s32 1, %v957_v1  ;;  %vm227_vm0 = vcmp.lt.s32.totalorder %v957_v1, 1  ;;  %v973_v4 = vsub.s32 0, %v957_v1  ;;  %v977_v6 = vld [vmem:[%s165_s19 + $0x28] sm:$0xff]  ;;  %v983_v9 = vsub.s32 2, %v957_v1  ;;  %v991_v13 = vld [vmem:[%s165_s19 + $0x20] sm:$0xff] }
  0x10   : > { %vm217_vm1 = vcmp.eq.s32.totalorder %v957_v1, 0  ;;  %v987_v10 = vsub.s32 3, %v957_v1  ;;  %v220_v11 = vrot.slane %v975_v5, 7  ;;  %v224_v12 = vrot.slane %v977_v6, 7  ;;  %v997_v17 = vld [vmem:[%s165_s19 + $0x30] sm:$0xff]  ;;  %v1003_v22 = vld [vmem:[%s165_s19 + $0x18] sm:$0xff] }
  0x11   : > { %v328_v7 = vrot.slane %v894_v2, %v964_v3  ;;  %v219_v14 = vrot.slane %v980_v8, 7  ;;  %v324_v15 = vrot.slane %v894_v2, %v973_v4  ;;  %v223_v18 = vrot.slane %v991_v13, 7  ;;  %v1005_v23 = vld [vmem:[%s165_s19 + $0x38] sm:$0xff] }
  0x12   : > { %v221_v19 = vrot.slane %v995_v16, 7  ;;  %v225_v20 = vrot.slane %v997_v17, 7  ;;  %v332_v21 = vrot.slane %v894_v2, %v983_v9  ;;  %v229_v24 = vsel %vm227_vm0, %v220_v11, %v224_v12 }
  0x13   : > { %v233_v25 = vsel %vm227_vm0, %v224_v12, %v220_v11  ;;  %v222_v26 = vrot.slane %v1003_v22, 7  ;;  %v226_v27 = vrot.slane %v1005_v23, 7  ;;  %254 = vrot.lane.b32.xlu1 %v229_v24, %s924_s20  ;;  %v1014_v28 = vmul.f32 %v328_v7, %v229_v24 }
  0x14   : > { %v228_v29 = vsel %vm227_vm0, %v219_v14, %v223_v18  ;;  %v230_v30 = vsel %vm227_vm0, %v221_v19, %v225_v20  ;;  %v232_v31 = vsel %vm227_vm0, %v223_v18, %v219_v14  ;;  %v237_v35 = vsel %vm217_vm1, 0.0, %v233_v25  ;;  %v897_v14 = vld [vmem:[%s1491_s1 + $0x4] ss:$8 sm:$0xf] }
  0x15   : > { %250 = vrot.lane.b32.xlu0 %v228_v29, %s924_s20  ;;  %v1023_v32 = vmul.f32 %v324_v15, %v228_v29  ;;  %v1025_v33 = vmul.f32 %v332_v21, %v230_v30  ;;  %v236_v34 = vsel %vm217_vm1, 0.0, %v232_v31  ;;  %v1033_v37 = vmul.f32 %v328_v7, %v237_v35 }
  0x16   : > { %v1031_v36 = vmul.f32 %v324_v15, %v236_v34  ;;  %v234_v38 = vsel %vm227_vm0, %v225_v20, %v221_v19  ;;  %v336_v40 = vrot.slane %v894_v2, %v987_v10  ;;  %v235_v41 = vsel %vm227_vm0, %v226_v27, %v222_v26 }
  0x17   : > { %v238_v39 = vsel %vm217_vm1, 0.0, %v234_v38  ;;  %258 = vrot.lane.b32.xlu1 %v230_v30, %s924_s20  ;;  %v231_v43 = vsel %vm227_vm0, %v222_v26, %v226_v27  ;;  %v239_v44 = vsel %vm217_vm1, 0.0, %v235_v41  ;;  %v617_v47 = vrot.slane %v975_v5, 1 }
  0x18   : > { %v1043_v42 = vmul.f32 %v332_v21, %v238_v39  ;;  %v1050_v45 = vmul.f32 %v336_v40, %v231_v43  ;;  %v1052_v46 = vmul.f32 %v336_v40, %v239_v44  ;;  %v621_v48 = vrot.slane %v977_v6, 1 }
  0x19   : > { %248 = vrot.lane.b32.xlu0 %v236_v34, %s924_s20  ;;  %vm624_vm2 = vcmp.lt.s32.totalorder %v957_v1, 7  ;;  %v618_v49 = vrot.slane %v995_v16, 1  ;;  %v622_v53 = vrot.slane %v997_v17, 1  ;;  %v196_v54 = vrot.slane %v187_v50, %v964_v3 }
  0x1a   : > { %v1065_v51 = vsel %vm624_vm2, %v621_v48, %v617_v47  ;;  %v1069_v52 = vsel %vm624_vm2, %v617_v47, %v621_v48  ;;  %v200_v57 = vrot.slane %v187_v50, %v983_v9  ;;  %v192_v62 = vrot.slane %v187_v50, %v973_v4 }
  0x1b   : > { %252 = vrot.lane.b32.xlu1 %v237_v35, %s924_s20  ;;  %v1076_v55 = vsel %vm624_vm2, %v622_v53, %v618_v49  ;;  %v1080_v56 = vsel %vm624_vm2, %v618_v49, %v622_v53  ;;  %v1085_v58 = vadd.f32 %v196_v54, %v977_v6  ;;  %v1088_v59 = vadd.f32 %v196_v54, %v975_v5 }
  0x1c   : > { %v1091_v60 = vadd.f32 %v200_v57, %v997_v17  ;;  %v1094_v61 = vadd.f32 %v200_v57, %v995_v16  ;;  %v204_v63 = vrot.slane %v187_v50, %v987_v10  ;;  %v1100_v2 = vadd.f32 %v192_v62, %v991_v13 }
  0x1d   : > { %256 = vrot.lane.b32.xlu0 %v238_v39, %s924_s20  ;;  %v1103_v7 = vadd.f32 %v192_v62, %v980_v8  ;;  %v510_v15 = vrot.slane %v897_v14, %v973_v4  ;;  %v514_v20 = vrot.slane %v897_v14, %v964_v3  ;;  %v522_v21 = vrot.slane %v897_v14, %v987_v10 }
  0x1e   : > { %v1107_v11 = vadd.f32 %v204_v63, %v1005_v23  ;;  %v1110_v12 = vadd.f32 %v204_v63, %v1003_v22  ;;  %v518_v27 = vrot.slane %v897_v14, %v983_v9  ;;  %v620_v38 = vrot.slane %v991_v13, 1 }
  0x1f   : > { %262 = vrot.lane.b32.xlu1 %v231_v43, %s924_s20  ;;  %v1123_v18 = vmul.f32 %v510_v15, %v991_v13  ;;  %v1126_v19 = vmul.f32 %v510_v15, %v980_v8  ;;  %v1136_v25 = vmul.f32 %v514_v20, %v975_v5  ;;  %v1141_v26 = vmul.f32 %v522_v21, %v1005_v23 }
  0x20   : > { %v1153_v31 = vmul.f32 %v518_v27, %v995_v16  ;;  %v619_v40 = vrot.slane %v1003_v22, 1  ;;  %v623_v41 = vrot.slane %v1005_v23, 1 }
  0x21   : > { %260 = vrot.lane.b32.xlu0 %v239_v44, %s924_s20 }
  0x23   : > { %363 = vrot.lane.b32.xlu1 %v228_v29, %s925_s23  ;;  %v1147_v29 = vmul.f32 %v522_v21, %v1003_v22 }
  0x25   : > { %361 = vrot.lane.b32.xlu0 %v236_v34, %s925_s23  ;;  %v181_v34 = vadd.s32 8, %v957_v1 }
  0x27   : > { %375 = vrot.lane.b32.xlu1 %v231_v43, %s925_s23  ;;  %vm615_vm3 = vcmp.eq.s32.totalorder %v181_v34, 15 }
  0x28   : > { %v1222_v1 = vsel %vm615_vm3, 0.0, %v1076_v55 }
  0x29   : > { %373 = vrot.lane.b32.xlu0 %v239_v44, %s925_s23 }
  0x2b   : > { %367 = vrot.lane.b32.xlu1 %v229_v24, %s925_s23  ;;  %v1133_v24 = vmul.f32 %v514_v20, %v977_v6 }
  0x2d   : > { %365 = vrot.lane.b32.xlu0 %v237_v35, %s925_s23  ;;  %v616_v35 = vrot.slane %v980_v8, 1 }
  0x2f   : > { %371 = vrot.lane.b32.xlu1 %v230_v30, %s925_s23  ;;  %v1150_v30 = vmul.f32 %v518_v27, %v997_v17 }
  0x31   : > { %369 = vrot.lane.b32.xlu0 %v238_v39, %s925_s23  ;;  %v629_v39 = vsel %vm624_vm2, %v620_v38, %v616_v35 }
  0x33   : > { %435 = vrot.lane.b32.xlu1 %v991_v13, %s924_s20 }
  0x35   : > { %433 = vrot.lane.b32.xlu0 %v980_v8, %s924_s20 }
  0x37   : > { %447 = vrot.lane.b32.xlu1 %v1005_v23, %s924_s20 }
  0x39   : > { %445 = vrot.lane.b32.xlu0 %v1003_v22, %s924_s20 }
  0x3b   : > { %439 = vrot.lane.b32.xlu1 %v977_v6, %s924_s20 }
  0x3d   : > { %437 = vrot.lane.b32.xlu0 %v975_v5, %s924_s20 }
  0x3f   : > { %443 = vrot.lane.b32.xlu1 %v997_v17, %s924_s20 }
  0x41   : > { %441 = vrot.lane.b32.xlu0 %v995_v16, %s924_s20 }
  0x43   : > { %545 = vrot.lane.b32.xlu1 %v991_v13, %s925_s23 }
  0x45   : > { %543 = vrot.lane.b32.xlu0 %v980_v8, %s925_s23  ;;  %v1189_v8 = vsel %vm615_vm3, 0.0, %v629_v39 }
  0x47   : > { %557 = vrot.lane.b32.xlu1 %v1005_v23, %s925_s23  ;;  %v280_v23 = vld [vmem:[%s1491_s1] ss:$8 sm:$0xf] }
  0x48   : > { %v289_v43 = vrot.slane %v280_v23, %v964_v3  ;;  %v293_v49 = vrot.slane %v280_v23, %v983_v9 }
  0x49   : > { %555 = vrot.lane.b32.xlu0 %v1003_v22, %s925_s23  ;;  %v1245_v22 = vand.u32 127, %v179_v0 }
  0x4b   : > { %549 = vrot.lane.b32.xlu1 %v977_v6, %s925_s23  ;;  %v632_v6 = vsel %vm624_vm2, %v623_v41, %v619_v40  ;;  %vm244_vm4 = vcmp.lt.s32.totalorder %v1245_v22, 32  ;;  %vm377_vm5 = vcmp.lt.s32.totalorder %v1245_v22, 96 }
  0x4c   : > { %v1202_v13 = vsel %vm615_vm3, 0.0, %v632_v6  ;;  %v1278_v6 = vadd.s32 384, %v1245_v22 }
  0x4d   : > { %547 = vrot.lane.b32.xlu0 %v975_v5, %s925_s23  ;;  %v1193_v5 = vsel %vm624_vm2, %v616_v35, %v620_v38 }
  0x4e   : > { %vm360_vm6 = vcmp.ge.s32.totalorder %v1278_v6, 480 }
  0x4f   : > { %553 = vrot.lane.b32.xlu1 %v997_v17, %s925_s23  ;;  %v1214_v17 = vsel %vm615_vm3, 0.0, %v1065_v51 }
  0x51   : > { %551 = vrot.lane.b32.xlu0 %v995_v16, %s925_s23  ;;  %v1206_v16 = vsel %vm624_vm2, %v619_v40, %v623_v41 }
  0x53   : > { %643 = vrot.lane.b32.xlu1 %v1189_v8, %s924_s20 }
  0x55   : > { %641 = vrot.lane.b32.xlu0 %v1193_v5, %s924_s20 }
  0x57   : > { %655 = vrot.lane.b32.xlu1 %v1202_v13, %s924_s20 }
  0x59   : > { %653 = vrot.lane.b32.xlu0 %v1206_v16, %s924_s20 }
  0x5b   : > { %647 = vrot.lane.b32.xlu1 %v1214_v17, %s924_s20 }
  0x5d   : > { %645 = vrot.lane.b32.xlu0 %v1069_v52, %s924_s20 }
  0x5f   : > { %651 = vrot.lane.b32.xlu1 %v1222_v1, %s924_s20 }
  0x61   : > { %649 = vrot.lane.b32.xlu0 %v1080_v56, %s924_s20 }
  0x63   : > { %753 = vrot.lane.b32.xlu1 %v1189_v8, %s925_s23 }
  0x65   : > { %751 = vrot.lane.b32.xlu0 %v1193_v5, %s925_s23 }
  0x67   : > { %765 = vrot.lane.b32.xlu1 %v1202_v13, %s925_s23 }
  0x69   : > { %763 = vrot.lane.b32.xlu0 %v1206_v16, %s925_s23 }
  0x6b   : > { %757 = vrot.lane.b32.xlu1 %v1214_v17, %s925_s23 }
  0x6d   : > { %755 = vrot.lane.b32.xlu0 %v1069_v52, %s925_s23 }
  0x6f   : > { %761 = vrot.lane.b32.xlu1 %v1222_v1, %s925_s23 }
  0x71   : > { %759 = vrot.lane.b32.xlu0 %v1080_v56, %s925_s23 }
  0x85   : > { %v255_v44 = vpop.permute.xlu1 %254 }
  0x87   : > { %v251_v47 = vpop.permute.xlu0 %250 }
  0x88   : > { %v269_v48 = vsel %vm244_vm4, %v251_v47, %v255_v44 }
  0x89   : > { %v307_v50 = vmul.f32 %v289_v43, %v269_v48  ;;  %v259_v51 = vpop.permute.xlu1 %258 }
  0x8a   : > { %v267_v53 = vsel %vm244_vm4, %v255_v44, %v259_v51 }
  0x8b   : > { %v315_v0 = vadd.f32 %v307_v50, %v1085_v58  ;;  %v249_v54 = vpop.permute.xlu0 %248  ;;  %v308_v55 = vmul.f32 %v293_v49, %v267_v53  ;;  %v297_v58 = vrot.slane %v280_v23, %v987_v10 }
  0x8d   : > { %v1259_v57 = vadd.f32 %v1014_v28, %v315_v0  ;;  %v316_v62 = vadd.f32 %v308_v55, %v1091_v60  ;;  %v253_v63 = vpop.permute.xlu1 %252  ;;  %v285_v28 = vrot.slane %v280_v23, %v973_v4  ;;  %v895_v0 = vld [vmem:[%s1491_s1 + $0x2] ss:$8 sm:$0xf] }
  0x8e   : > { %v268_v14 = vsel %vm244_vm4, %v249_v54, %v253_v63 }
  0x8f   : > { %v257_v15 = vpop.permute.xlu0 %256  ;;  %v303_v20 = vmul.f32 %v289_v43, %v268_v14  ;;  %v1268_v27 = vadd.f32 %v1025_v33, %v316_v62  ;;  %v412_v14 = vrot.slane %v895_v0, %v987_v10 }
  0x90   : > { %v266_v21 = vsel %vm244_vm4, %v253_v63, %v257_v15 }
  0x91   : > { %v304_v34 = vmul.f32 %v293_v49, %v266_v21  ;;  %v311_v35 = vadd.f32 %v303_v20, %v1088_v59  ;;  %v263_v60 = vpop.permute.xlu1 %262 }
  0x92   : > { %v265_v39 = vsel %vm244_vm4, %v259_v51, %v263_v60  ;;  %v271_v40 = vsel %vm244_vm4, %v263_v60, %v251_v47  ;;  %v404_v60 = vrot.slane %v895_v0, %v964_v3 }
  0x93   : > { %v312_v38 = vadd.f32 %v304_v34, %v1094_v61  ;;  %v261_v41 = vpop.permute.xlu0 %260  ;;  %v276_v33 = vsel %vm244_vm4, 0.0, %v271_v40  ;;  %v309_v43 = vmul.f32 %v297_v58, %v265_v39  ;;  %v350_v47 = vadd.f32 %v1033_v37, %v311_v35 }
  0x94   : > { %v264_v59 = vsel %vm244_vm4, %v257_v15, %v261_v41  ;;  %v270_v61 = vsel %vm244_vm4, %v261_v41, %v249_v54  ;;  %v306_v23 = vmul.f32 %v285_v28, %v276_v33  ;;  %v408_v41 = vrot.slane %v895_v0, %v983_v9 }
  0x95   : > { %v272_v44 = vsel %vm244_vm4, 0.0, %v270_v61  ;;  %v305_v48 = vmul.f32 %v297_v58, %v264_v59  ;;  %v317_v49 = vadd.f32 %v309_v43, %v1107_v11  ;;  %v364_v51 = vpop.permute.xlu1 %363  ;;  %v351_v53 = vadd.f32 %v1043_v42, %v312_v38 }
  0x96   : > { %v302_v50 = vmul.f32 %v285_v28, %v272_v44  ;;  %v314_v55 = vadd.f32 %v306_v23, %v1100_v2 }
  0x97   : > { %v313_v54 = vadd.f32 %v305_v48, %v1110_v12  ;;  %v362_v62 = vpop.permute.xlu0 %361  ;;  %v356_v63 = vadd.f32 %v1050_v45, %v317_v49 }
  0x98   : > { %v310_v37 = vadd.f32 %v302_v50, %v1103_v7  ;;  %v353_v15 = vadd.f32 %v1023_v32, %v314_v55 }
  0x99   : > { %v352_v11 = vadd.f32 %v1052_v46, %v313_v54  ;;  %v376_v42 = vpop.permute.xlu1 %375  ;;  %v400_v46 = vrot.slane %v895_v0, %v973_v4 }
  0x9a   : > { %v349_v2 = vadd.f32 %v1031_v36, %v310_v37  ;;  %v385_v12 = vsel %vm377_vm5, %v376_v42, %v364_v51 }
  0x9b   : > { %v374_v20 = vpop.permute.xlu0 %373  ;;  %v393_v45 = vsel %vm360_vm6, 0.0, %v385_v12 }
  0x9c   : > { %v384_v7 = vsel %vm377_vm5, %v374_v20, %v362_v62  ;;  %v424_v21 = vmul.f32 %v412_v14, %v393_v45 }
  0x9d   : > { %v389_v58 = vsel %vm360_vm6, 0.0, %v384_v7  ;;  %v368_v34 = vpop.permute.xlu1 %367 }
  0x9e   : > { %v420_v32 = vmul.f32 %v412_v14, %v389_v58  ;;  %v1313_v28 = vadd.f32 %v424_v21, %v356_v63  ;;  %v383_v36 = vsel %vm377_vm5, %v364_v51, %v368_v34 }
  0x9f   : > { %v366_v35 = vpop.permute.xlu0 %365  ;;  %v421_v39 = vmul.f32 %v400_v46, %v383_v36 }
  0xa0   : > { %v1318_v38 = vadd.f32 %v420_v32, %v352_v11  ;;  %v382_v40 = vsel %vm377_vm5, %v362_v62, %v366_v35  ;;  %v896_v11 = vld [vmem:[%s1491_s1 + $0x3] ss:$8 sm:$0xf] }
  0xa1   : > { %v417_v33 = vmul.f32 %v400_v46, %v382_v40  ;;  %v429_v43 = vadd.f32 %v421_v39, %v353_v15  ;;  %v372_v59 = vpop.permute.xlu1 %371  ;;  %v475_v7 = vrot.slane %v896_v11, %v964_v3  ;;  %v479_v36 = vrot.slane %v896_v11, %v983_v9 }
  0xa2   : > { %v379_v23 = vsel %vm377_vm5, %v372_v59, %v376_v42  ;;  %v381_v44 = vsel %vm377_vm5, %v368_v34, %v372_v59  ;;  %v483_v40 = vrot.slane %v896_v11, %v987_v10 }
  0xa3   : > { %v425_v61 = vadd.f32 %v417_v33, %v349_v2  ;;  %v370_v48 = vpop.permute.xlu0 %369  ;;  %v422_v49 = vmul.f32 %v404_v60, %v381_v44  ;;  %v423_v50 = vmul.f32 %v408_v41, %v379_v23  ;;  %v471_v2 = vrot.slane %v896_v11, %v973_v4 }
  0xa4   : > { %v378_v51 = vsel %vm377_vm5, %v370_v48, %v374_v20  ;;  %v380_v55 = vsel %vm377_vm5, %v366_v35, %v370_v48 }
  0xa5   : > { %v418_v0 = vmul.f32 %v404_v60, %v380_v55  ;;  %v419_v54 = vmul.f32 %v408_v41, %v378_v51  ;;  %v430_v62 = vadd.f32 %v422_v49, %v1259_v57  ;;  %v431_v63 = vadd.f32 %v423_v50, %v1268_v27  ;;  %v436_v37 = vpop.permute.xlu1 %435 }
  0xa7   : > { %v426_v14 = vadd.f32 %v418_v0, %v350_v47  ;;  %v427_v15 = vadd.f32 %v419_v54, %v351_v53  ;;  %v434_v42 = vpop.permute.xlu0 %433 }
  0xa9   : > { %v448_v12 = vpop.permute.xlu1 %447 }
  0xaa   : > { %v456_v20 = vsel %vm244_vm4, %v448_v12, %v436_v37 }
  0xab   : > { %v446_v45 = vpop.permute.xlu0 %445  ;;  %v461_v57 = vsel %vm244_vm4, 0.0, %v456_v20 }
  0xac   : > { %v455_v27 = vsel %vm244_vm4, %v446_v45, %v434_v42  ;;  %v492_v46 = vmul.f32 %v471_v2, %v461_v57 }
  0xad   : > { %v457_v47 = vsel %vm244_vm4, 0.0, %v455_v27  ;;  %v440_v21 = vpop.permute.xlu1 %439 }
  0xae   : > { %v488_v53 = vmul.f32 %v471_v2, %v457_v47  ;;  %v500_v58 = vadd.f32 %v492_v46, %v429_v43  ;;  %v454_v32 = vsel %vm244_vm4, %v436_v37, %v440_v21 }
  0xaf   : > { %v438_v34 = vpop.permute.xlu0 %437  ;;  %v493_v60 = vmul.f32 %v475_v7, %v454_v32 }
  0xb0   : > { %v496_v35 = vadd.f32 %v488_v53, %v425_v61  ;;  %v453_v39 = vsel %vm244_vm4, %v434_v42, %v438_v34  ;;  %v539_v33 = vadd.f32 %v1123_v18, %v500_v58  ;;  %v898_v42 = vld [vmem:[%s1491_s1 + $0x5] ss:$8 sm:$0xf] }
  0xb1   : > { %v489_v41 = vmul.f32 %v475_v7, %v453_v39  ;;  %v501_v59 = vadd.f32 %v493_v60, %v430_v62  ;;  %v444_v23 = vpop.permute.xlu1 %443  ;;  %v585_v58 = vrot.slane %v898_v42, %v964_v3 }
  0xb2   : > { %v535_v43 = vadd.f32 %v1126_v19, %v496_v35  ;;  %v450_v48 = vsel %vm244_vm4, %v444_v23, %v448_v12  ;;  %v452_v61 = vsel %vm244_vm4, %v440_v21, %v444_v23  ;;  %v589_v35 = vrot.slane %v898_v42, %v983_v9 }
  0xb3   : > { %v497_v44 = vadd.f32 %v489_v41, %v426_v14  ;;  %v442_v49 = vpop.permute.xlu0 %441  ;;  %v494_v50 = vmul.f32 %v479_v36, %v452_v61  ;;  %v495_v51 = vmul.f32 %v483_v40, %v450_v48  ;;  %v540_v19 = vadd.f32 %v1133_v24, %v501_v59 }
  0xb4   : > { %v449_v55 = vsel %vm244_vm4, %v442_v49, %v446_v45  ;;  %v451_v18 = vsel %vm244_vm4, %v438_v34, %v442_v49 }
  0xb5   : > { %v490_v0 = vmul.f32 %v479_v36, %v451_v18  ;;  %v491_v54 = vmul.f32 %v483_v40, %v449_v55  ;;  %v536_v62 = vadd.f32 %v1136_v25, %v497_v44  ;;  %v502_v37 = vadd.f32 %v494_v50, %v431_v63  ;;  %v546_v14 = vpop.permute.xlu1 %545 }
  0xb6   : > { %v503_v11 = vadd.f32 %v495_v51, %v1313_v28  ;;  %v593_v25 = vrot.slane %v898_v42, %v987_v10 }
  0xb7   : > { %v498_v2 = vadd.f32 %v490_v0, %v427_v15  ;;  %v499_v12 = vadd.f32 %v491_v54, %v1318_v38  ;;  %v544_v20 = vpop.permute.xlu0 %543  ;;  %v541_v57 = vadd.f32 %v1150_v30, %v502_v37  ;;  %v899_v54 = vld [vmem:[%s1491_s1 + $0x6] ss:$8 sm:$0xf] }
  0xb8   : > { %v542_v45 = vadd.f32 %v1141_v26, %v503_v11  ;;  %v581_v26 = vrot.slane %v898_v42, %v973_v4 }
  0xb9   : > { %v538_v24 = vadd.f32 %v1147_v29, %v499_v12  ;;  %v537_v63 = vadd.f32 %v1153_v31, %v498_v2  ;;  %v558_v28 = vpop.permute.xlu1 %557  ;;  %v679_v2 = vrot.slane %v899_v54, %v973_v4 }
  0xba   : > { %v566_v27 = vsel %vm377_vm5, %v558_v28, %v546_v14 }
  0xbb   : > { %v556_v7 = vpop.permute.xlu0 %555  ;;  %v574_v15 = vsel %vm360_vm6, 0.0, %v566_v27 }
  0xbc   : > { %v565_v38 = vsel %vm377_vm5, %v556_v7, %v544_v20  ;;  %v605_v30 = vmul.f32 %v593_v25, %v574_v15 }
  0xbd   : > { %v570_v29 = vsel %vm360_vm6, 0.0, %v565_v38  ;;  %v550_v47 = vpop.permute.xlu1 %549 }
  0xbe   : > { %v601_v46 = vmul.f32 %v593_v25, %v570_v29  ;;  %v1383_v31 = vadd.f32 %v605_v30, %v542_v45  ;;  %v564_v53 = vsel %vm377_vm5, %v546_v14, %v550_v47 }
  0xbf   : > { %v548_v21 = vpop.permute.xlu0 %547  ;;  %v602_v34 = vmul.f32 %v581_v26, %v564_v53 }
  0xc0   : > { %v1388_v32 = vadd.f32 %v601_v46, %v538_v24  ;;  %v563_v36 = vsel %vm377_vm5, %v544_v20, %v548_v21 }
  0xc1   : > { %v598_v60 = vmul.f32 %v581_v26, %v563_v36  ;;  %v610_v39 = vadd.f32 %v602_v34, %v539_v33  ;;  %v554_v40 = vpop.permute.xlu1 %553  ;;  %v900_v33 = vld [vmem:[%s1491_s1 + $0x7] ss:$8 sm:$0xf] }
  0xc2   : > { %v560_v59 = vsel %vm377_vm5, %v554_v40, %v558_v28  ;;  %v562_v23 = vsel %vm377_vm5, %v550_v47, %v554_v40  ;;  %v718_v42 = vrot.slane %v900_v33, %v973_v4  ;;  %v730_v20 = vrot.slane %v900_v33, %v987_v10 }
  0xc3   : > { %v606_v41 = vadd.f32 %v598_v60, %v535_v43  ;;  %v552_v44 = vpop.permute.xlu0 %551  ;;  %v603_v48 = vmul.f32 %v585_v58, %v562_v23  ;;  %v604_v61 = vmul.f32 %v589_v35, %v560_v59  ;;  %v726_v15 = vrot.slane %v900_v33, %v983_v9 }
  0xc4   : > { %v559_v49 = vsel %vm377_vm5, %v552_v44, %v556_v7  ;;  %v561_v50 = vsel %vm377_vm5, %v548_v21, %v552_v44  ;;  %v739_v25 = vmul.f32 %v718_v42, %v1189_v8  ;;  %v735_v7 = vmul.f32 %v718_v42, %v1193_v5 }
  0xc5   : > { %v599_v51 = vmul.f32 %v585_v58, %v561_v50  ;;  %v600_v55 = vmul.f32 %v589_v35, %v559_v49  ;;  %v611_v43 = vadd.f32 %v603_v48, %v540_v19  ;;  %v612_v18 = vadd.f32 %v604_v61, %v541_v57  ;;  %v644_v0 = vpop.permute.xlu1 %643 }
  0xc6   : > { %v738_v30 = vmul.f32 %v730_v20, %v1206_v16  ;;  %v687_v8 = vrot.slane %v899_v54, %v983_v9  ;;  %v691_v5 = vrot.slane %v899_v54, %v987_v10  ;;  %v742_v60 = vmul.f32 %v730_v20, %v1202_v13 }
  0xc7   : > { %v607_v37 = vadd.f32 %v599_v51, %v536_v62  ;;  %v608_v11 = vadd.f32 %v600_v55, %v537_v63  ;;  %v642_v14 = vpop.permute.xlu0 %641  ;;  %v683_v62 = vrot.slane %v899_v54, %v964_v3  ;;  %v722_v63 = vrot.slane %v900_v33, %v964_v3  ;;  %v901_v54 = vld [vmem:[%s1491_s1 + $0x20] ss:$8 sm:$0xf] }
  0xc9   : > { %v656_v12 = vpop.permute.xlu1 %655  ;;  %v740_v34 = vmul.f32 %v722_v63, %v1214_v17  ;;  %v736_v36 = vmul.f32 %v722_v63, %v1069_v52 }
  0xca   : > { %v664_v45 = vsel %vm244_vm4, %v656_v12, %v644_v0 }
  0xcb   : > { %v654_v19 = vpop.permute.xlu0 %653  ;;  %v669_v57 = vsel %vm244_vm4, 0.0, %v664_v45  ;;  %v801_v45 = vrot.slane %v901_v54, %v987_v10 }
  0xcc   : > { %v663_v24 = vsel %vm244_vm4, %v654_v19, %v642_v14  ;;  %v700_v28 = vmul.f32 %v679_v2, %v669_v57 }
  0xcd   : > { %v665_v27 = vsel %vm244_vm4, 0.0, %v663_v24  ;;  %v648_v26 = vpop.permute.xlu1 %647 }
  0xce   : > { %v696_v38 = vmul.f32 %v679_v2, %v665_v27  ;;  %v708_v29 = vadd.f32 %v700_v28, %v610_v39  ;;  %v662_v46 = vsel %vm244_vm4, %v644_v0, %v648_v26  ;;  %v737_v39 = vmul.f32 %v726_v15, %v1080_v56 }
  0xcf   : > { %v646_v47 = vpop.permute.xlu0 %645  ;;  %v701_v21 = vmul.f32 %v683_v62, %v662_v46 }
  0xd0   : > { %v704_v53 = vadd.f32 %v696_v38, %v606_v41  ;;  %v661_v58 = vsel %vm244_vm4, %v642_v14, %v646_v47  ;;  %v747_v16 = vadd.f32 %v739_v25, %v708_v29  ;;  %v741_v41 = vmul.f32 %v726_v15, %v1222_v1 }
  0xd1   : > { %v697_v35 = vmul.f32 %v683_v62, %v661_v58  ;;  %v709_v40 = vadd.f32 %v701_v21, %v611_v43  ;;  %v652_v59 = vpop.permute.xlu1 %651 }
  0xd2   : > { %v743_v23 = vadd.f32 %v735_v7, %v704_v53  ;;  %v658_v48 = vsel %vm244_vm4, %v652_v59, %v656_v12  ;;  %v660_v17 = vsel %vm244_vm4, %v648_v26, %v652_v59  ;;  %v793_v7 = vrot.slane %v901_v54, %v964_v3 }
  0xd3   : > { %v705_v44 = vadd.f32 %v697_v35, %v607_v37  ;;  %v650_v61 = vpop.permute.xlu0 %649  ;;  %v702_v52 = vmul.f32 %v687_v8, %v660_v17  ;;  %v703_v49 = vmul.f32 %v691_v5, %v658_v48  ;;  %v748_v55 = vadd.f32 %v740_v34, %v709_v40 }
  0xd4   : > { %v657_v13 = vsel %vm244_vm4, %v650_v61, %v654_v19  ;;  %v659_v56 = vsel %vm244_vm4, %v646_v47, %v650_v61  ;;  %v797_v26 = vrot.slane %v901_v54, %v983_v9 }
  0xd5   : > { %v698_v50 = vmul.f32 %v687_v8, %v659_v56  ;;  %v699_v51 = vmul.f32 %v691_v5, %v657_v13  ;;  %v744_v1 = vadd.f32 %v736_v36, %v705_v44  ;;  %v710_v33 = vadd.f32 %v702_v52, %v612_v18  ;;  %v754_v0 = vpop.permute.xlu1 %753 }
  0xd6   : > { %v711_v43 = vadd.f32 %v703_v49, %v1383_v31 }
  0xd7   : > { %v706_v37 = vadd.f32 %v698_v50, %v608_v11  ;;  %v707_v14 = vadd.f32 %v699_v51, %v1388_v32  ;;  %v752_v42 = vpop.permute.xlu0 %751  ;;  %v749_v12 = vadd.f32 %v741_v41, %v710_v33  ;;  %v789_v32 = vrot.slane %v901_v54, %v973_v4 }
  0xd8   : > { %v750_v2 = vadd.f32 %v742_v60, %v711_v43 }
  0xd9   : > { %v746_v20 = vadd.f32 %v738_v30, %v707_v14  ;;  %v745_v19 = vadd.f32 %v737_v39, %v706_v37  ;;  %v766_v57 = vpop.permute.xlu1 %765 }
  0xda   : > { %v774_v31 = vsel %vm377_vm5, %v766_v57, %v754_v0 }
  0xdb   : > { %v764_v18 = vpop.permute.xlu0 %763  ;;  %v782_v24 = vsel %vm360_vm6, 0.0, %v774_v31 }
  0xdc   : > { %v773_v11 = vsel %vm377_vm5, %v764_v18, %v752_v42  ;;  %v813_v62 = vmul.f32 %v801_v45, %v782_v24 }
  0xdd   : > { %v778_v25 = vsel %vm360_vm6, 0.0, %v773_v11  ;;  %v758_v63 = vpop.permute.xlu1 %757 }
  0xde   : > { %v809_v10 = vmul.f32 %v801_v45, %v778_v25  ;;  %v821_v28 = vadd.f32 %v813_v62, %v750_v2  ;;  %v772_v27 = vsel %vm377_vm5, %v754_v0, %v758_v63 }
  0xdf   : > { %v756_v4 = vpop.permute.xlu0 %755  ;;  %v810_v15 = vmul.f32 %v789_v32, %v772_v27 }
  0xe0   : > { %v817_v6 = vadd.f32 %v809_v10, %v746_v20  ;;  %v771_v38 = vsel %vm377_vm5, %v752_v42, %v756_v4  ;;  %829 = vst [vmem:[%s1463_s18 + $0x38] sm:$0xff] %v821_v28 }
  0xe1   : > { %v806_v30 = vmul.f32 %v789_v32, %v771_v38  ;;  %v818_v29 = vadd.f32 %v810_v15, %v747_v16  ;;  %v762_v46 = vpop.permute.xlu1 %761 }
  0xe2   : > { %825 = vst [vmem:[%s1463_s18 + $0x18] sm:$0xff] %v817_v6  ;;  %v768_v8 = vsel %vm377_vm5, %v762_v46, %v766_v57  ;;  %v770_v3 = vsel %vm377_vm5, %v758_v63, %v762_v46 }
  0xe3   : > { %v814_v47 = vadd.f32 %v806_v30, %v743_v23  ;;  %v760_v53 = vpop.permute.xlu0 %759  ;;  %826 = vst [vmem:[%s1463_s18 + $0x20] sm:$0xff] %v818_v29  ;;  %v811_v21 = vmul.f32 %v793_v7, %v770_v3  ;;  %v812_v9 = vmul.f32 %v797_v26, %v768_v8 }
  0xe4   : > { %v767_v58 = vsel %vm377_vm5, %v760_v53, %v764_v18  ;;  %v769_v5 = vsel %vm377_vm5, %v756_v4, %v760_v53 }
  0xe5   : > { %822 = vst [vmem:[%s1463_s18] sm:$0xff] %v814_v47  ;;  %v807_v34 = vmul.f32 %v793_v7, %v769_v5  ;;  %v808_v36 = vmul.f32 %v797_v26, %v767_v58  ;;  %v819_v35 = vadd.f32 %v811_v21, %v748_v55  ;;  %v820_v16 = vadd.f32 %v812_v9, %v749_v12 }
  0xe7   : > { %v815_v60 = vadd.f32 %v807_v34, %v744_v1  ;;  %v816_v39 = vadd.f32 %v808_v36, %v745_v19  ;;  %827 = vst [vmem:[%s1463_s18 + $0x28] sm:$0xff] %v819_v35  ;;  %828 = vst [vmem:[%s1463_s18 + $0x30] sm:$0xff] %v820_v16 }
  0xe9   : > { %823 = vst [vmem:[%s1463_s18 + $0x8] sm:$0xff] %v815_v60  ;;  %824 = vst [vmem:[%s1463_s18 + $0x10] sm:$0xff] %v816_v39 }
  0xea PF: > { %s13_s12 = sadd.s32 1, %s922_s12  }
  0xeb   : > { %p10_p4 = scmp.ge.s32.totalorder %s13_s12, 4  }
  0xed   :  { %12 = sbr.rel (!%p10_p4) target bundleno = 1 (0x1), region = 70 }

// kernel: query_sablock_forward.3
= control target key start
LH: loop header
LB: loop body
LE: loop exit
PB: predicated region body
PF: predicated region fallthrough
CT: control target
= control target key end

     0   :  { %s3163_s25 = smov 0   ;;  %s4272_s0 = inlined_call_operand.vmem [shape: f32[2,256,32], index: 0, kind: input, shape index: {}]   ;;  %s4273_s1 = inlined_call_operand.vmem [shape: f32[10,32], index: 1, kind: input, shape index: {}]   ;;  %s4274_s2 = inlined_call_operand.vmem [shape: f32[1,32], index: 2, kind: input, shape index: {}]   ;;  %s4275_s3 = inlined_call_operand.vmem [shape: f32[1,32], index: 3, kind: input, shape index: {}]   ;;  %s4276_s4 = inlined_call_operand.vmem [shape: f32[32,64], index: 4, kind: input, shape index: {}]   ;;  %s4277_s5 = inlined_call_operand.vmem [shape: f32[32,32], index: 5, kind: input, shape index: {}]   ;;  %s4278_s6 = inlined_call_operand.vmem [shape: f32[1,32], index: 6, kind: input, shape index: {}]   ;;  %s4279_s7 = inlined_call_operand.vmem [shape: f32[1,32], index: 7, kind: input, shape index: {}]   ;;  %s4280_s8 = inlined_call_operand.vmem [shape: f32[1,32], index: 8, kind: input, shape index: {}]   ;;  %s4281_s9 = inlined_call_operand.vmem [shape: f32[32,128], index: 9, kind: input, shape index: {}]   ;;  %s4282_s10 = inlined_call_operand.vmem [shape: f32[1,128], index: 10, kind: input, shape index: {}]   ;;  %s4283_s11 = inlined_call_operand.vmem [shape: f32[128,32], index: 11, kind: input, shape index: {}]   ;;  %s4284_s12 = inlined_call_operand.vmem [shape: f32[1,32], index: 12, kind: input, shape index: {}]   ;;  %s4285_s13 = inlined_call_operand.vmem [shape: f32[2,10,32], index: 13, kind: output, shape index: {}]  }
   0x1 LB: > { %s2522_s26 = sadd.s32 4294967295, %s3087_s25   ;;  %p2526_p0 = scmp.ge.s32.totalorder %s3087_s25, 1  ;;  %s3087_s25 = sphi %s3163_s25, %s23_s25  }
   0x2   : > { %p387_p1 = scmp.lt.s32.totalorder %s3087_s25, 3 }
   0x4   : > { %p388_p2 = pnand %p2526_p0, %p387_p1 }
   0x5   : > { %p431_p3 = scmp.lt.s32.totalorder (!%p388_p2), %s2522_s26, 1  ;;  %s3090_s16 = smov (!%p388_p2), 96  }
   0x6   : > { %391 = sbr.rel (%p388_p2) target bundleno = 2527 (0x9df), region = 72  ;;  %s3091_s17 = smov (!%p388_p2), 80  }
   0x7   : > { %s3092_s28 = smov (!%p388_p2), 16  }
   0xb   : > { %s4287_s26 = smov (!%p431_p3, %s2522_s26), 1  ;;  %vm473_vm0 = vcmask 261120   ;;  %vm1296_vm1 = vcmask 130048   ;;  %vm1483_vm2 = vcmask 1041408   ;;  %vm2213_vm3 = vcmask 254976  }
   0xc   : > { %s2644_s27 = sshll.u32 %s4287_s26, 8 }
   0xd   : > { %s3177_s30 = scalar_lea.vmem %s4272_s0, %s2644_s27 }
   0xe   : > { %v3180_v0 = vld [vmem:[%s3177_s30] sm:$0xff]  ;;  %v3183_v1 = vld [vmem:[%s3177_s30 + $0x10] sm:$0xff]  ;;  %v3186_v2 = vld [vmem:[%s3177_s30 + $0x8] sm:$0xff] }
   0xf   : > { %v474_v3 = vsel %vm473_vm0, %v3180_v0, 0.0  ;;  %v480_v4 = vsel %vm473_vm0, %v3183_v1, 0.0  ;;  %v3193_v5 = vld [vmem:[%s3177_s30 + $0x18] sm:$0xff]  ;;  %v477_v6 = vsel %vm473_vm0, %v3186_v2, 0.0  ;;  %v3200_v8 = vld [vmem:[%s3177_s30 + $0x20] sm:$0xff]  ;;  %v3203_v9 = vld [vmem:[%s3177_s30 + $0x28] sm:$0xff] }
  0x10   : > { %475 = vadd.xlane.f32.xlu0 %v474_v3  ;;  %481 = vadd.xlane.f32.xlu1 %v480_v4  ;;  %v483_v7 = vsel %vm473_vm0, %v3193_v5, 0.0  ;;  %v486_v10 = vsel %vm473_vm0, %v3200_v8, 0.0  ;;  %v489_v11 = vsel %vm473_vm0, %v3203_v9, 0.0  ;;  %v3210_v12 = vld [vmem:[%s3177_s30 + $0x30] sm:$0xff]  ;;  %v3213_v13 = vld [vmem:[%s3177_s30 + $0x38] sm:$0xff]  ;;  %v3220_v16 = vld [vmem:[%s3177_s30 + $0x40] sm:$0xff] }
  0x11   : > { %v492_v14 = vsel %vm473_vm0, %v3210_v12, 0.0  ;;  %v495_v15 = vsel %vm473_vm0, %v3213_v13, 0.0  ;;  %v3223_v17 = vld [vmem:[%s3177_s30 + $0x48] sm:$0xff]  ;;  %v498_v18 = vsel %vm473_vm0, %v3220_v16, 0.0  ;;  %v3230_v20 = vld [vmem:[%s3177_s30 + $0x50] sm:$0xff]  ;;  %v3233_v21 = vld [vmem:[%s3177_s30 + $0x58] sm:$0xff] }
  0x12   : > { %v501_v19 = vsel %vm473_vm0, %v3223_v17, 0.0  ;;  %v504_v22 = vsel %vm473_vm0, %v3230_v20, 0.0  ;;  %v507_v23 = vsel %vm473_vm0, %v3233_v21, 0.0  ;;  %v3240_v24 = vld [vmem:[%s3177_s30 + $0x60] sm:$0xff]  ;;  %v3243_v25 = vld [vmem:[%s3177_s30 + $0x68] sm:$0xff]  ;;  %v3250_v28 = vld [vmem:[%s3177_s30 + $0x70] sm:$0xff] }
  0x13   : > { %v510_v26 = vsel %vm473_vm0, %v3240_v24, 0.0  ;;  %v513_v27 = vsel %vm473_vm0, %v3243_v25, 0.0  ;;  %v3253_v29 = vld [vmem:[%s3177_s30 + $0x78] sm:$0xff]  ;;  %v516_v30 = vsel %vm473_vm0, %v3250_v28, 0.0  ;;  %v3260_v32 = vld [vmem:[%s3177_s30 + $0x80] sm:$0xff]  ;;  %v3263_v33 = vld [vmem:[%s3177_s30 + $0x88] sm:$0xff] }
  0x14   : > { %478 = vadd.xlane.f32.xlu0 %v477_v6  ;;  %484 = vadd.xlane.f32.xlu1 %v483_v7  ;;  %v519_v31 = vsel %vm473_vm0, %v3253_v29, 0.0  ;;  %v522_v34 = vsel %vm473_vm0, %v3260_v32, 0.0  ;;  %v525_v35 = vsel %vm473_vm0, %v3263_v33, 0.0  ;;  %v3270_v36 = vld [vmem:[%s3177_s30 + $0x90] sm:$0xff]  ;;  %v3273_v37 = vld [vmem:[%s3177_s30 + $0x98] sm:$0xff]  ;;  %v3280_v40 = vld [vmem:[%s3177_s30 + $0xa0] sm:$0xff] }
  0x15   : > { %v528_v38 = vsel %vm473_vm0, %v3270_v36, 0.0  ;;  %v531_v39 = vsel %vm473_vm0, %v3273_v37, 0.0  ;;  %v3283_v41 = vld [vmem:[%s3177_s30 + $0xa8] sm:$0xff]  ;;  %v534_v42 = vsel %vm473_vm0, %v3280_v40, 0.0  ;;  %v3290_v44 = vld [vmem:[%s3177_s30 + $0xb0] sm:$0xff]  ;;  %v3293_v45 = vld [vmem:[%s3177_s30 + $0xb8] sm:$0xff] }
  0x16   : > { %v537_v43 = vsel %vm473_vm0, %v3283_v41, 0.0  ;;  %v540_v46 = vsel %vm473_vm0, %v3290_v44, 0.0  ;;  %v543_v47 = vsel %vm473_vm0, %v3293_v45, 0.0  ;;  %v3300_v48 = vld [vmem:[%s3177_s30 + $0xc0] sm:$0xff]  ;;  %v3303_v49 = vld [vmem:[%s3177_s30 + $0xc8] sm:$0xff]  ;;  %v3310_v52 = vld [vmem:[%s3177_s30 + $0xd0] sm:$0xff] }
  0x17   : > { %v546_v50 = vsel %vm473_vm0, %v3300_v48, 0.0  ;;  %v549_v51 = vsel %vm473_vm0, %v3303_v49, 0.0  ;;  %v3313_v53 = vld [vmem:[%s3177_s30 + $0xd8] sm:$0xff]  ;;  %v552_v54 = vsel %vm473_vm0, %v3310_v52, 0.0  ;;  %v3320_v56 = vld [vmem:[%s3177_s30 + $0xe0] sm:$0xff]  ;;  %v3323_v57 = vld [vmem:[%s3177_s30 + $0xe8] sm:$0xff] }
  0x18   : > { %487 = vadd.xlane.f32.xlu0 %v486_v10  ;;  %490 = vadd.xlane.f32.xlu1 %v489_v11  ;;  %v555_v55 = vsel %vm473_vm0, %v3313_v53, 0.0  ;;  %v558_v58 = vsel %vm473_vm0, %v3320_v56, 0.0  ;;  %v561_v59 = vsel %vm473_vm0, %v3323_v57, 0.0  ;;  %v3330_v60 = vld [vmem:[%s3177_s30 + $0xf0] sm:$0xff]  ;;  %v3333_v61 = vld [vmem:[%s3177_s30 + $0xf8] sm:$0xff]  ;;  %s3089_s30 = smov 112  }
  0x19   : > { %v564_v62 = vsel %vm473_vm0, %v3330_v60, 0.0  ;;  %v567_v63 = vsel %vm473_vm0, %v3333_v61, 0.0 }
  0x1c   : > { %493 = vadd.xlane.f32.xlu0 %v492_v14  ;;  %496 = vadd.xlane.f32.xlu1 %v495_v15 }
  0x20   : > { %499 = vadd.xlane.f32.xlu0 %v498_v18  ;;  %502 = vadd.xlane.f32.xlu1 %v501_v19 }
  0x24   : > { %505 = vadd.xlane.f32.xlu0 %v504_v22  ;;  %508 = vadd.xlane.f32.xlu1 %v507_v23 }
  0x28   : > { %511 = vadd.xlane.f32.xlu0 %v510_v26  ;;  %514 = vadd.xlane.f32.xlu1 %v513_v27 }
  0x2c   : > { %517 = vadd.xlane.f32.xlu0 %v516_v30  ;;  %520 = vadd.xlane.f32.xlu1 %v519_v31 }
  0x30   : > { %523 = vadd.xlane.f32.xlu0 %v522_v34  ;;  %526 = vadd.xlane.f32.xlu1 %v525_v35 }
  0x34   : > { %529 = vadd.xlane.f32.xlu0 %v528_v38  ;;  %532 = vadd.xlane.f32.xlu1 %v531_v39 }
  0x38   : > { %535 = vadd.xlane.f32.xlu0 %v534_v42  ;;  %538 = vadd.xlane.f32.xlu1 %v537_v43 }
  0x3c   : > { %541 = vadd.xlane.f32.xlu0 %v540_v46  ;;  %544 = vadd.xlane.f32.xlu1 %v543_v47 }
  0x40   : > { %547 = vadd.xlane.f32.xlu0 %v546_v50  ;;  %550 = vadd.xlane.f32.xlu1 %v549_v51 }
  0x44   : > { %553 = vadd.xlane.f32.xlu0 %v552_v54  ;;  %556 = vadd.xlane.f32.xlu1 %v555_v55 }
  0x48   : > { %559 = vadd.xlane.f32.xlu0 %v558_v58  ;;  %562 = vadd.xlane.f32.xlu1 %v561_v59 }
  0x4c   : > { %565 = vadd.xlane.f32.xlu0 %v564_v62  ;;  %568 = vadd.xlane.f32.xlu1 %v567_v63 }
  0x99   : > { %v476_v3 = vpop.xlane.xlu0 %475  ;;  %v482_v4 = vpop.xlane.xlu1 %481 }
  0x9a   : > { %v571_v6 = vmul.f32 0.03125, %v476_v3  ;;  %v573_v7 = vmul.f32 0.03125, %v482_v4 }
  0x9c   : > { %v3340_v10 = vsub.f32 %v3180_v0, %v571_v6  ;;  %v3343_v11 = vsub.f32 %v3183_v1, %v573_v7 }
  0x9d   : > { %v479_v14 = vpop.xlane.xlu0 %478  ;;  %v485_v15 = vpop.xlane.xlu1 %484 }
  0x9e   : > { %v572_v18 = vmul.f32 0.03125, %v479_v14  ;;  %v574_v19 = vmul.f32 0.03125, %v485_v15  ;;  %v635_v22 = vmul.f32 %v3340_v10, %v3340_v10  ;;  %v637_v23 = vmul.f32 %v3343_v11, %v3343_v11 }
  0xa0   : > { %v3350_v26 = vsub.f32 %v3186_v2, %v572_v18  ;;  %v3353_v27 = vsub.f32 %v3193_v5, %v574_v19  ;;  %v667_v0 = vsel %vm473_vm0, %v635_v22, 0.0  ;;  %v673_v31 = vsel %vm473_vm0, %v637_v23, 0.0 }
  0xa1   : > { %668 = vadd.xlane.f32.xlu0 %v667_v0  ;;  %v488_v1 = vpop.xlane.xlu0 %487  ;;  %v491_v30 = vpop.xlane.xlu1 %490 }
  0xa2   : > { %v575_v34 = vmul.f32 0.03125, %v488_v1  ;;  %v576_v35 = vmul.f32 0.03125, %v491_v30  ;;  %v636_v38 = vmul.f32 %v3350_v26, %v3350_v26  ;;  %v638_v39 = vmul.f32 %v3353_v27, %v3353_v27 }
  0xa4   : > { %v3362_v2 = vsub.f32 %v3200_v8, %v575_v34  ;;  %v3365_v5 = vsub.f32 %v3203_v9, %v576_v35  ;;  %v670_v42 = vsel %vm473_vm0, %v636_v38, 0.0  ;;  %v676_v47 = vsel %vm473_vm0, %v638_v39, 0.0 }
  0xa5   : > { %674 = vadd.xlane.f32.xlu0 %v673_v31  ;;  %671 = vadd.xlane.f32.xlu1 %v670_v42  ;;  %v494_v43 = vpop.xlane.xlu0 %493  ;;  %v497_v46 = vpop.xlane.xlu1 %496 }
  0xa6   : > { %v577_v50 = vmul.f32 0.03125, %v494_v43  ;;  %v578_v51 = vmul.f32 0.03125, %v497_v46  ;;  %v639_v54 = vmul.f32 %v3362_v2, %v3362_v2  ;;  %v640_v8 = vmul.f32 %v3365_v5, %v3365_v5 }
  0xa8   : > { %v3374_v55 = vsub.f32 %v3210_v12, %v577_v50  ;;  %v3377_v9 = vsub.f32 %v3213_v13, %v578_v51  ;;  %v679_v58 = vsel %vm473_vm0, %v639_v54, 0.0  ;;  %v682_v63 = vsel %vm473_vm0, %v640_v8, 0.0 }
  0xa9   : > { %677 = vadd.xlane.f32.xlu1 %v676_v47  ;;  %680 = vadd.xlane.f32.xlu0 %v679_v58  ;;  %v500_v59 = vpop.xlane.xlu0 %499  ;;  %v503_v62 = vpop.xlane.xlu1 %502 }
  0xaa   : > { %v579_v3 = vmul.f32 0.03125, %v500_v59  ;;  %v580_v4 = vmul.f32 0.03125, %v503_v62  ;;  %v641_v6 = vmul.f32 %v3374_v55, %v3374_v55  ;;  %v642_v12 = vmul.f32 %v3377_v9, %v3377_v9 }
  0xac   : > { %v3386_v7 = vsub.f32 %v3220_v16, %v579_v3  ;;  %v3389_v13 = vsub.f32 %v3223_v17, %v580_v4  ;;  %v685_v14 = vsel %vm473_vm0, %v641_v6, 0.0  ;;  %v688_v19 = vsel %vm473_vm0, %v642_v12, 0.0 }
  0xad   : > { %683 = vadd.xlane.f32.xlu1 %v682_v63  ;;  %686 = vadd.xlane.f32.xlu0 %v685_v14  ;;  %v506_v15 = vpop.xlane.xlu0 %505  ;;  %v509_v18 = vpop.xlane.xlu1 %508 }
  0xae   : > { %v581_v22 = vmul.f32 0.03125, %v506_v15  ;;  %v582_v23 = vmul.f32 0.03125, %v509_v18  ;;  %v643_v0 = vmul.f32 %v3386_v7, %v3386_v7  ;;  %v644_v16 = vmul.f32 %v3389_v13, %v3389_v13 }
  0xb0   : > { %v3398_v1 = vsub.f32 %v3230_v20, %v581_v22  ;;  %v3401_v17 = vsub.f32 %v3233_v21, %v582_v23  ;;  %v691_v30 = vsel %vm473_vm0, %v643_v0, 0.0  ;;  %v694_v35 = vsel %vm473_vm0, %v644_v16, 0.0 }
  0xb1   : > { %689 = vadd.xlane.f32.xlu1 %v688_v19  ;;  %692 = vadd.xlane.f32.xlu0 %v691_v30  ;;  %v512_v31 = vpop.xlane.xlu0 %511  ;;  %v515_v34 = vpop.xlane.xlu1 %514 }
  0xb2   : > { %v583_v38 = vmul.f32 0.03125, %v512_v31  ;;  %v584_v39 = vmul.f32 0.03125, %v515_v34  ;;  %v645_v42 = vmul.f32 %v3398_v1, %v3398_v1  ;;  %v646_v20 = vmul.f32 %v3401_v17, %v3401_v17 }
  0xb4   : > { %v3410_v43 = vsub.f32 %v3240_v24, %v583_v38  ;;  %v3413_v21 = vsub.f32 %v3243_v25, %v584_v39  ;;  %v697_v46 = vsel %vm473_vm0, %v645_v42, 0.0  ;;  %v700_v51 = vsel %vm473_vm0, %v646_v20, 0.0  ;;  %v971_v20 = vld [vmem:[%s4276_s4 + $0x10] sm:$0xff] }
  0xb5   : > { %695 = vadd.xlane.f32.xlu1 %v694_v35  ;;  %698 = vadd.xlane.f32.xlu0 %v697_v46  ;;  %v518_v47 = vpop.xlane.xlu0 %517  ;;  %v521_v50 = vpop.xlane.xlu1 %520 }
  0xb6   : > { %v585_v54 = vmul.f32 0.03125, %v518_v47  ;;  %v586_v8 = vmul.f32 0.03125, %v521_v50  ;;  %v647_v58 = vmul.f32 %v3410_v43, %v3410_v43  ;;  %v648_v24 = vmul.f32 %v3413_v21, %v3413_v21  ;;  %v970_v50 = vld [vmem:[%s4276_s4 + $0x8] sm:$0xff] }
  0xb8   : > { %v3422_v59 = vsub.f32 %v3250_v28, %v585_v54  ;;  %v3425_v25 = vsub.f32 %v3253_v29, %v586_v8  ;;  %v703_v62 = vsel %vm473_vm0, %v647_v58, 0.0  ;;  %v706_v4 = vsel %vm473_vm0, %v648_v24, 0.0 }
  0xb9   : > { %701 = vadd.xlane.f32.xlu1 %v700_v51  ;;  %704 = vadd.xlane.f32.xlu0 %v703_v62  ;;  %v524_v63 = vpop.xlane.xlu0 %523  ;;  %v527_v3 = vpop.xlane.xlu1 %526 }
  0xba   : > { %v587_v6 = vmul.f32 0.03125, %v524_v63  ;;  %v588_v12 = vmul.f32 0.03125, %v527_v3  ;;  %v649_v14 = vmul.f32 %v3422_v59, %v3422_v59  ;;  %v650_v28 = vmul.f32 %v3425_v25, %v3425_v25  ;;  %v969_v63 = vld [vmem:[%s4276_s4] sm:$0xff] }
  0xbc   : > { %v3434_v15 = vsub.f32 %v3260_v32, %v587_v6  ;;  %v3437_v29 = vsub.f32 %v3263_v33, %v588_v12  ;;  %v709_v18 = vsel %vm473_vm0, %v649_v14, 0.0  ;;  %v712_v23 = vsel %vm473_vm0, %v650_v28, 0.0  ;;  %v972_v33 = vld [vmem:[%s4276_s4 + $0x18] sm:$0xff] }
  0xbd   : > { %707 = vadd.xlane.f32.xlu1 %v706_v4  ;;  %710 = vadd.xlane.f32.xlu0 %v709_v18  ;;  %v530_v19 = vpop.xlane.xlu0 %529  ;;  %v533_v22 = vpop.xlane.xlu1 %532 }
  0xbe   : > { %v589_v0 = vmul.f32 0.03125, %v530_v19  ;;  %v590_v16 = vmul.f32 0.03125, %v533_v22  ;;  %v651_v30 = vmul.f32 %v3434_v15, %v3434_v15  ;;  %v652_v32 = vmul.f32 %v3437_v29, %v3437_v29  ;;  %2860 = vmatprep.subr.mxu1 %v972_v33 }
  0xbf   : > { %2861 = vmatpush3.msra.mxu1 %v972_v33 }
  0xc0   : > { %v3449_v31 = vsub.f32 %v3270_v36, %v589_v0  ;;  %v3452_v34 = vsub.f32 %v3273_v37, %v590_v16  ;;  %v715_v35 = vsel %vm473_vm0, %v651_v30, 0.0  ;;  %v718_v42 = vsel %vm473_vm0, %v652_v32, 0.0  ;;  %2862 = vmatprep.subr.mxu1 %v971_v20 }
  0xc1   : > { %713 = vadd.xlane.f32.xlu1 %v712_v23  ;;  %716 = vadd.xlane.f32.xlu0 %v715_v35  ;;  %v536_v38 = vpop.xlane.xlu0 %535  ;;  %v539_v39 = vpop.xlane.xlu1 %538 }
  0xc2   : > { %v591_v46 = vmul.f32 0.03125, %v536_v38  ;;  %v592_v47 = vmul.f32 0.03125, %v539_v39  ;;  %v653_v36 = vmul.f32 %v3449_v31, %v3449_v31  ;;  %v654_v37 = vmul.f32 %v3452_v34, %v3452_v34  ;;  %2863 = vmatpush3.msra.mxu1 %v971_v20 }
  0xc3   : > { %2864 = vmatprep.subr.mxu1 %v970_v50 }
  0xc4   : > { %v3467_v51 = vsub.f32 %v3280_v40, %v591_v46  ;;  %v3470_v54 = vsub.f32 %v3283_v41, %v592_v47  ;;  %v721_v8 = vsel %vm473_vm0, %v653_v36, 0.0  ;;  %v724_v62 = vsel %vm473_vm0, %v654_v37, 0.0  ;;  %2865 = vmatpush3.msra.mxu1 %v970_v50 }
  0xc5   : > { %719 = vadd.xlane.f32.xlu1 %v718_v42  ;;  %722 = vadd.xlane.f32.xlu0 %v721_v8  ;;  %v542_v58 = vpop.xlane.xlu0 %541  ;;  %v545_v24 = vpop.xlane.xlu1 %544 }
  0xc6   : > { %v593_v3 = vmul.f32 0.03125, %v542_v58  ;;  %v594_v4 = vmul.f32 0.03125, %v545_v24  ;;  %v655_v40 = vmul.f32 %v3467_v51, %v3467_v51  ;;  %v656_v41 = vmul.f32 %v3470_v54, %v3470_v54  ;;  %2866 = vmatprep.subr.mxu1 %v969_v63 }
  0xc7   : > { %2867 = vmatpush3.msra.mxu1 %v969_v63 }
  0xc8   : > { %v3482_v6 = vsub.f32 %v3290_v44, %v593_v3  ;;  %v3485_v12 = vsub.f32 %v3293_v45, %v594_v4  ;;  %v727_v14 = vsel %vm473_vm0, %v655_v40, 0.0  ;;  %v730_v19 = vsel %vm473_vm0, %v656_v41, 0.0 }
  0xc9   : > { %725 = vadd.xlane.f32.xlu1 %v724_v62  ;;  %728 = vadd.xlane.f32.xlu0 %v727_v14  ;;  %v548_v28 = vpop.xlane.xlu0 %547  ;;  %v551_v18 = vpop.xlane.xlu1 %550 }
  0xca   : > { %v595_v22 = vmul.f32 0.03125, %v548_v28  ;;  %v596_v23 = vmul.f32 0.03125, %v551_v18  ;;  %v657_v0 = vmul.f32 %v3482_v6, %v3482_v6  ;;  %v658_v44 = vmul.f32 %v3485_v12, %v3485_v12 }
  0xcc   : > { %v3494_v45 = vsub.f32 %v3300_v48, %v595_v22  ;;  %v3497_v16 = vsub.f32 %v3303_v49, %v596_v23  ;;  %v733_v30 = vsel %vm473_vm0, %v657_v0, 0.0  ;;  %v736_v35 = vsel %vm473_vm0, %v658_v44, 0.0 }
  0xcd   : > { %731 = vadd.xlane.f32.xlu1 %v730_v19  ;;  %734 = vadd.xlane.f32.xlu0 %v733_v30  ;;  %v554_v32 = vpop.xlane.xlu0 %553  ;;  %v557_v33 = vpop.xlane.xlu1 %556 }
  0xce   : > { %v597_v38 = vmul.f32 0.03125, %v554_v32  ;;  %v598_v39 = vmul.f32 0.03125, %v557_v33  ;;  %v659_v42 = vmul.f32 %v3494_v45, %v3494_v45  ;;  %v660_v48 = vmul.f32 %v3497_v16, %v3497_v16 }
  0xd0   : > { %v3506_v20 = vsub.f32 %v3310_v52, %v597_v38  ;;  %v3509_v49 = vsub.f32 %v3313_v53, %v598_v39  ;;  %v739_v46 = vsel %vm473_vm0, %v659_v42, 0.0  ;;  %v742_v37 = vsel %vm473_vm0, %v660_v48, 0.0 }
  0xd1   : > { %737 = vadd.xlane.f32.xlu1 %v736_v35  ;;  %740 = vadd.xlane.f32.xlu0 %v739_v46  ;;  %v560_v47 = vpop.xlane.xlu0 %559  ;;  %v563_v36 = vpop.xlane.xlu1 %562 }
  0xd2   : > { %v599_v50 = vmul.f32 0.03125, %v560_v47  ;;  %v600_v8 = vmul.f32 0.03125, %v563_v36  ;;  %v661_v58 = vmul.f32 %v3506_v20, %v3506_v20  ;;  %v662_v52 = vmul.f32 %v3509_v49, %v3509_v49 }
  0xd4   : > { %v3518_v24 = vsub.f32 %v3320_v56, %v599_v50  ;;  %v3521_v53 = vsub.f32 %v3323_v57, %v600_v8  ;;  %v745_v62 = vsel %vm473_vm0, %v661_v58, 0.0  ;;  %v748_v4 = vsel %vm473_vm0, %v662_v52, 0.0 }
  0xd5   : > { %743 = vadd.xlane.f32.xlu1 %v742_v37  ;;  %746 = vadd.xlane.f32.xlu0 %v745_v62  ;;  %v566_v63 = vpop.xlane.xlu0 %565  ;;  %v569_v3 = vpop.xlane.xlu1 %568 }
  0xd6   : > { %v601_v40 = vmul.f32 0.03125, %v566_v63  ;;  %v602_v41 = vmul.f32 0.03125, %v569_v3  ;;  %v663_v14 = vmul.f32 %v3518_v24, %v3518_v24  ;;  %v664_v56 = vmul.f32 %v3521_v53, %v3521_v53 }
  0xd8   : > { %v3530_v28 = vsub.f32 %v3330_v60, %v601_v40  ;;  %v3533_v57 = vsub.f32 %v3333_v61, %v602_v41  ;;  %v751_v18 = vsel %vm473_vm0, %v663_v14, 0.0  ;;  %v754_v19 = vsel %vm473_vm0, %v664_v56, 0.0 }
  0xd9   : > { %749 = vadd.xlane.f32.xlu1 %v748_v4  ;;  %752 = vadd.xlane.f32.xlu0 %v751_v18  ;;  %v3546_v18 = vld [vmem:[%s4274_s2] ss:$0 sm:$0xff] }
  0xda   : > { %v665_v22 = vmul.f32 %v3530_v28, %v3530_v28  ;;  %v666_v23 = vmul.f32 %v3533_v57, %v3533_v57 }
  0xdc   : > { %v757_v0 = vsel %vm473_vm0, %v665_v22, 0.0  ;;  %v760_v60 = vsel %vm473_vm0, %v666_v23, 0.0 }
  0xdd   : > { %755 = vadd.xlane.f32.xlu1 %v754_v19  ;;  %758 = vadd.xlane.f32.xlu0 %v757_v0 }
  0xe1   : > { %761 = vadd.xlane.f32.xlu1 %v760_v60 }
 0x12a   : > { %v669_v61 = vpop.xlane.xlu0 %668 }
 0x12b   : > { %v763_v44 = vmul.f32 0.03125, %v669_v61  ;;  %v3552_v61 = vld [vmem:[%s4275_s3] ss:$0 sm:$0xff] }
 0x12d   : > { %v795_v30 = vadd.f32 1e-05, %v763_v44 }
 0x12e   : > { %v672_v32 = vpop.xlane.xlu1 %671  ;;  %v675_v33 = vpop.xlane.xlu0 %674 }
 0x12f   : > { %2985 = vrsqrt.f32 %v795_v30  ;;  %v764_v35 = vmul.f32 0.03125, %v672_v32  ;;  %v765_v38 = vmul.f32 0.03125, %v675_v33 }
 0x131   : > { %v796_v39 = vadd.f32 1e-05, %v764_v35  ;;  %v797_v42 = vadd.f32 1e-05, %v765_v38 }
 0x132   : > { %v678_v48 = vpop.xlane.xlu1 %677  ;;  %v681_v46 = vpop.xlane.xlu0 %680 }
 0x133   : > { %2987 = vrsqrt.f32 %v796_v39  ;;  %v766_v47 = vmul.f32 0.03125, %v678_v48  ;;  %v767_v36 = vmul.f32 0.03125, %v681_v46 }
 0x134   : > { %2989 = vrsqrt.f32 %v797_v42 }
 0x135   : > { %v798_v37 = vadd.f32 1e-05, %v766_v47  ;;  %v799_v50 = vadd.f32 1e-05, %v767_v36 }
 0x136   : > { %v684_v8 = vpop.xlane.xlu1 %683  ;;  %v687_v58 = vpop.xlane.xlu0 %686 }
 0x137   : > { %2991 = vrsqrt.f32 %v798_v37  ;;  %v768_v52 = vmul.f32 0.03125, %v684_v8  ;;  %v769_v62 = vmul.f32 0.03125, %v687_v58 }
 0x138   : > { %2993 = vrsqrt.f32 %v799_v50 }
 0x139   : > { %v800_v63 = vadd.f32 1e-05, %v768_v52  ;;  %v801_v3 = vadd.f32 1e-05, %v769_v62 }
 0x13a   : > { %v690_v4 = vpop.xlane.xlu1 %689  ;;  %v693_v40 = vpop.xlane.xlu0 %692 }
 0x13b   : > { %2995 = vrsqrt.f32 %v800_v63  ;;  %v770_v41 = vmul.f32 0.03125, %v690_v4  ;;  %v771_v14 = vmul.f32 0.03125, %v693_v40 }
 0x13c   : > { %v2986_v56 = vpop.eup %2985  ;;  %2997 = vrsqrt.f32 %v801_v3 }
 0x13d   : > { %v802_v19 = vadd.f32 1e-05, %v770_v41  ;;  %v803_v22 = vadd.f32 1e-05, %v771_v14  ;;  %v859_v23 = vmul.f32 %v2986_v56, %v3340_v10 }
 0x13e   : > { %v696_v0 = vpop.xlane.xlu1 %695  ;;  %v699_v60 = vpop.xlane.xlu0 %698 }
 0x13f   : > { %2999 = vrsqrt.f32 %v802_v19  ;;  %v772_v44 = vmul.f32 0.03125, %v696_v0  ;;  %v773_v30 = vmul.f32 0.03125, %v699_v60  ;;  %v898_v32 = vmul.f32 %v3546_v18, %v859_v23 }
 0x140   : > { %v2988_v33 = vpop.eup %2987  ;;  %3001 = vrsqrt.f32 %v803_v22 }
 0x141   : > { %v2990_v35 = vpop.eup %2989  ;;  %v804_v38 = vadd.f32 1e-05, %v772_v44  ;;  %v805_v39 = vadd.f32 1e-05, %v773_v30  ;;  %v937_v42 = vadd.f32 %v3552_v61, %v898_v32  ;;  %v860_v10 = vmul.f32 %v2988_v33, %v3350_v26 }
 0x142   : > { %v702_v48 = vpop.xlane.xlu1 %701  ;;  %v705_v46 = vpop.xlane.xlu0 %704  ;;  %v861_v47 = vmul.f32 %v2990_v35, %v3343_v11 }
 0x143   : > { %3003 = vrsqrt.f32 %v804_v38  ;;  %v774_v36 = vmul.f32 0.03125, %v702_v48  ;;  %v775_v37 = vmul.f32 0.03125, %v705_v46  ;;  %2868 = vmatprep.mubr.msk.f32.mxu1 %vm473_vm0, %v937_v42  ;;  %v899_v50 = vmul.f32 %v3546_v18, %v860_v10 }
 0x144   : > { %v2992_v8 = vpop.eup %2991  ;;  %3005 = vrsqrt.f32 %v805_v39  ;;  %v900_v58 = vmul.f32 %v3546_v18, %v861_v47 }
 0x145   : > { %v2994_v52 = vpop.eup %2993  ;;  %v806_v62 = vadd.f32 1e-05, %v774_v36  ;;  %v807_v63 = vadd.f32 1e-05, %v775_v37  ;;  %v938_v26 = vadd.f32 %v3552_v61, %v899_v50  ;;  %v862_v3 = vmul.f32 %v2992_v8, %v3353_v27 }
 0x146   : > { %v708_v4 = vpop.xlane.xlu1 %707  ;;  %v711_v11 = vpop.xlane.xlu0 %710  ;;  %v939_v40 = vadd.f32 %v3552_v61, %v900_v58  ;;  %v863_v41 = vmul.f32 %v2994_v52, %v3362_v2 }
 0x147   : > { %3007 = vrsqrt.f32 %v806_v62  ;;  %v776_v14 = vmul.f32 0.03125, %v708_v4  ;;  %v777_v56 = vmul.f32 0.03125, %v711_v11  ;;  %2869 = vmatmul.mubr.msk.f32.vlgmr.msra.gmra.mxu1 %vm473_vm0, %v938_v26  ;;  %v901_v19 = vmul.f32 %v3546_v18, %v862_v3 }
 0x148   : > { %v2996_v22 = vpop.eup %2995  ;;  %3009 = vrsqrt.f32 %v807_v63  ;;  %2871 = vmatprep.mubr.msk.f32.mxu1 %vm473_vm0, %v939_v40  ;;  %v902_v23 = vmul.f32 %v3546_v18, %v863_v41 }
 0x149   : > { %v2998_v27 = vpop.eup %2997  ;;  %v808_v0 = vadd.f32 1e-05, %v776_v14  ;;  %v809_v60 = vadd.f32 1e-05, %v777_v56  ;;  %v940_v44 = vadd.f32 %v3552_v61, %v901_v19  ;;  %v864_v2 = vmul.f32 %v2996_v22, %v3365_v5 }
 0x14a   : > { %v714_v30 = vpop.xlane.xlu1 %713  ;;  %v717_v32 = vpop.xlane.xlu0 %716  ;;  %v941_v33 = vadd.f32 %v3552_v61, %v902_v23  ;;  %v865_v35 = vmul.f32 %v2998_v27, %v3374_v55 }
 0x14b   : > { %3011 = vrsqrt.f32 %v808_v0  ;;  %v778_v38 = vmul.f32 0.03125, %v714_v30  ;;  %v779_v39 = vmul.f32 0.03125, %v717_v32  ;;  %2872 = vmatmul.mubr.msk.f32.gmra.mxu1 %vm473_vm0, %v940_v44  ;;  %v903_v42 = vmul.f32 %v3546_v18, %v864_v2 }
 0x14c   : > { %v3000_v10 = vpop.eup %2999  ;;  %3013 = vrsqrt.f32 %v809_v60  ;;  %2874 = vmatprep.mubr.msk.f32.mxu1 %vm473_vm0, %v941_v33  ;;  %v904_v48 = vmul.f32 %v3546_v18, %v865_v35 }
 0x14d   : > { %v3002_v5 = vpop.eup %3001  ;;  %v810_v46 = vadd.f32 1e-05, %v778_v38  ;;  %v811_v47 = vadd.f32 1e-05, %v779_v39  ;;  %v942_v36 = vadd.f32 %v3552_v61, %v903_v42  ;;  %v866_v55 = vmul.f32 %v3000_v10, %v3377_v9 }
 0x14e   : > { %v720_v37 = vpop.xlane.xlu1 %719  ;;  %v723_v50 = vpop.xlane.xlu0 %722  ;;  %v943_v8 = vadd.f32 %v3552_v61, %v904_v48  ;;  %v867_v58 = vmul.f32 %v3002_v5, %v3386_v7 }
 0x14f   : > { %3015 = vrsqrt.f32 %v810_v46  ;;  %v780_v52 = vmul.f32 0.03125, %v720_v37  ;;  %v781_v62 = vmul.f32 0.03125, %v723_v50  ;;  %2875 = vmatmul.mubr.msk.f32.gmra.mxu1 %vm473_vm0, %v942_v36  ;;  %v905_v63 = vmul.f32 %v3546_v18, %v866_v55 }
 0x150   : > { %v3004_v26 = vpop.eup %3003  ;;  %3017 = vrsqrt.f32 %v811_v47  ;;  %2877 = vmatprep.mubr.msk.f32.mxu1 %vm473_vm0, %v943_v8  ;;  %v906_v3 = vmul.f32 %v3546_v18, %v867_v58 }
 0x151   : > { %v3006_v9 = vpop.eup %3005  ;;  %v812_v4 = vadd.f32 1e-05, %v780_v52  ;;  %v813_v11 = vadd.f32 1e-05, %v781_v62  ;;  %v944_v40 = vadd.f32 %v3552_v61, %v905_v63  ;;  %v868_v7 = vmul.f32 %v3004_v26, %v3389_v13 }
 0x152   : > { %v726_v41 = vpop.xlane.xlu1 %725  ;;  %v729_v14 = vpop.xlane.xlu0 %728  ;;  %v945_v56 = vadd.f32 %v3552_v61, %v906_v3  ;;  %v869_v19 = vmul.f32 %v3006_v9, %v3398_v1 }
 0x153   : > { %3019 = vrsqrt.f32 %v812_v4  ;;  %v782_v22 = vmul.f32 0.03125, %v726_v41  ;;  %v783_v23 = vmul.f32 0.03125, %v729_v14  ;;  %2878 = vmatmul.mubr.msk.f32.gmra.mxu1 %vm473_vm0, %v944_v40  ;;  %v907_v27 = vmul.f32 %v3546_v18, %v868_v7 }
 0x154   : > { %v3008_v0 = vpop.eup %3007  ;;  %3021 = vrsqrt.f32 %v813_v11  ;;  %2880 = vmatprep.mubr.msk.f32.mxu1 %vm473_vm0, %v945_v56  ;;  %v908_v60 = vmul.f32 %v3546_v18, %v869_v19 }
 0x155   : > { %v3010_v13 = vpop.eup %3009  ;;  %v814_v44 = vadd.f32 1e-05, %v782_v22  ;;  %v815_v2 = vadd.f32 1e-05, %v783_v23  ;;  %v946_v30 = vadd.f32 %v3552_v61, %v907_v27  ;;  %v870_v1 = vmul.f32 %v3008_v0, %v3401_v17 }
 0x156   : > { %v732_v32 = vpop.xlane.xlu1 %731  ;;  %v735_v33 = vpop.xlane.xlu0 %734  ;;  %v947_v35 = vadd.f32 %v3552_v61, %v908_v60  ;;  %v871_v38 = vmul.f32 %v3010_v13, %v3410_v43 }
 0x157   : > { %3023 = vrsqrt.f32 %v814_v44  ;;  %v784_v39 = vmul.f32 0.03125, %v732_v32  ;;  %v785_v42 = vmul.f32 0.03125, %v735_v33  ;;  %2881 = vmatmul.mubr.msk.f32.gmra.mxu1 %vm473_vm0, %v946_v30  ;;  %v909_v10 = vmul.f32 %v3546_v18, %v870_v1 }
 0x158   : > { %v3012_v48 = vpop.eup %3011  ;;  %3025 = vrsqrt.f32 %v815_v2  ;;  %2883 = vmatprep.mubr.msk.f32.mxu1 %vm473_vm0, %v947_v35  ;;  %v910_v5 = vmul.f32 %v3546_v18, %v871_v38 }
 0x159   : > { %v3014_v17 = vpop.eup %3013  ;;  %v816_v46 = vadd.f32 1e-05, %v784_v39  ;;  %v817_v47 = vadd.f32 1e-05, %v785_v42  ;;  %v948_v36 = vadd.f32 %v3552_v61, %v909_v10  ;;  %v872_v43 = vmul.f32 %v3012_v48, %v3413_v21 }
 0x15a   : > { %v738_v55 = vpop.xlane.xlu1 %737  ;;  %v741_v37 = vpop.xlane.xlu0 %740  ;;  %v949_v50 = vadd.f32 %v3552_v61, %v910_v5  ;;  %v873_v8 = vmul.f32 %v3014_v17, %v3422_v59 }
 0x15b   : > { %3027 = vrsqrt.f32 %v816_v46  ;;  %v786_v58 = vmul.f32 0.03125, %v738_v55  ;;  %v787_v52 = vmul.f32 0.03125, %v741_v37  ;;  %2884 = vmatmul.mubr.msk.f32.gmra.mxu1 %vm473_vm0, %v948_v36  ;;  %v911_v62 = vmul.f32 %v3546_v18, %v872_v43 }
 0x15c   : > { %v3016_v63 = vpop.eup %3015  ;;  %3029 = vrsqrt.f32 %v817_v47  ;;  %2886 = vmatprep.mubr.msk.f32.mxu1 %vm473_vm0, %v949_v50  ;;  %v912_v26 = vmul.f32 %v3546_v18, %v873_v8 }
 0x15d   : > { %v3018_v21 = vpop.eup %3017  ;;  %v818_v3 = vadd.f32 1e-05, %v786_v58  ;;  %v819_v9 = vadd.f32 1e-05, %v787_v52  ;;  %v950_v4 = vadd.f32 %v3552_v61, %v911_v62  ;;  %v874_v59 = vmul.f32 %v3016_v63, %v3425_v25 }
 0x15e   : > { %v744_v11 = vpop.xlane.xlu1 %743  ;;  %v747_v40 = vpop.xlane.xlu0 %746  ;;  %v951_v7 = vadd.f32 %v3552_v61, %v912_v26  ;;  %v875_v41 = vmul.f32 %v3018_v21, %v3434_v15 }
 0x15f   : > { %3031 = vrsqrt.f32 %v818_v3  ;;  %v788_v14 = vmul.f32 0.03125, %v744_v11  ;;  %v789_v56 = vmul.f32 0.03125, %v747_v40  ;;  %2887 = vmatmul.mubr.msk.f32.gmra.mxu1 %vm473_vm0, %v950_v4  ;;  %v913_v19 = vmul.f32 %v3546_v18, %v874_v59 }
 0x160   : > { %v3020_v22 = vpop.eup %3019  ;;  %3033 = vrsqrt.f32 %v819_v9  ;;  %2889 = vmatprep.mubr.msk.f32.mxu1 %vm473_vm0, %v951_v7  ;;  %v914_v23 = vmul.f32 %v3546_v18, %v875_v41 }
 0x161   : > { %v3022_v25 = vpop.eup %3021  ;;  %v820_v27 = vadd.f32 1e-05, %v788_v14  ;;  %v821_v0 = vadd.f32 1e-05, %v789_v56  ;;  %v952_v60 = vadd.f32 %v3552_v61, %v913_v19  ;;  %v876_v15 = vmul.f32 %v3020_v22, %v3437_v29 }
 0x162   : > { %v750_v13 = vpop.xlane.xlu1 %749  ;;  %v753_v44 = vpop.xlane.xlu0 %752  ;;  %v953_v2 = vadd.f32 %v3552_v61, %v914_v23  ;;  %v877_v30 = vmul.f32 %v3022_v25, %v3449_v31 }
 0x163   : > { %3035 = vrsqrt.f32 %v820_v27  ;;  %v790_v1 = vmul.f32 0.03125, %v750_v13  ;;  %v791_v32 = vmul.f32 0.03125, %v753_v44  ;;  %2890 = vmatmul.mubr.msk.f32.gmra.mxu1 %vm473_vm0, %v952_v60  ;;  %v915_v33 = vmul.f32 %v3546_v18, %v876_v15 }
 0x164   : > { %v3024_v35 = vpop.eup %3023  ;;  %3037 = vrsqrt.f32 %v821_v0  ;;  %2892 = vmatprep.mubr.msk.f32.mxu1 %vm473_vm0, %v953_v2  ;;  %v916_v38 = vmul.f32 %v3546_v18, %v877_v30 }
 0x165   : > { %v3026_v29 = vpop.eup %3025  ;;  %v822_v39 = vadd.f32 1e-05, %v790_v1  ;;  %v823_v42 = vadd.f32 1e-05, %v791_v32  ;;  %v954_v10 = vadd.f32 %v3552_v61, %v915_v33  ;;  %v878_v31 = vmul.f32 %v3024_v35, %v3452_v34 }
 0x166   : > { %v756_v48 = vpop.xlane.xlu1 %755  ;;  %v759_v5 = vpop.xlane.xlu0 %758  ;;  %v955_v17 = vadd.f32 %v3552_v61, %v916_v38  ;;  %v879_v46 = vmul.f32 %v3026_v29, %v3467_v51 }
 0x167   : > { %3039 = vrsqrt.f32 %v822_v39  ;;  %v792_v47 = vmul.f32 0.03125, %v756_v48  ;;  %v793_v36 = vmul.f32 0.03125, %v759_v5  ;;  %2893 = vmatmul.mubr.msk.f32.gmra.mxu1 %vm473_vm0, %v954_v10  ;;  %v917_v43 = vmul.f32 %v3546_v18, %v878_v31  ;;  %v3684_v10 = vld [vmem:[%s4273_s1] sm:$0xff] }
 0x168   : > { %v3028_v55 = vpop.eup %3027  ;;  %3041 = vrsqrt.f32 %v823_v42  ;;  %2895 = vmatprep.mubr.msk.f32.mxu1 %vm473_vm0, %v955_v17  ;;  %v918_v37 = vmul.f32 %v3546_v18, %v879_v46 }
 0x169   : > { %v3030_v34 = vpop.eup %3029  ;;  %v824_v50 = vadd.f32 1e-05, %v792_v47  ;;  %v825_v8 = vadd.f32 1e-05, %v793_v36  ;;  %v956_v58 = vadd.f32 %v3552_v61, %v917_v43  ;;  %v880_v51 = vmul.f32 %v3028_v55, %v3470_v54 }
 0x16a   : > { %v762_v52 = vpop.xlane.xlu1 %761  ;;  %v957_v62 = vadd.f32 %v3552_v61, %v918_v37  ;;  %v881_v63 = vmul.f32 %v3030_v34, %v3482_v6 }
 0x16b   : > { %3043 = vrsqrt.f32 %v824_v50  ;;  %v794_v26 = vmul.f32 0.03125, %v762_v52  ;;  %2896 = vmatmul.mubr.msk.f32.gmra.mxu1 %vm473_vm0, %v956_v58  ;;  %v919_v21 = vmul.f32 %v3546_v18, %v880_v51 }
 0x16c   : > { %v3032_v3 = vpop.eup %3031  ;;  %3045 = vrsqrt.f32 %v825_v8  ;;  %2898 = vmatprep.mubr.msk.f32.mxu1 %vm473_vm0, %v957_v62  ;;  %v920_v9 = vmul.f32 %v3546_v18, %v881_v63 }
 0x16d   : > { %v3034_v4 = vpop.eup %3033  ;;  %v826_v59 = vadd.f32 1e-05, %v794_v26  ;;  %v958_v54 = vadd.f32 %v3552_v61, %v919_v21  ;;  %v882_v11 = vmul.f32 %v3032_v3, %v3485_v12 }
 0x16e   : > { %v959_v6 = vadd.f32 %v3552_v61, %v920_v9  ;;  %v883_v40 = vmul.f32 %v3034_v4, %v3494_v45 }
 0x16f   : > { %3047 = vrsqrt.f32 %v826_v59  ;;  %2899 = vmatmul.mubr.msk.f32.gmra.mxu1 %vm473_vm0, %v958_v54  ;;  %v921_v7 = vmul.f32 %v3546_v18, %v882_v11 }
 0x170   : > { %v3036_v41 = vpop.eup %3035  ;;  %2901 = vmatprep.mubr.msk.f32.mxu1 %vm473_vm0, %v959_v6  ;;  %v922_v14 = vmul.f32 %v3546_v18, %v883_v40 }
 0x171   : > { %v3038_v56 = vpop.eup %3037  ;;  %v960_v19 = vadd.f32 %v3552_v61, %v921_v7  ;;  %v884_v22 = vmul.f32 %v3036_v41, %v3497_v16  ;;  %v1295_v41 = vld [vmem:[%s4273_s1 + $0x8] sm:$0x3] }
 0x172   : > { %v961_v12 = vadd.f32 %v3552_v61, %v922_v14  ;;  %v885_v23 = vmul.f32 %v3038_v56, %v3506_v20 }
 0x173   : > { %2902 = vmatmul.mubr.msk.f32.gmra.mxu1 %vm473_vm0, %v960_v19  ;;  %v923_v45 = vmul.f32 %v3546_v18, %v884_v22 }
 0x174   : > { %v3040_v25 = vpop.eup %3039  ;;  %2904 = vmatprep.mubr.msk.f32.mxu1 %vm473_vm0, %v961_v12  ;;  %v924_v27 = vmul.f32 %v3546_v18, %v885_v23 }
 0x175   : > { %v3042_v0 = vpop.eup %3041  ;;  %v962_v60 = vadd.f32 %v3552_v61, %v923_v45  ;;  %v886_v15 = vmul.f32 %v3040_v25, %v3509_v49 }
 0x176   : > { %v963_v16 = vadd.f32 %v3552_v61, %v924_v27  ;;  %v887_v13 = vmul.f32 %v3042_v0, %v3518_v24 }
 0x177   : > { %2905 = vmatmul.mubr.msk.f32.gmra.mxu1 %vm473_vm0, %v962_v60  ;;  %v925_v20 = vmul.f32 %v3546_v18, %v886_v15 }
 0x178   : > { %v3044_v44 = vpop.eup %3043  ;;  %2907 = vmatprep.mubr.msk.f32.mxu1 %vm473_vm0, %v963_v16  ;;  %v926_v2 = vmul.f32 %v3546_v18, %v887_v13 }
 0x179   : > { %v3046_v30 = vpop.eup %3045  ;;  %v964_v1 = vadd.f32 %v3552_v61, %v925_v20  ;;  %v888_v32 = vmul.f32 %v3044_v44, %v3521_v53 }
 0x17a   : > { %v965_v49 = vadd.f32 %v3552_v61, %v926_v2  ;;  %v889_v33 = vmul.f32 %v3046_v30, %v3530_v28 }
 0x17b   : > { %2908 = vmatmul.mubr.msk.f32.gmra.mxu1 %vm473_vm0, %v964_v1  ;;  %v927_v24 = vmul.f32 %v3546_v18, %v888_v32 }
 0x17c   : > { %v3048_v35 = vpop.eup %3047  ;;  %2910 = vmatprep.mubr.msk.f32.mxu1 %vm473_vm0, %v965_v49  ;;  %v928_v38 = vmul.f32 %v3546_v18, %v889_v33 }
 0x17d   : > { %v966_v29 = vadd.f32 %v3552_v61, %v927_v24  ;;  %v890_v39 = vmul.f32 %v3048_v35, %v3533_v57 }
 0x17e   : > { %v967_v42 = vadd.f32 %v3552_v61, %v928_v38 }
 0x17f   : > { %2911 = vmatmul.mubr.msk.f32.gmra.mxu1 %vm473_vm0, %v966_v29  ;;  %v929_v53 = vmul.f32 %v3546_v18, %v890_v39 }
 0x180   : > { %2913 = vmatprep.mubr.msk.f32.mxu1 %vm473_vm0, %v967_v42 }
 0x181   : > { %v968_v28 = vadd.f32 %v3552_v61, %v929_v53 }
 0x183   : > { %2914 = vmatmul.mubr.msk.f32.gmra.mxu1 %vm473_vm0, %v968_v28 }
 0x184   : > { %2714 = vmatprep.mubr.msk.f32.mxu1 %vm1296_vm1, %v3684_v10 }
 0x207   : > { %v3688_v57 = vpop.f32.mrf.mxu1 }
 0x209   : > { %v3690_v31 = vpop.f32.mrf.mxu1 }
 0x20b   : > { %v3692_v18 = vpop.f32.mrf.mxu1 }
 0x20d   : > { %v3694_v48 = vpop.f32.mrf.mxu1 }
 0x20f   : > { %v3696_v61 = vpop.f32.mrf.mxu1 }
 0x211   : > { %v3698_v5 = vpop.f32.mrf.mxu1 }
 0x213   : > { %v3700_v17 = vpop.f32.mrf.mxu1 }
 0x215   : > { %v3702_v46 = vpop.f32.mrf.mxu1 }
 0x217   : > { %v3704_v47 = vpop.f32.mrf.mxu1 }
 0x219   : > { %v3706_v36 = vpop.f32.mrf.mxu1 }
 0x21b   : > { %v3708_v43 = vpop.f32.mrf.mxu1 }
 0x21d   : > { %v3710_v55 = vpop.f32.mrf.mxu1 }
 0x21f   : > { %v3712_v37 = vpop.f32.mrf.mxu1 }
 0x221   : > { %v3714_v34 = vpop.f32.mrf.mxu1 }
 0x223   : > { %v3716_v50 = vpop.f32.mrf.mxu1 }
 0x224   : > { %1720 = vrot.lane.b32.xlu1 %v3716_v50, %s3089_s30 }
 0x225   : > { %v3720_v8 = vpop.f32.mrf.mxu1 }
 0x227   : > { %v3722_v58 = vpop.f32.mrf.mxu1 }
 0x229   : > { %v3724_v51 = vpop.f32.mrf.mxu1 }
 0x22b   : > { %v3726_v52 = vpop.f32.mrf.mxu1 }
 0x22d   : > { %v3728_v62 = vpop.f32.mrf.mxu1 }
 0x22f   : > { %v3730_v63 = vpop.f32.mrf.mxu1 }
 0x231   : > { %v3732_v26 = vpop.f32.mrf.mxu1 }
 0x233   : > { %v3734_v21 = vpop.f32.mrf.mxu1 }
 0x235   : > { %v3736_v3 = vpop.f32.mrf.mxu1 }
 0x237   : > { %v3738_v9 = vpop.f32.mrf.mxu1 }
 0x239   : > { %v3740_v4 = vpop.f32.mrf.mxu1 }
 0x23b   : > { %v3742_v59 = vpop.f32.mrf.mxu1 }
 0x23d   : > { %v3744_v54 = vpop.f32.mrf.mxu1 }
 0x23f   : > { %v3746_v11 = vpop.f32.mrf.mxu1 }
 0x241   : > { %v3748_v6 = vpop.f32.mrf.mxu1 }
 0x243   : > { %v3750_v40 = vpop.f32.mrf.mxu1 }
 0x244   : > { %1752 = vrot.lane.b32.xlu0 %v3750_v40, %s3089_s30  ;;  %2682 = vmatprep.subr.msk.mxu1 %vm1296_vm1, %v3750_v40 }
 0x245   : > { %v3756_v7 = vpop.f32.mrf.mxu1  ;;  %2683 = vmatpush3.xpose.msk.msra.mxu1 %vm1296_vm1, %v3716_v50 }
 0x246   : > { %1750 = vrot.lane.b32.xlu1 %v3756_v7, %s3089_s30  ;;  %2684 = vmatprep.subr.msk.mxu1 %vm1296_vm1, %v3756_v7 }
 0x248   : > { %1748 = vrot.lane.b32.xlu0 %v3746_v11, %s3089_s30 }
 0x249   : > { %2685 = vmatpush3.xpose.msk.msra.mxu1 %vm1296_vm1, %v3720_v8 }
 0x24a   : > { %1718 = vrot.lane.b32.xlu1 %v3720_v8, %s3089_s30  ;;  %2686 = vmatprep.subr.msk.mxu1 %vm1296_vm1, %v3746_v11 }
 0x24c   : > { %1746 = vrot.lane.b32.xlu0 %v3748_v6, %s3089_s30 }
 0x24d   : > { %2687 = vmatpush3.xpose.msk.msra.mxu1 %vm1296_vm1, %v3712_v37 }
 0x24e   : > { %1716 = vrot.lane.b32.xlu1 %v3712_v37, %s3089_s30  ;;  %2688 = vmatprep.subr.msk.mxu1 %vm1296_vm1, %v3748_v6 }
 0x250   : > { %1744 = vrot.lane.b32.xlu0 %v3742_v59, %s3089_s30 }
 0x251   : > { %2689 = vmatpush3.xpose.msk.msra.mxu1 %vm1296_vm1, %v3714_v34 }
 0x252   : > { %1714 = vrot.lane.b32.xlu1 %v3714_v34, %s3089_s30  ;;  %2690 = vmatprep.subr.msk.mxu1 %vm1296_vm1, %v3742_v59 }
 0x254   : > { %1742 = vrot.lane.b32.xlu0 %v3744_v54, %s3089_s30 }
 0x255   : > { %2691 = vmatpush3.xpose.msk.msra.mxu1 %vm1296_vm1, %v3708_v43 }
 0x256   : > { %1712 = vrot.lane.b32.xlu1 %v3708_v43, %s3089_s30  ;;  %2692 = vmatprep.subr.msk.mxu1 %vm1296_vm1, %v3744_v54 }
 0x258   : > { %1740 = vrot.lane.b32.xlu0 %v3738_v9, %s3089_s30 }
 0x259   : > { %2693 = vmatpush3.xpose.msk.msra.mxu1 %vm1296_vm1, %v3710_v55 }
 0x25a   : > { %1710 = vrot.lane.b32.xlu1 %v3710_v55, %s3089_s30  ;;  %2694 = vmatprep.subr.msk.mxu1 %vm1296_vm1, %v3738_v9 }
 0x25c   : > { %1738 = vrot.lane.b32.xlu0 %v3740_v4, %s3089_s30 }
 0x25d   : > { %2695 = vmatpush3.xpose.msk.msra.mxu1 %vm1296_vm1, %v3704_v47 }
 0x25e   : > { %1708 = vrot.lane.b32.xlu1 %v3704_v47, %s3089_s30  ;;  %2696 = vmatprep.subr.msk.mxu1 %vm1296_vm1, %v3740_v4 }
 0x260   : > { %1736 = vrot.lane.b32.xlu0 %v3734_v21, %s3089_s30 }
 0x261   : > { %2697 = vmatpush3.xpose.msk.msra.mxu1 %vm1296_vm1, %v3706_v36 }
 0x262   : > { %1706 = vrot.lane.b32.xlu1 %v3706_v36, %s3089_s30  ;;  %2698 = vmatprep.subr.msk.mxu1 %vm1296_vm1, %v3734_v21 }
 0x264   : > { %1734 = vrot.lane.b32.xlu0 %v3736_v3, %s3089_s30 }
 0x265   : > { %2699 = vmatpush3.xpose.msk.msra.mxu1 %vm1296_vm1, %v3700_v17 }
 0x266   : > { %1704 = vrot.lane.b32.xlu1 %v3700_v17, %s3089_s30  ;;  %2700 = vmatprep.subr.msk.mxu1 %vm1296_vm1, %v3736_v3 }
 0x268   : > { %1732 = vrot.lane.b32.xlu0 %v3730_v63, %s3089_s30 }
 0x269   : > { %2701 = vmatpush3.xpose.msk.msra.mxu1 %vm1296_vm1, %v3702_v46 }
 0x26a   : > { %1702 = vrot.lane.b32.xlu1 %v3702_v46, %s3089_s30  ;;  %2702 = vmatprep.subr.msk.mxu1 %vm1296_vm1, %v3730_v63 }
 0x26c   : > { %1730 = vrot.lane.b32.xlu0 %v3732_v26, %s3089_s30 }
 0x26d   : > { %2703 = vmatpush3.xpose.msk.msra.mxu1 %vm1296_vm1, %v3696_v61 }
 0x26e   : > { %1700 = vrot.lane.b32.xlu1 %v3696_v61, %s3089_s30  ;;  %2704 = vmatprep.subr.msk.mxu1 %vm1296_vm1, %v3732_v26 }
 0x270   : > { %1728 = vrot.lane.b32.xlu0 %v3726_v52, %s3089_s30 }
 0x271   : > { %2705 = vmatpush3.xpose.msk.msra.mxu1 %vm1296_vm1, %v3698_v5 }
 0x272   : > { %1698 = vrot.lane.b32.xlu1 %v3698_v5, %s3089_s30  ;;  %2706 = vmatprep.subr.msk.mxu1 %vm1296_vm1, %v3726_v52 }
 0x274   : > { %1726 = vrot.lane.b32.xlu0 %v3728_v62, %s3089_s30 }
 0x275   : > { %2707 = vmatpush3.xpose.msk.msra.mxu1 %vm1296_vm1, %v3692_v18 }
 0x276   : > { %1696 = vrot.lane.b32.xlu1 %v3692_v18, %s3089_s30  ;;  %2708 = vmatprep.subr.msk.mxu1 %vm1296_vm1, %v3728_v62 }
 0x278   : > { %1724 = vrot.lane.b32.xlu0 %v3722_v58, %s3089_s30 }
 0x279   : > { %2709 = vmatpush3.xpose.msk.msra.mxu1 %vm1296_vm1, %v3694_v48 }
 0x27a   : > { %1694 = vrot.lane.b32.xlu1 %v3694_v48, %s3089_s30  ;;  %2710 = vmatprep.subr.msk.mxu1 %vm1296_vm1, %v3722_v58 }
 0x27c   : > { %1722 = vrot.lane.b32.xlu0 %v3724_v51, %s3089_s30 }
 0x27d   : > { %2711 = vmatpush3.xpose.msk.msra.mxu1 %vm1296_vm1, %v3688_v57 }
 0x27e   : > { %1692 = vrot.lane.b32.xlu1 %v3688_v57, %s3089_s30  ;;  %2712 = vmatprep.subr.msk.mxu1 %vm1296_vm1, %v3724_v51 }
 0x280   : > { %1686 = vrot.lane.b32.xlu0 %v3684_v10, %s3089_s30 }
 0x281   : > { %2713 = vmatpush3.xpose.msk.msra.mxu1 %vm1296_vm1, %v3690_v31 }
 0x282   : > { %1690 = vrot.lane.b32.xlu1 %v3690_v31, %s3089_s30 }
 0x284   : > { %1577 = vrot.lane.b32.xlu0 %v3750_v40, %s3090_s16  ;;  %2715 = vmatmul.mubr.msk.f32.vlgmr.msra.gmra.mxu1 %vm1296_vm1, %v3684_v10 }
 0x285   : > { %2716 = vmatprep.mubr.msk.f32.mxu1 %vm1296_vm1, %v1295_v41 }
 0x286   : > { %1688 = vrot.lane.b32.xlu1 %v1295_v41, %s3089_s30 }
 0x288   : > { %1535 = vrot.lane.b32.xlu0 %v3710_v55, %s3090_s16  ;;  %2717 = vmatmul.mubr.msk.f32.gmra.mxu1 %vm1296_vm1, %v1295_v41 }
 0x28a   : > { %1545 = vrot.lane.b32.xlu1 %v3716_v50, %s3090_s16 }
 0x28c   : > { %1559 = vrot.lane.b32.xlu0 %v3736_v3, %s3090_s16 }
 0x28e   : > { %1543 = vrot.lane.b32.xlu1 %v3720_v8, %s3090_s16 }
 0x290   : > { %1557 = vrot.lane.b32.xlu0 %v3730_v63, %s3090_s16 }
 0x292   : > { %1573 = vrot.lane.b32.xlu1 %v3746_v11, %s3090_s16 }
 0x294   : > { %1555 = vrot.lane.b32.xlu0 %v3732_v26, %s3090_s16 }
 0x296   : > { %1541 = vrot.lane.b32.xlu1 %v3712_v37, %s3090_s16  ;;  %v1721_v14 = vpop.permute.xlu1 %1720 }
 0x298   : > { %1553 = vrot.lane.b32.xlu0 %v3726_v52, %s3090_s16 }
 0x29a   : > { %1571 = vrot.lane.b32.xlu1 %v3748_v6, %s3090_s16 }
 0x29c   : > { %1551 = vrot.lane.b32.xlu0 %v3728_v62, %s3090_s16 }
 0x29e   : > { %1539 = vrot.lane.b32.xlu1 %v3714_v34, %s3090_s16 }
 0x2a0   : > { %1549 = vrot.lane.b32.xlu0 %v3722_v58, %s3090_s16 }
 0x2a2   : > { %1569 = vrot.lane.b32.xlu1 %v3742_v59, %s3090_s16 }
 0x2a4   : > { %1547 = vrot.lane.b32.xlu0 %v3724_v51, %s3090_s16 }
 0x2a6   : > { %1537 = vrot.lane.b32.xlu1 %v3708_v43, %s3090_s16 }
 0x2a8   : > { %1515 = vrot.lane.b32.xlu0 %v3690_v31, %s3090_s16 }
 0x2aa   : > { %1567 = vrot.lane.b32.xlu1 %v3744_v54, %s3090_s16 }
 0x2ac   : > { %1999 = vrot.lane.b32.xlu0 %v3750_v40, %s3091_s17 }
 0x2ae   : > { %1565 = vrot.lane.b32.xlu1 %v3738_v9, %s3090_s16 }
 0x2b0   : > { %1967 = vrot.lane.b32.xlu0 %v3716_v50, %s3091_s17 }
 0x2b2   : > { %1533 = vrot.lane.b32.xlu1 %v3704_v47, %s3090_s16 }
 0x2b4   : > { %1995 = vrot.lane.b32.xlu0 %v3746_v11, %s3091_s17 }
 0x2b6   : > { %v1753_v56 = vpop.permute.xlu0 %1752  ;;  %1563 = vrot.lane.b32.xlu1 %v3740_v4, %s3090_s16 }
 0x2b7   : > { %2756 = vmatprep.subr.msk.mxu1 %vm1296_vm1, %v1753_v56 }
 0x2b8   : > { %1997 = vrot.lane.b32.xlu0 %v3756_v7, %s3091_s17  ;;  %v1751_v19 = vpop.permute.xlu1 %1750  ;;  %2757 = vmatpush3.xpose.msk.msra.mxu1 %vm1296_vm1, %v1721_v14 }
 0x2b9   : > { %2758 = vmatprep.subr.msk.mxu1 %vm1296_vm1, %v1751_v19 }
 0x2ba   : > { %v1749_v22 = vpop.permute.xlu0 %1748  ;;  %1531 = vrot.lane.b32.xlu1 %v3706_v36, %s3090_s16 }
 0x2bc   : > { %v1719_v12 = vpop.permute.xlu1 %1718 }
 0x2bd   : > { %2759 = vmatpush3.xpose.msk.msra.mxu1 %vm1296_vm1, %v1719_v12 }
 0x2be   : > { %v1747_v23 = vpop.permute.xlu0 %1746  ;;  %1561 = vrot.lane.b32.xlu1 %v3734_v21, %s3090_s16  ;;  %2760 = vmatprep.subr.msk.mxu1 %vm1296_vm1, %v1749_v22 }
 0x2c0   : > { %v1717_v45 = vpop.permute.xlu1 %1716 }
 0x2c1   : > { %2761 = vmatpush3.xpose.msk.msra.mxu1 %vm1296_vm1, %v1717_v45 }
 0x2c2   : > { %v1745_v25 = vpop.permute.xlu0 %1744  ;;  %1529 = vrot.lane.b32.xlu1 %v3700_v17, %s3090_s16  ;;  %2762 = vmatprep.subr.msk.mxu1 %vm1296_vm1, %v1747_v23 }
 0x2c4   : > { %v1715_v27 = vpop.permute.xlu1 %1714 }
 0x2c5   : > { %2763 = vmatpush3.xpose.msk.msra.mxu1 %vm1296_vm1, %v1715_v27 }
 0x2c6   : > { %v1743_v0 = vpop.permute.xlu0 %1742  ;;  %1527 = vrot.lane.b32.xlu1 %v3702_v46, %s3090_s16  ;;  %2764 = vmatprep.subr.msk.mxu1 %vm1296_vm1, %v1745_v25 }
 0x2c8   : > { %v1713_v60 = vpop.permute.xlu1 %1712 }
 0x2c9   : > { %2765 = vmatpush3.xpose.msk.msra.mxu1 %vm1296_vm1, %v1713_v60 }
 0x2ca   : > { %v1741_v15 = vpop.permute.xlu0 %1740  ;;  %1525 = vrot.lane.b32.xlu1 %v3696_v61, %s3090_s16  ;;  %2766 = vmatprep.subr.msk.mxu1 %vm1296_vm1, %v1743_v0 }
 0x2cc   : > { %v1711_v16 = vpop.permute.xlu1 %1710 }
 0x2cd   : > { %2767 = vmatpush3.xpose.msk.msra.mxu1 %vm1296_vm1, %v1711_v16 }
 0x2ce   : > { %v1739_v13 = vpop.permute.xlu0 %1738  ;;  %1523 = vrot.lane.b32.xlu1 %v3698_v5, %s3090_s16  ;;  %2768 = vmatprep.subr.msk.mxu1 %vm1296_vm1, %v1741_v15 }
 0x2d0   : > { %v1709_v20 = vpop.permute.xlu1 %1708 }
 0x2d1   : > { %2769 = vmatpush3.xpose.msk.msra.mxu1 %vm1296_vm1, %v1709_v20 }
 0x2d2   : > { %v1737_v44 = vpop.permute.xlu0 %1736  ;;  %1521 = vrot.lane.b32.xlu1 %v3692_v18, %s3090_s16  ;;  %2770 = vmatprep.subr.msk.mxu1 %vm1296_vm1, %v1739_v13 }
 0x2d4   : > { %v1707_v2 = vpop.permute.xlu1 %1706 }
 0x2d5   : > { %2771 = vmatpush3.xpose.msk.msra.mxu1 %vm1296_vm1, %v1707_v2 }
 0x2d6   : > { %v1735_v30 = vpop.permute.xlu0 %1734  ;;  %1519 = vrot.lane.b32.xlu1 %v3694_v48, %s3090_s16  ;;  %2772 = vmatprep.subr.msk.mxu1 %vm1296_vm1, %v1737_v44 }
 0x2d8   : > { %v1705_v1 = vpop.permute.xlu1 %1704 }
 0x2d9   : > { %2773 = vmatpush3.xpose.msk.msra.mxu1 %vm1296_vm1, %v1705_v1 }
 0x2da   : > { %v1733_v32 = vpop.permute.xlu0 %1732  ;;  %1517 = vrot.lane.b32.xlu1 %v3688_v57, %s3090_s16  ;;  %2774 = vmatprep.subr.msk.mxu1 %vm1296_vm1, %v1735_v30 }
 0x2dc   : > { %v1703_v49 = vpop.permute.xlu1 %1702 }
 0x2dd   : > { %2775 = vmatpush3.xpose.msk.msra.mxu1 %vm1296_vm1, %v1703_v49 }
 0x2de   : > { %v1731_v33 = vpop.permute.xlu0 %1730  ;;  %1965 = vrot.lane.b32.xlu1 %v3720_v8, %s3091_s17  ;;  %2776 = vmatprep.subr.msk.mxu1 %vm1296_vm1, %v1733_v32 }
 0x2e0   : > { %v1701_v24 = vpop.permute.xlu1 %1700 }
 0x2e1   : > { %2777 = vmatpush3.xpose.msk.msra.mxu1 %vm1296_vm1, %v1701_v24 }
 0x2e2   : > { %v1729_v35 = vpop.permute.xlu0 %1728  ;;  %1575 = vrot.lane.b32.xlu1 %v3756_v7, %s3090_s16  ;;  %2778 = vmatprep.subr.msk.mxu1 %vm1296_vm1, %v1731_v33 }
 0x2e4   : > { %v1699_v38 = vpop.permute.xlu1 %1698 }
 0x2e5   : > { %2779 = vmatpush3.xpose.msk.msra.mxu1 %vm1296_vm1, %v1699_v38 }
 0x2e6   : > { %v1727_v29 = vpop.permute.xlu0 %1726  ;;  %2780 = vmatprep.subr.msk.mxu1 %vm1296_vm1, %v1729_v35 }
 0x2e8   : > { %v1697_v39 = vpop.permute.xlu1 %1696 }
 0x2e9   : > { %2781 = vmatpush3.xpose.msk.msra.mxu1 %vm1296_vm1, %v1697_v39 }
 0x2ea   : > { %v1725_v42 = vpop.permute.xlu0 %1724  ;;  %2782 = vmatprep.subr.msk.mxu1 %vm1296_vm1, %v1727_v29 }
 0x2ec   : > { %v1695_v53 = vpop.permute.xlu1 %1694 }
 0x2ed   : > { %2783 = vmatpush3.xpose.msk.msra.mxu1 %vm1296_vm1, %v1695_v53 }
 0x2ee   : > { %v1723_v28 = vpop.permute.xlu0 %1722  ;;  %2784 = vmatprep.subr.msk.mxu1 %vm1296_vm1, %v1725_v42 }
 0x2f0   : > { %v1693_v10 = vpop.permute.xlu1 %1692 }
 0x2f1   : > { %2785 = vmatpush3.xpose.msk.msra.mxu1 %vm1296_vm1, %v1693_v10 }
 0x2f2   : > { %v1687_v50 = vpop.permute.xlu0 %1686  ;;  %2786 = vmatprep.subr.msk.mxu1 %vm1296_vm1, %v1723_v28 }
 0x2f3   : > { %2788 = vmatprep.mubr.msk.f32.mxu1 %vm1296_vm1, %v1687_v50 }
 0x2f4   : > { %v1691_v8 = vpop.permute.xlu1 %1690 }
 0x2f5   : > { %2787 = vmatpush3.xpose.msk.msra.mxu1 %vm1296_vm1, %v1691_v8 }
 0x2f6   : > { %v1578_v11 = vpop.permute.xlu0 %1577 }
 0x2f7   : > { %2718 = vmatprep.subr.mxu0 %v1578_v11 }
 0x2f8   : > { %v1689_v40 = vpop.permute.xlu1 %1688  ;;  %2789 = vmatmul.mubr.msk.f32.vlgmr.msra.gmra.mxu1 %vm1296_vm1, %v1687_v50 }
 0x2f9   : > { %2790 = vmatprep.mubr.msk.f32.mxu1 %vm1296_vm1, %v1689_v40 }
 0x2fa   : > { %v1536_v20 = vpop.permute.xlu0 %1535 }
 0x2fc   : > { %v1546_v7 = vpop.permute.xlu1 %1545  ;;  %2791 = vmatmul.mubr.msk.f32.gmra.mxu1 %vm1296_vm1, %v1689_v40 }
 0x2fd   : > { %2719 = vmatpush3.msra.mxu0 %v1546_v7 }
 0x2fe   : > { %v1560_v30 = vpop.permute.xlu0 %1559 }
 0x300   : > { %v1544_v41 = vpop.permute.xlu1 %1543 }
 0x302   : > { %v1558_v24 = vpop.permute.xlu0 %1557 }
 0x304   : > { %v1574_v14 = vpop.permute.xlu1 %1573 }
 0x306   : > { %v1556_v11 = vpop.permute.xlu0 %1555 }
 0x308   : > { %v1542_v56 = vpop.permute.xlu1 %1541 }
 0x30c   : > { %v1572_v19 = vpop.permute.xlu1 %1571 }
 0x310   : > { %v1540_v22 = vpop.permute.xlu1 %1539 }
 0x314   : > { %v1570_v12 = vpop.permute.xlu1 %1569 }
 0x318   : > { %v1538_v23 = vpop.permute.xlu1 %1537 }
 0x31c   : > { %v1568_v45 = vpop.permute.xlu1 %1567 }
 0x320   : > { %v1566_v25 = vpop.permute.xlu1 %1565 }
 0x324   : > { %v1534_v27 = vpop.permute.xlu1 %1533 }
 0x328   : > { %v1564_v0 = vpop.permute.xlu1 %1563 }
 0x32c   : > { %v1532_v60 = vpop.permute.xlu1 %1531 }
 0x330   : > { %v1562_v15 = vpop.permute.xlu1 %1561 }
 0x334   : > { %v1530_v16 = vpop.permute.xlu1 %1529 }
 0x338   : > { %v1528_v13 = vpop.permute.xlu1 %1527 }
 0x33c   : > { %v1526_v44 = vpop.permute.xlu1 %1525 }
 0x340   : > { %v1524_v2 = vpop.permute.xlu1 %1523 }
 0x344   : > { %v1522_v1 = vpop.permute.xlu1 %1521  ;;  %v1465_v32 = vpop.f32.mrf.mxu1 }
 0x345   : > { %v4000_v49 = vmul.f32 0.25, %v1465_v32  ;;  %v1554_v32 = vpop.permute.xlu0 %1553 }
 0x346   : > { %v1467_v33 = vpop.f32.mrf.mxu1 }
 0x347   : > { %v4002_v35 = vmul.f32 0.25, %v1467_v33 }
 0x348   : > { %v1520_v38 = vpop.permute.xlu1 %1519  ;;  %v1471_v29 = vpop.f32.mrf.mxu1 }
 0x349   : > { %v1480_v39 = vmax.f32 %v4000_v49, %v4002_v35  ;;  %v4006_v42 = vmul.f32 0.25, %v1471_v29  ;;  %v1552_v29 = vpop.permute.xlu0 %1551 }
 0x34a   : > { %v1473_v53 = vpop.f32.mrf.mxu1 }
 0x34b   : > { %v1484_v28 = vsel %vm1483_vm2, %v4006_v42, -inf  ;;  %v4010_v10 = vmul.f32 0.25, %v1473_v53  ;;  %1481 = vmax.xlane.f32.xlu0 %v1480_v39 }
 0x34c   : > { %v1518_v50 = vpop.permute.xlu1 %1517 }
 0x34d   : > { %v1485_v8 = vsel %vm1483_vm2, %v4010_v10, -inf  ;;  %v1550_v39 = vpop.permute.xlu0 %1549 }
 0x34e   : > { %v1486_v40 = vmax.f32 %v1484_v28, %v1485_v8 }
 0x350   : > { %v4014_v7 = vpop.permute.xlu1 %1965  ;;  %1487 = vmax.xlane.f32.xlu1 %v1486_v40 }
 0x354   : > { %v1576_v33 = vpop.permute.xlu1 %1575 }
 0x355   : > { %2720 = vmatprep.subr.mxu0 %v1576_v33 }
 0x356   : > { %2721 = vmatpush3.msra.mxu0 %v1544_v41  ;;  %v1548_v41 = vpop.permute.xlu0 %1547 }
 0x357   : > { %2722 = vmatprep.subr.mxu0 %v1574_v14 }
 0x358   : > { %2723 = vmatpush3.msra.mxu0 %v1542_v56 }
 0x359   : > { %2724 = vmatprep.subr.mxu0 %v1572_v19 }
 0x35a   : > { %2725 = vmatpush3.msra.mxu0 %v1540_v22 }
 0x35b   : > { %2726 = vmatprep.subr.mxu0 %v1570_v12 }
 0x35c   : > { %2727 = vmatpush3.msra.mxu0 %v1538_v23 }
 0x35d   : > { %2728 = vmatprep.subr.mxu0 %v1568_v45 }
 0x35e   : > { %2729 = vmatpush3.msra.mxu0 %v1536_v20 }
 0x35f   : > { %2730 = vmatprep.subr.mxu0 %v1566_v25 }
 0x360   : > { %2731 = vmatpush3.msra.mxu0 %v1534_v27 }
 0x361   : > { %2732 = vmatprep.subr.mxu0 %v1564_v0  ;;  %1961 = vrot.lane.b32.xlu0 %v3714_v34, %s3091_s17 }
 0x362   : > { %1963 = vrot.lane.b32.xlu1 %v3712_v37, %s3091_s17  ;;  %2733 = vmatpush3.msra.mxu0 %v1532_v60  ;;  %v1516_v37 = vpop.permute.xlu0 %1515 }
 0x363   : > { %2734 = vmatprep.subr.mxu0 %v1562_v15 }
 0x364   : > { %2735 = vmatpush3.msra.mxu0 %v1530_v16 }
 0x365   : > { %2736 = vmatprep.subr.mxu0 %v1560_v30  ;;  %1991 = vrot.lane.b32.xlu0 %v3742_v59, %s3091_s17 }
 0x366   : > { %1993 = vrot.lane.b32.xlu1 %v3748_v6, %s3091_s17  ;;  %2737 = vmatpush3.msra.mxu0 %v1528_v13 }
 0x367   : > { %2738 = vmatprep.subr.mxu0 %v1558_v24 }
 0x368   : > { %2739 = vmatpush3.msra.mxu0 %v1526_v44 }
 0x369   : > { %2740 = vmatprep.subr.mxu0 %v1556_v11  ;;  %1959 = vrot.lane.b32.xlu0 %v3708_v43, %s3091_s17  ;;  %v2000_v43 = vpop.permute.xlu0 %1999 }
 0x36a   : > { %1985 = vrot.lane.b32.xlu1 %v3740_v4, %s3091_s17  ;;  %2741 = vmatpush3.msra.mxu0 %v1524_v2 }
 0x36b   : > { %2742 = vmatprep.subr.mxu0 %v1554_v32 }
 0x36c   : > { %2743 = vmatpush3.msra.mxu0 %v1522_v1 }
 0x36d   : > { %2744 = vmatprep.subr.mxu0 %v1552_v29  ;;  %1989 = vrot.lane.b32.xlu0 %v3744_v54, %s3091_s17 }
 0x36e   : > { %1949 = vrot.lane.b32.xlu1 %v3702_v46, %s3091_s17  ;;  %2745 = vmatpush3.msra.mxu0 %v1520_v38 }
 0x36f   : > { %2746 = vmatprep.subr.mxu0 %v1550_v39 }
 0x370   : > { %2747 = vmatpush3.msra.mxu0 %v1518_v50 }
 0x371   : > { %2748 = vmatprep.subr.mxu0 %v1548_v41  ;;  %1957 = vrot.lane.b32.xlu0 %v3710_v55, %s3091_s17 }
 0x372   : > { %1947 = vrot.lane.b32.xlu1 %v3696_v61, %s3091_s17  ;;  %2749 = vmatpush3.msra.mxu0 %v1516_v37 }
 0x373   : > { %2792 = vmatprep.subr.mxu0 %v2000_v43 }
 0x375   : > { %1987 = vrot.lane.b32.xlu0 %v3738_v9, %s3091_s17 }
 0x376   : > { %1945 = vrot.lane.b32.xlu1 %v3698_v5, %s3091_s17 }
 0x379   : > { %1955 = vrot.lane.b32.xlu0 %v3704_v47, %s3091_s17 }
 0x37a   : > { %1943 = vrot.lane.b32.xlu1 %v3692_v18, %s3091_s17 }
 0x37d   : > { %1953 = vrot.lane.b32.xlu0 %v3706_v36, %s3091_s17 }
 0x37e   : > { %1941 = vrot.lane.b32.xlu1 %v3694_v48, %s3091_s17 }
 0x381   : > { %1983 = vrot.lane.b32.xlu0 %v3734_v21, %s3091_s17 }
 0x382   : > { %1939 = vrot.lane.b32.xlu1 %v3688_v57, %s3091_s17 }
 0x385   : > { %1951 = vrot.lane.b32.xlu0 %v3700_v17, %s3091_s17 }
 0x389   : > { %1981 = vrot.lane.b32.xlu0 %v3736_v3, %s3091_s17 }
 0x38d   : > { %1979 = vrot.lane.b32.xlu0 %v3730_v63, %s3091_s17 }
 0x391   : > { %1977 = vrot.lane.b32.xlu0 %v3732_v26, %s3091_s17  ;;  %v4064_v26 = vpop.permute.xlu0 %1967 }
 0x395   : > { %1975 = vrot.lane.b32.xlu0 %v3726_v52, %s3091_s17  ;;  %v4066_v21 = vpop.permute.xlu0 %1995 }
 0x399   : > { %v4068_v52 = vpop.permute.xlu0 %1997 }
 0x3b8   : > { %v1888_v18 = vpop.f32.mrf.mxu1 }
 0x3b9   : > { %v1899_v61 = vmul.f32 0.25, %v1888_v18 }
 0x3ba   : > { %v1890_v48 = vpop.f32.mrf.mxu1 }
 0x3bb   : > { %v1900_v5 = vmul.f32 0.25, %v1890_v48 }
 0x3bc   : > { %v1894_v57 = vpop.f32.mrf.mxu1 }
 0x3bd   : > { %v1903_v46 = vmax.f32 %v1899_v61, %v1900_v5  ;;  %v1901_v47 = vmul.f32 0.25, %v1894_v57 }
 0x3be   : > { %v1896_v17 = vpop.f32.mrf.mxu1 }
 0x3bf   : > { %v1902_v36 = vmul.f32 0.25, %v1896_v17  ;;  %1904 = vmax.xlane.f32.xlu0 %v1903_v46  ;;  %v1906_v55 = vsel %vm1483_vm2, %v1901_v47, -inf }
 0x3c1   : > { %v1907_v34 = vsel %vm1483_vm2, %v1902_v36, -inf }
 0x3c2   : > { %v1908_v63 = vmax.f32 %v1906_v55, %v1907_v34 }
 0x3c4   : > { %1909 = vmax.xlane.f32.xlu0 %v1908_v63 }
 0x3d4   : > { %v1482_v59 = vpop.xlane.xlu0 %1481 }
 0x3d5   : > { %v1489_v14 = vsub.f32 %v4000_v49, %v1482_v59  ;;  %v1490_v56 = vsub.f32 %v4002_v35, %v1482_v59 }
 0x3d7   : > { %v1493_v19 = vmul.f32 1.442695, %v1489_v14  ;;  %v1495_v22 = vmul.f32 1.442695, %v1490_v56 }
 0x3d8   : > { %v4084_v60 = vpop.permute.xlu0 %1961 }
 0x3d9   : > { %v1488_v3 = vpop.xlane.xlu1 %1487 }
 0x3da   : > { %v1491_v9 = vsub.f32 %v4006_v42, %v1488_v3  ;;  %v1492_v4 = vsub.f32 %v4010_v10, %v1488_v3  ;;  %1973 = vrot.lane.b32.xlu0 %v3728_v62, %s3091_s17 }
 0x3dc   : > { %v1497_v54 = vmul.f32 1.442695, %v1491_v9  ;;  %v1499_v6 = vmul.f32 1.442695, %v1492_v4  ;;  %v4086_v16 = vpop.permute.xlu0 %1991 }
 0x3dd   : > { %v1964_v50 = vpop.permute.xlu1 %1963 }
 0x3de   : > { %3049 = vpow2.f32 %v1497_v54 }
 0x3df   : > { %3051 = vpow2.f32 %v1499_v6 }
 0x3e0   : > { %3053 = vpow2.f32 %v1493_v19  ;;  %v4088_v13 = vpop.permute.xlu0 %1959 }
 0x3e1   : > { %3055 = vpow2.f32 %v1495_v22  ;;  %v1994_v41 = vpop.permute.xlu1 %1993 }
 0x3e4   : > { %v4090_v20 = vpop.permute.xlu0 %1989 }
 0x3e5   : > { %v1986_v37 = vpop.permute.xlu1 %1985 }
 0x3e8   : > { %v4092_v44 = vpop.permute.xlu0 %1957 }
 0x3eb   : > { %v4076_v12 = vpop.eup %3049 }
 0x3ec   : > { %v4078_v23 = vpop.eup %3051  ;;  %v1504_v62 = vsel %vm1483_vm2, %v4076_v12, 0.0  ;;  %v4096_v2 = vpop.permute.xlu0 %1987 }
 0x3ed   : > { %v1505_v45 = vsel %vm1483_vm2, %v4078_v23, 0.0  ;;  %v3054_v27 = vpop.eup %3053 }
 0x3ee   : > { %v1506_v25 = vadd.f32 %v1505_v45, %v1504_v62  ;;  %v3056_v0 = vpop.eup %3055 }
 0x3ef   : > { %v1501_v15 = vadd.f32 %v3056_v0, %v3054_v27 }
 0x3f0   : > { %1507 = vadd.xlane.f32.xlu1 %v1506_v25  ;;  %v4098_v30 = vpop.permute.xlu0 %1955 }
 0x3f4   : > { %v4100_v1 = vpop.permute.xlu0 %1953 }
 0x3f8   : > { %v4102_v49 = vpop.permute.xlu0 %1983 }
 0x3f9   : > { %1502 = vadd.xlane.f32.xlu0 %v1501_v15 }
 0x3fc   : > { %v4104_v24 = vpop.permute.xlu0 %1951 }
 0x400   : > { %v4106_v35 = vpop.permute.xlu0 %1981 }
 0x404   : > { %v4108_v38 = vpop.permute.xlu0 %1979 }
 0x408   : > { %v4110_v42 = vpop.permute.xlu0 %1977 }
 0x40c   : > { %v4112_v53 = vpop.permute.xlu0 %1975 }
 0x40f   : > { %1971 = vrot.lane.b32.xlu0 %v3722_v58, %s3091_s17 }
 0x448   : > { %v1905_v28 = vpop.xlane.xlu0 %1904 }
 0x449   : > { %v1911_v58 = vsub.f32 %v1899_v61, %v1905_v28  ;;  %v1912_v10 = vsub.f32 %v1900_v5, %v1905_v28  ;;  %v1950_v61 = vpop.permute.xlu1 %1949 }
 0x44b   : > { %v1915_v8 = vmul.f32 1.442695, %v1911_v58  ;;  %v1917_v11 = vmul.f32 1.442695, %v1912_v10 }
 0x44d   : > { %3057 = vpow2.f32 %v1915_v8  ;;  %v1910_v40 = vpop.xlane.xlu0 %1909 }
 0x44e   : > { %3059 = vpow2.f32 %v1917_v11  ;;  %v1913_v32 = vsub.f32 %v1901_v47, %v1910_v40  ;;  %v1914_v33 = vsub.f32 %v1902_v36, %v1910_v40  ;;  %v1948_v36 = vpop.permute.xlu1 %1947 }
 0x450   : > { %v1919_v29 = vmul.f32 1.442695, %v1913_v32  ;;  %v1921_v39 = vmul.f32 1.442695, %v1914_v33 }
 0x451   : > { %v1974_v9 = vpop.permute.xlu0 %1973 }
 0x452   : > { %3061 = vpow2.f32 %v1919_v29  ;;  %v1946_v55 = vpop.permute.xlu1 %1945 }
 0x453   : > { %3063 = vpow2.f32 %v1921_v39 }
 0x456   : > { %v1944_v34 = vpop.permute.xlu1 %1943 }
 0x45a   : > { %v4114_v43 = vpop.eup %3057  ;;  %v1942_v63 = vpop.permute.xlu1 %1941 }
 0x45b   : > { %v4116_v18 = vpop.eup %3059 }
 0x45c   : > { %v1923_v48 = vadd.f32 %v4116_v18, %v4114_v43 }
 0x45e   : > { %1924 = vadd.xlane.f32.xlu0 %v1923_v48  ;;  %v1940_v3 = vpop.permute.xlu1 %1939 }
 0x45f   : > { %v4120_v5 = vpop.eup %3061 }
 0x460   : > { %v4122_v57 = vpop.eup %3063  ;;  %v1926_v46 = vsel %vm1483_vm2, %v4120_v5, 0.0 }
 0x461   : > { %v1927_v47 = vsel %vm1483_vm2, %v4122_v57, 0.0 }
 0x462   : > { %v1928_v17 = vadd.f32 %v1927_v47, %v1926_v46  ;;  %v2258_v47 = vld [vmem:[%s4281_s9 + $0x18] sm:$0xff] }
 0x464   : > { %1929 = vadd.xlane.f32.xlu1 %v1928_v17  ;;  %v2257_v17 = vld [vmem:[%s4281_s9 + $0x10] sm:$0xff] }
 0x474   : > { %1969 = vrot.lane.b32.xlu0 %v3724_v51, %s3091_s17 }
 0x475   : > { %1937 = vrot.lane.b32.xlu1 %v3690_v31, %s3091_s17  ;;  %s2645_s17 = sshll.u32 %s4287_s26, 4 }
 0x476   : > { %s440_s20 = scalar_lea.vmem %s4285_s13, %s2645_s17 }
 0x479   : > { %v1508_v4 = vpop.xlane.xlu1 %1507 }
 0x47a   : > { %3065 = vrcp.f32 %v1508_v4 }
 0x482   : > { %v1503_v59 = vpop.xlane.xlu0 %1502 }
 0x483   : > { %3067 = vrcp.f32 %v1503_v59 }
 0x486   : > { %v1972_v51 = vpop.permute.xlu0 %1971 }
 0x487   : > { %v3066_v54 = vpop.eup %3065 }
 0x488   : > { %v1514_v19 = vmul.f32 %v3066_v54, %v4078_v23  ;;  %v1513_v31 = vmul.f32 %v3066_v54, %v4076_v12 }
 0x490   : > { %v3068_v6 = vpop.eup %3067 }
 0x491   : > { %v1512_v14 = vmul.f32 %v3068_v6, %v3056_v0  ;;  %v1511_v56 = vmul.f32 %v3068_v6, %v3054_v27  ;;  %v2121_v27 = vld [vmem:[%s4277_s5 + $0x18] sm:$0xff]  ;;  %v2636_v6 = vld [vmem:[%s4279_s7] ss:$0 sm:$0xff] }
 0x493   : > { %1675 = vmatprep.mubr.f32.mxu0 %v1512_v14 }
 0x494   : > { %1676 = vmatmul.mubr.f32.vlgmr.msra.gmra.mxu0 %v1511_v56  ;;  %v2637_v56 = vld [vmem:[%s4280_s8] ss:$0 sm:$0xff] }
 0x495   : > { %2793 = vmatpush3.msra.mxu0 %v4064_v26  ;;  %1680 = vmatprep.mubr.f32.mxu0 %v1514_v19 }
 0x496   : > { %2794 = vmatprep.subr.mxu0 %v4068_v52 }
 0x497   : > { %2795 = vmatpush3.msra.mxu0 %v4014_v7 }
 0x498   : > { %2796 = vmatprep.subr.mxu0 %v4066_v21  ;;  %1681 = vmatmul.mubr.f32.gmra.mxu0 %v1513_v31 }
 0x499   : > { %2797 = vmatpush3.msra.mxu0 %v1964_v50  ;;  %v2633_v50 = vld [vmem:[%s4278_s6] ss:$0 sm:$0xff] }
 0x49a   : > { %2798 = vmatprep.subr.mxu0 %v1994_v41 }
 0x49b   : > { %2799 = vmatpush3.msra.mxu0 %v4084_v60 }
 0x49c   : > { %2800 = vmatprep.subr.mxu0 %v4086_v16  ;;  %v2120_v16 = vld [vmem:[%s4277_s5 + $0x10] sm:$0xff] }
 0x49d   : > { %2801 = vmatpush3.msra.mxu0 %v4088_v13  ;;  %v2119_v13 = vld [vmem:[%s4277_s5 + $0x8] sm:$0xff] }
 0x49e   : > { %2802 = vmatprep.subr.mxu0 %v4090_v20 }
 0x49f   : > { %2803 = vmatpush3.msra.mxu0 %v4092_v44  ;;  %v2118_v44 = vld [vmem:[%s4277_s5] sm:$0xff] }
 0x4a0   : > { %2804 = vmatprep.subr.mxu0 %v4096_v2 }
 0x4a1   : > { %2805 = vmatpush3.msra.mxu0 %v4098_v30 }
 0x4a2   : > { %2806 = vmatprep.subr.mxu0 %v1986_v37 }
 0x4a3   : > { %2807 = vmatpush3.msra.mxu0 %v4100_v1 }
 0x4a4   : > { %2808 = vmatprep.subr.mxu0 %v4102_v49 }
 0x4a5   : > { %2809 = vmatpush3.msra.mxu0 %v4104_v24 }
 0x4a6   : > { %2810 = vmatprep.subr.mxu0 %v4106_v35 }
 0x4a7   : > { %2811 = vmatpush3.msra.mxu0 %v1950_v61 }
 0x4a8   : > { %2812 = vmatprep.subr.mxu0 %v4108_v38 }
 0x4a9   : > { %2813 = vmatpush3.msra.mxu0 %v1948_v36  ;;  %v2256_v36 = vld [vmem:[%s4281_s9 + $0x8] sm:$0xff] }
 0x4aa   : > { %2814 = vmatprep.subr.mxu0 %v4110_v42 }
 0x4ab   : > { %2815 = vmatpush3.msra.mxu0 %v1946_v55  ;;  %v2255_v55 = vld [vmem:[%s4281_s9] sm:$0xff] }
 0x4ac   : > { %2816 = vmatprep.subr.mxu0 %v4112_v53 }
 0x4ad   : > { %2817 = vmatpush3.msra.mxu0 %v1944_v34 }
 0x4ae   : > { %2818 = vmatprep.subr.mxu0 %v1974_v9 }
 0x4af   : > { %2819 = vmatpush3.msra.mxu0 %v1942_v63 }
 0x4b0   : > { %2820 = vmatprep.subr.mxu0 %v1972_v51 }
 0x4b1   : > { %2821 = vmatpush3.msra.mxu0 %v1940_v3 }
 0x4e7   : > { %v1925_v7 = vpop.xlane.xlu0 %1924 }
 0x4e8   : > { %3069 = vrcp.f32 %v1925_v7 }
 0x4eb   : > { %v1970_v26 = vpop.permute.xlu0 %1969 }
 0x4ec   : > { %2822 = vmatprep.subr.mxu0 %v1970_v26 }
 0x4ed   : > { %v1930_v21 = vpop.xlane.xlu1 %1929 }
 0x4ee   : > { %3071 = vrcp.f32 %v1930_v21 }
 0x4f1   : > { %v1938_v52 = vpop.permute.xlu1 %1937 }
 0x4f2   : > { %2823 = vmatpush3.msra.mxu0 %v1938_v52  ;;  %v2380_v52 = vld [vmem:[%s4283_s11 + $0x78] sm:$0xff] }
 0x4f3   : > { %2916 = vmatprep.subr.mxu0 %v2121_v27 }
 0x4f5   : > { %v3070_v22 = vpop.eup %3069 }
 0x4f6   : > { %v1934_v12 = vmul.f32 %v3070_v22, %v4116_v18  ;;  %v1933_v23 = vmul.f32 %v3070_v22, %v4114_v43  ;;  %v2379_v22 = vld [vmem:[%s4283_s11 + $0x70] sm:$0xff] }
 0x4f8   : > { %2097 = vmatprep.mubr.f32.mxu0 %v1934_v12  ;;  %v2378_v12 = vld [vmem:[%s4283_s11 + $0x68] sm:$0xff] }
 0x4f9   : > { %2098 = vmatmul.mubr.f32.vlgmr.msra.gmra.mxu0 %v1933_v23  ;;  %v2377_v23 = vld [vmem:[%s4283_s11 + $0x60] sm:$0xff] }
 0x4fa   : > { %2917 = vmatpush3.msra.mxu0 %v2121_v27  ;;  %v2373_v27 = vld [vmem:[%s4283_s11 + $0x40] sm:$0xff] }
 0x4fb   : > { %v3072_v62 = vpop.eup %3071  ;;  %2918 = vmatprep.subr.mxu0 %v2120_v16 }
 0x4fc   : > { %v1936_v45 = vmul.f32 %v3072_v62, %v4122_v57  ;;  %v1935_v25 = vmul.f32 %v3072_v62, %v4120_v5  ;;  %2919 = vmatpush3.msra.mxu0 %v2120_v16  ;;  %v2376_v62 = vld [vmem:[%s4283_s11 + $0x58] sm:$0xff]  ;;  %v2369_v16 = vld [vmem:[%s4283_s11 + $0x20] sm:$0xff] }
 0x4fd   : > { %2920 = vmatprep.subr.mxu0 %v2119_v13 }
 0x4fe   : > { %2102 = vmatprep.mubr.f32.mxu0 %v1936_v45  ;;  %2921 = vmatpush3.msra.mxu0 %v2119_v13  ;;  %v2375_v45 = vld [vmem:[%s4283_s11 + $0x50] sm:$0xff]  ;;  %v2368_v13 = vld [vmem:[%s4283_s11 + $0x18] sm:$0xff] }
 0x4ff   : > { %2103 = vmatmul.mubr.f32.gmra.mxu0 %v1935_v25  ;;  %2922 = vmatprep.subr.mxu0 %v2118_v44  ;;  %v2374_v25 = vld [vmem:[%s4283_s11 + $0x48] sm:$0xff] }
 0x500   : > { %2923 = vmatpush3.msra.mxu0 %v2118_v44  ;;  %v2366_v44 = vld [vmem:[%s4283_s11 + $0x8] sm:$0xff] }
 0x501   : > { %2927 = vmatprep.subr.mxu0 %v2258_v47 }
 0x554   : > { %v2750_v0 = vpop.f32.mrf.mxu0 }
 0x556   : > { %v2751_v60 = vpop.f32.mrf.mxu0 }
 0x557   : > { %v2752_v15 = vadd.f32 %v2751_v60, %v2750_v0  ;;  %v2372_v0 = vld [vmem:[%s4283_s11 + $0x38] sm:$0xff]  ;;  %v2371_v60 = vld [vmem:[%s4283_s11 + $0x30] sm:$0xff] }
 0x558   : > { %v2753_v20 = vpop.f32.mrf.mxu0 }
 0x55a   : > { %v2754_v2 = vpop.f32.mrf.mxu0 }
 0x55b   : > { %v2755_v28 = vadd.f32 %v2754_v2, %v2753_v20  ;;  %v2367_v20 = vld [vmem:[%s4283_s11 + $0x10] sm:$0xff]  ;;  %v2365_v2 = vld [vmem:[%s4283_s11] sm:$0xff] }
 0x5b9   : > { %v2824_v30 = vpop.f32.mrf.mxu0 }
 0x5bb   : > { %v2825_v1 = vpop.f32.mrf.mxu0 }
 0x5bc   : > { %v2826_v49 = vadd.f32 %v2825_v1, %v2824_v30  ;;  %v2638_v30 = vld [vmem:[%s4282_s10] ss:$0 sm:$0xff] }
 0x5be   : > { %2110 = vrot.lane.b32.xlu0 %v2826_v49, %s3092_s28 }
 0x5bf   : > { %v2827_v24 = vpop.f32.mrf.mxu0 }
 0x5c1   : > { %v2828_v35 = vpop.f32.mrf.mxu0 }
 0x5c2   : > { %v2829_v38 = vadd.f32 %v2828_v35, %v2827_v24 }
 0x5c4   : > { %2112 = vrot.lane.b32.xlu1 %v2829_v38, %s3092_s28 }
 0x630   : > { %v2111_v42 = vpop.permute.xlu0 %2110 }
 0x631   : > { %v2116_v53 = vsel %vm1296_vm1, %v2752_v15, %v2111_v42  ;;  %v2370_v15 = vld [vmem:[%s4283_s11 + $0x28] sm:$0xff] }
 0x632   : > { %2924 = vmatprep.mubr.msk.f32.mxu0 %vm473_vm0, %v2116_v53 }
 0x636   : > { %v2113_v58 = vpop.permute.xlu1 %2112 }
 0x637   : > { %v2117_v10 = vsel %vm1296_vm1, %v2755_v28, %v2113_v58 }
 0x638   : > { %2925 = vmatmul.mubr.msk.f32.vlgmr.msra.gmra.mxu0 %vm473_vm0, %v2117_v10 }
 0x639   : > { %2928 = vmatpush3.msra.mxu0 %v2258_v47 }
 0x63a   : > { %2929 = vmatprep.subr.mxu0 %v2257_v17 }
 0x63b   : > { %2930 = vmatpush3.msra.mxu0 %v2257_v17 }
 0x63c   : > { %2931 = vmatprep.subr.mxu0 %v2256_v36 }
 0x63d   : > { %2932 = vmatpush3.msra.mxu0 %v2256_v36 }
 0x63e   : > { %2933 = vmatprep.subr.mxu0 %v2255_v55 }
 0x63f   : > { %2934 = vmatpush3.msra.mxu0 %v2255_v55 }
 0x640   : > { %2938 = vmatprep.subr.mxu0 %v2380_v52 }
 0x6f8   : > { %v2926_v8 = vpop.f32.mrf.mxu0 }
 0x6f9   : > { %v4175_v11 = vadd.f32 %v2926_v8, %v2633_v50 }
 0x6fa   : > { %v2201_v40 = vpop.f32.mrf.mxu0 }
 0x6fb   : > { %v4177_v32 = vadd.f32 %v2633_v50, %v2201_v40  ;;  %v2214_v33 = vsel %vm2213_vm3, %v4175_v11, 0.0 }
 0x6fc   : > { %2215 = vadd.xlane.f32.xlu1 %v2214_v33 }
 0x6fd   : > { %v2210_v29 = vsel %vm473_vm0, %v4177_v32, 0.0 }
 0x6fe   : > { %2211 = vadd.xlane.f32.xlu0 %v2210_v29 }
 0x785   : > { %v2216_v39 = vpop.xlane.xlu1 %2215 }
 0x786   : > { %v2218_v41 = vmul.f32 0.03125, %v2216_v39 }
 0x787   : > { %v2212_v37 = vpop.xlane.xlu0 %2211 }
 0x788   : > { %v2217_v43 = vmul.f32 0.03125, %v2212_v37  ;;  %v2220_v18 = vsub.f32 %v4175_v11, %v2218_v41 }
 0x78a   : > { %v2219_v48 = vsub.f32 %v4177_v32, %v2217_v43  ;;  %v2222_v57 = vmul.f32 %v2220_v18, %v2220_v18 }
 0x78c   : > { %v2221_v61 = vmul.f32 %v2219_v48, %v2219_v48  ;;  %v2226_v46 = vsel %vm2213_vm3, %v2222_v57, 0.0 }
 0x78e   : > { %v2223_v5 = vsel %vm473_vm0, %v2221_v61, 0.0 }
 0x78f   : > { %2224 = vadd.xlane.f32.xlu0 %v2223_v5  ;;  %v2641_v5 = vld [vmem:[%s4284_s12] ss:$0 sm:$0xff] }
 0x793   : > { %2227 = vadd.xlane.f32.xlu0 %v2226_v46 }
 0x818   : > { %v2225_v34 = vpop.xlane.xlu0 %2224 }
 0x819   : > { %v2229_v63 = vmul.f32 0.03125, %v2225_v34 }
 0x81b   : > { %v2231_v3 = vadd.f32 1e-05, %v2229_v63 }
 0x81c   : > { %v2228_v9 = vpop.xlane.xlu0 %2227 }
 0x81d   : > { %3073 = vrsqrt.f32 %v2231_v3  ;;  %v2230_v4 = vmul.f32 0.03125, %v2228_v9 }
 0x81f   : > { %v2232_v59 = vadd.f32 1e-05, %v2230_v4 }
 0x821   : > { %3075 = vrsqrt.f32 %v2232_v59 }
 0x82a   : > { %v3074_v54 = vpop.eup %3073 }
 0x82b   : > { %v2235_v14 = vmul.f32 %v3074_v54, %v2219_v48 }
 0x82d   : > { %v2244_v19 = vmul.f32 %v2636_v6, %v2235_v14 }
 0x82e   : > { %v3076_v31 = vpop.eup %3075 }
 0x82f   : > { %v2236_v51 = vmul.f32 %v3076_v31, %v2220_v18  ;;  %v2253_v7 = vadd.f32 %v2637_v56, %v2244_v19 }
 0x831   : > { %v2245_v26 = vmul.f32 %v2636_v6, %v2236_v51  ;;  %2935 = vmatprep.mubr.msk.f32.mxu0 %vm473_vm0, %v2253_v7 }
 0x833   : > { %v2254_v21 = vadd.f32 %v2637_v56, %v2245_v26 }
 0x835   : > { %2936 = vmatmul.mubr.msk.f32.vlgmr.msra.gmra.mxu0 %vm473_vm0, %v2254_v21 }
 0x836   : > { %2939 = vmatpush3.msra.mxu0 %v2380_v52 }
 0x837   : > { %2940 = vmatprep.subr.mxu0 %v2379_v22 }
 0x838   : > { %2941 = vmatpush3.msra.mxu0 %v2379_v22 }
 0x839   : > { %2942 = vmatprep.subr.mxu0 %v2378_v12 }
 0x83a   : > { %2943 = vmatpush3.msra.mxu0 %v2378_v12 }
 0x83b   : > { %2944 = vmatprep.subr.mxu0 %v2377_v23 }
 0x83c   : > { %2945 = vmatpush3.msra.mxu0 %v2377_v23 }
 0x83d   : > { %2946 = vmatprep.subr.mxu0 %v2376_v62 }
 0x83e   : > { %2947 = vmatpush3.msra.mxu0 %v2376_v62 }
 0x83f   : > { %2948 = vmatprep.subr.mxu0 %v2375_v45 }
 0x840   : > { %2949 = vmatpush3.msra.mxu0 %v2375_v45 }
 0x841   : > { %2950 = vmatprep.subr.mxu0 %v2374_v25 }
 0x842   : > { %2951 = vmatpush3.msra.mxu0 %v2374_v25 }
 0x843   : > { %2952 = vmatprep.subr.mxu0 %v2373_v27 }
 0x844   : > { %2953 = vmatpush3.msra.mxu0 %v2373_v27 }
 0x845   : > { %2954 = vmatprep.subr.mxu0 %v2372_v0 }
 0x846   : > { %2955 = vmatpush3.msra.mxu0 %v2372_v0 }
 0x847   : > { %2956 = vmatprep.subr.mxu0 %v2371_v60 }
 0x848   : > { %2957 = vmatpush3.msra.mxu0 %v2371_v60 }
 0x849   : > { %2958 = vmatprep.subr.mxu0 %v2370_v15 }
 0x84a   : > { %2959 = vmatpush3.msra.mxu0 %v2370_v15 }
 0x84b   : > { %2960 = vmatprep.subr.mxu0 %v2369_v16 }
 0x84c   : > { %2961 = vmatpush3.msra.mxu0 %v2369_v16 }
 0x84d   : > { %2962 = vmatprep.subr.mxu0 %v2368_v13 }
 0x84e   : > { %2963 = vmatpush3.msra.mxu0 %v2368_v13 }
 0x84f   : > { %2964 = vmatprep.subr.mxu0 %v2367_v20 }
 0x850   : > { %2965 = vmatpush3.msra.mxu0 %v2367_v20 }
 0x851   : > { %2966 = vmatprep.subr.mxu0 %v2366_v44 }
 0x852   : > { %2967 = vmatpush3.msra.mxu0 %v2366_v44 }
 0x853   : > { %2968 = vmatprep.subr.mxu0 %v2365_v2 }
 0x854   : > { %2969 = vmatpush3.msra.mxu0 %v2365_v2 }
 0x8f5   : > { %v2937_v1 = vpop.f32.mrf.mxu0 }
 0x8f6   : > { %v2344_v49 = vadd.f32 %v2937_v1, %v2638_v30 }
 0x8f7   : > { %v2338_v24 = vpop.f32.mrf.mxu0 }
 0x8f8   : > { %v2350_v35 = vmul.f32 0.044715, %v2344_v49  ;;  %v2339_v38 = vadd.f32 %v2638_v30, %v2338_v24  ;;  %v2348_v18 = vmul.f32 0.5, %v2344_v49 }
 0x8fa   : > { %v2352_v42 = vmul.f32 %v2350_v35, %v2344_v49  ;;  %v2349_v53 = vmul.f32 0.044715, %v2339_v38  ;;  %v2347_v37 = vmul.f32 0.5, %v2339_v38 }
 0x8fc   : > { %v2354_v28 = vmul.f32 %v2352_v42, %v2344_v49  ;;  %v2351_v58 = vmul.f32 %v2349_v53, %v2339_v38 }
 0x8fe   : > { %v2356_v10 = vadd.f32 %v2354_v28, %v2344_v49  ;;  %v2353_v50 = vmul.f32 %v2351_v58, %v2339_v38 }
 0x900   : > { %v2355_v8 = vadd.f32 %v2353_v50, %v2339_v38  ;;  %v2358_v40 = vmul.f32 0.7978846, %v2356_v10 }
 0x902   : > { %v2357_v33 = vmul.f32 0.7978846, %v2355_v8  ;;  %3077 = vtanh.f32 %v2358_v40 }
 0x904   : > { %3079 = vtanh.f32 %v2357_v33 }
 0x90f   : > { %v3078_v29 = vpop.eup %3077 }
 0x910   : > { %v2362_v41 = vadd.f32 1.0, %v3078_v29 }
 0x911   : > { %v3080_v39 = vpop.eup %3079 }
 0x912   : > { %v2361_v43 = vadd.f32 1.0, %v3080_v39  ;;  %v2364_v61 = vmul.f32 %v2362_v41, %v2348_v18 }
 0x914   : > { %v2363_v48 = vmul.f32 %v2361_v43, %v2347_v37 }
 0x916   : > { %2970 = vmatprep.mubr.f32.mxu0 %v2363_v48 }
 0x917   : > { %2971 = vmatmul.mubr.f32.vlgmr.msra.gmra.mxu0 %v2364_v61 }
 0x9d7   : > { %v2972_v57 = vpop.f32.mrf.mxu0 }
 0x9d8   : > { %v2460_v46 = vadd.f32 %v2972_v57, %v2641_v5 }
 0x9d9   : > { %v2454_v47 = vpop.f32.mrf.mxu0 }
 0x9da   : > { %v2464_v17 = vadd.f32 %v2460_v46, %v4175_v11  ;;  %v2455_v36 = vadd.f32 %v2641_v5, %v2454_v47 }
 0x9dc   : > { %2466 = vst.msk [vmem:[%s440_s20 + $0x8] sm:$0x3] %vm2213_vm3, %v2464_v17  ;;  %v2463_v55 = vadd.f32 %v2455_v36, %v4177_v32 }
 0x9de   : > { %2465 = vst.msk [vmem:[%s440_s20] sm:$0xff] %vm473_vm0, %v2463_v55 }
 0x9df PF: > { %s23_s25 = sadd.s32 1, %s3087_s25  }
 0x9e0   : > { %p20_p4 = scmp.ge.s32.totalorder %s23_s25, 4  }
 0x9e2   :  { %22 = sbr.rel (!%p20_p4) target bundleno = 1 (0x1), region = 102 }

</bundles_post_ra>
